<compile_context>
chip_gen: v6e
topology: v6e:2x2x1
jax: 0.10.0
libtpu: 0.0.40
codegen_flags: <defaults>
</compile_context>

<pallas_src>
import functools
import math

import jax
import jax.numpy as jnp
from jax.experimental import pallas as pl
from jax.experimental.pallas import tpu as pltpu

# --------------------------- synthetic BERT config ---------------------------
HIDDEN = 32
N_HEADS = 2
HEAD_DIM = HIDDEN // N_HEADS
N_LAYERS = 2
INTERMEDIATE = 64
VOCAB = 100
MAX_POS = 64
TYPE_VOCAB = 2
CLASS_NUM = 8            # CRF number of tags
LN_EPS = 1e-12
GELU_C = math.sqrt(2.0 / math.pi)


# ------------------------------ in-kernel helpers ----------------------------
def _layer_norm(x, g, b):
    mu = jnp.mean(x, axis=-1, keepdims=True)
    var = jnp.mean(jnp.square(x - mu), axis=-1, keepdims=True)
    return (x - mu) * jax.lax.rsqrt(var + LN_EPS) * g + b


def _gelu_tanh(x):
    # tanh-form GELU: runs on the EUP instead of a long VALU erf polynomial.
    return 0.5 * x * (1.0 + jnp.tanh(GELU_C * (x + 0.044715 * x * x * x)))


# --------------------------- the fused model kernel --------------------------
def _bert_crf_kernel(
        mask_i_ref,                     # SMEM (B, S) int32 attention mask
        x_ref,                          # (B*S, H) summed embeddings (pre-LN)
        mask_add_ref,                   # (B, S)  f32 additive attention mask
        emb_g_ref, emb_b_ref,           # (1, H)
        wqkv_ref, bqkv_ref,             # (L, H, 3H), (L, 1, 3H)
        wo_ref, bo_ref,                 # (L, H, H), (L, 1, H)
        ln1_g_ref, ln1_b_ref,           # (L, 1, H)
        w1_ref, b1_ref,                 # (L, H, I), (L, 1, I)
        w2_ref, b2_ref,                 # (L, I, H), (L, 1, H)
        ln2_g_ref, ln2_b_ref,           # (L, 1, H)
        cls_w_ref, cls_b_ref,           # (H, C), (1, C)
        crf_start_ref, crf_end_ref, crf_trans_ref,   # (1,C), (1,C), (C,C)
        tags_ref,                       # out: (B, S) int32
        qkv_buf, attn_buf, logits_buf,  # VMEM scratch
        *, batch, seq):
    scale = 1.0 / math.sqrt(HEAD_DIM)

    # -------- embeddings LayerNorm (pure LN, no zeros residual) --------
    x = _layer_norm(x_ref[...], emb_g_ref[...], emb_b_ref[...])     # (B*S, H)

    # -------- transformer encoder, statically unrolled over layers --------
    for l in range(N_LAYERS):
        # Fused QKV projection: ONE (B*S, H) @ (H, 3H) matmul.
        qkv_buf[...] = (jnp.dot(x, wqkv_ref[l],
                                preferred_element_type=jnp.float32)
                        + bqkv_ref[l])
        wo_l = wo_ref[l]                                             # (H, H)
        for bi in range(batch):
            r0 = bi * seq
            mrow = mask_add_ref[bi:bi + 1, :]                        # (1, S)
            acc = jnp.zeros((seq, HIDDEN), jnp.float32)
            for h in range(N_HEADS):
                c0 = h * HEAD_DIM
                qh = qkv_buf[r0:r0 + seq, c0:c0 + HEAD_DIM]
                kh = qkv_buf[r0:r0 + seq, HIDDEN + c0:HIDDEN + c0 + HEAD_DIM]
                vh = qkv_buf[r0:r0 + seq,
                             2 * HIDDEN + c0:2 * HIDDEN + c0 + HEAD_DIM]
                s = jnp.dot(qh, kh.T, preferred_element_type=jnp.float32) * scale
                s = s + mrow                                         # (S, S)
                s = s - jnp.max(s, axis=-1, keepdims=True)
                p = jnp.exp(s)
                p = p * pl.reciprocal(jnp.sum(p, axis=-1, keepdims=True),
                                      approx=True)
                ctx = jnp.dot(p, vh, preferred_element_type=jnp.float32)  # (S, Dh)
                # Fold the head concat into the output projection.
                acc = acc + jnp.dot(ctx, wo_l[c0:c0 + HEAD_DIM, :],
                                    preferred_element_type=jnp.float32)
            attn_buf[r0:r0 + seq, :] = acc
        attn_out = attn_buf[...] + bo_ref[l]
        x = _layer_norm(attn_out + x, ln1_g_ref[l], ln1_b_ref[l])
        h1 = _gelu_tanh(jnp.dot(x, w1_ref[l],
                                preferred_element_type=jnp.float32) + b1_ref[l])
        h2 = jnp.dot(h1, w2_ref[l],
                     preferred_element_type=jnp.float32) + b2_ref[l]
        x = _layer_norm(h2 + x, ln2_g_ref[l], ln2_b_ref[l])

    # -------- classifier head (emissions stay in VMEM) --------
    logits_buf[...] = (jnp.dot(x, cls_w_ref[...],
                               preferred_element_type=jnp.float32)
                       + cls_b_ref[...])                             # (B*S, C)

    # -------- CRF Viterbi decode + backtracking (torchcrf semantics) --------
    trans = crf_trans_ref[...]                                       # (C, C)
    start = crf_start_ref[...]                                       # (1, C)
    end = crf_end_ref[...]                                           # (1, C)
    c = CLASS_NUM
    rows_iota = jax.lax.broadcasted_iota(jnp.int32, (c, c), 0)
    col_iota = jax.lax.broadcasted_iota(jnp.int32, (1, c), 1)
    t_iota = jax.lax.broadcasted_iota(jnp.int32, (1, seq), 1)

    for bi in range(batch):
        r0 = bi * seq
        # Forward recursion (fully unrolled; seq is static).
        score = start + logits_buf[r0:r0 + 1, :]                     # (1, C)
        hist = []                                                    # (1, C) int32 per step
        for t in range(1, seq):
            em_t = logits_buf[r0 + t:r0 + t + 1, :]                  # (1, C)
            full = score.T + trans + em_t                            # (prev C, next C)
            maxv = jnp.max(full, axis=0, keepdims=True)              # (1, C)
            idx = jnp.min(jnp.where(full >= maxv, rows_iota, c),
                          axis=0, keepdims=True).astype(jnp.int32)   # argmax over prev
            hist.append(idx)
            m_t = mask_i_ref[bi, t]                                  # scalar from SMEM
            score = jnp.where(m_t > 0, maxv, score)
        final = score + end

        fmax = jnp.max(final, axis=-1, keepdims=True)
        cur = jnp.min(jnp.where(final >= fmax, col_iota, c),
                      axis=-1, keepdims=True).astype(jnp.int32)      # (1, 1) best last tag

        length = mask_i_ref[bi, 0]
        for t in range(1, seq):
            length = length + mask_i_ref[bi, t]
        seq_end = length - 1                                         # scalar

        # Backtrack, fully unrolled; positions beyond the length are padded 0.
        tags_row = jnp.zeros((1, seq), jnp.int32)
        for t in range(seq - 1, 0, -1):
            valid = seq_end >= t                                     # scalar bool
            tags_row = jnp.where(jnp.logical_and(t_iota == t, valid),
                                 cur, tags_row)
            h_t = hist[t - 1]                                        # (1, C)
            sel = jnp.sum(jnp.where(col_iota == cur, h_t, 0),
                          axis=-1, keepdims=True)                    # h_t[cur]
            cur = jnp.where(valid, sel, cur)
        tags_row = jnp.where(t_iota == 0, cur, tags_row)             # position 0
        tags_ref[bi:bi + 1, :] = tags_row
    # TODO(synk): labels branch (CRF log-likelihood training loss) not implemented.


# ------------------------------ parameter init -------------------------------
def init_params(key):
    def nrm(k, shape):
        return 0.02 * jax.random.normal(k, shape, jnp.float32)

    keys = iter(jax.random.split(key, 64))
    params = {
        "word_emb": nrm(next(keys), (VOCAB, HIDDEN)),
        "pos_emb": nrm(next(keys), (MAX_POS, HIDDEN)),
        "type_emb": nrm(next(keys), (TYPE_VOCAB, HIDDEN)),
        "emb_ln_g": jnp.ones((HIDDEN,), jnp.float32),
        "emb_ln_b": jnp.zeros((HIDDEN,), jnp.float32),
        "layers": [],
        "cls_w": nrm(next(keys), (HIDDEN, CLASS_NUM)),
        "cls_b": jnp.zeros((CLASS_NUM,), jnp.float32),
        "crf_start": nrm(next(keys), (CLASS_NUM,)),
        "crf_end": nrm(next(keys), (CLASS_NUM,)),
        "crf_trans": nrm(next(keys), (CLASS_NUM, CLASS_NUM)),
    }
    for _ in range(N_LAYERS):
        layer = {
            "wq": nrm(next(keys), (HIDDEN, HIDDEN)), "bq": jnp.zeros((HIDDEN,)),
            "wk": nrm(next(keys), (HIDDEN, HIDDEN)), "bk": jnp.zeros((HIDDEN,)),
            "wv": nrm(next(keys), (HIDDEN, HIDDEN)), "bv": jnp.zeros((HIDDEN,)),
            "wo": nrm(next(keys), (HIDDEN, HIDDEN)), "bo": jnp.zeros((HIDDEN,)),
            "ln1_g": jnp.ones((HIDDEN,)), "ln1_b": jnp.zeros((HIDDEN,)),
            "w1": nrm(next(keys), (HIDDEN, INTERMEDIATE)),
            "b1": jnp.zeros((INTERMEDIATE,)),
            "w2": nrm(next(keys), (INTERMEDIATE, HIDDEN)),
            "b2": jnp.zeros((HIDDEN,)),
            "ln2_g": jnp.ones((HIDDEN,)), "ln2_b": jnp.zeros((HIDDEN,)),
        }
        params["layers"].append(layer)
    return params


# ------------------------------- weight packing -------------------------------
def _pack_layer_params(layers):
    wqkv = jnp.stack([jnp.concatenate([lp["wq"], lp["wk"], lp["wv"]], axis=1)
                      for lp in layers])                              # (L, H, 3H)
    bqkv = jnp.stack([jnp.concatenate([lp["bq"], lp["bk"], lp["bv"]])
                      .reshape(1, 3 * HIDDEN) for lp in layers])      # (L, 1, 3H)
    wo = jnp.stack([lp["wo"] for lp in layers])
    bo = jnp.stack([lp["bo"].reshape(1, HIDDEN) for lp in layers])
    ln1_g = jnp.stack([lp["ln1_g"].reshape(1, HIDDEN) for lp in layers])
    ln1_b = jnp.stack([lp["ln1_b"].reshape(1, HIDDEN) for lp in layers])
    w1 = jnp.stack([lp["w1"] for lp in layers])
    b1 = jnp.stack([lp["b1"].reshape(1, INTERMEDIATE) for lp in layers])
    w2 = jnp.stack([lp["w2"] for lp in layers])
    b2 = jnp.stack([lp["b2"].reshape(1, HIDDEN) for lp in layers])
    ln2_g = jnp.stack([lp["ln2_g"].reshape(1, HIDDEN) for lp in layers])
    ln2_b = jnp.stack([lp["ln2_b"].reshape(1, HIDDEN) for lp in layers])
    return (wqkv, bqkv, wo, bo, ln1_g, ln1_b, w1, b1, w2, b2, ln2_g, ln2_b)


# --------------------------------- forward ------------------------------------
@jax.jit
def bert_crf_forward(params, input_ids, attention_mask, token_type_ids):
    b, s = input_ids.shape

    # Embedding-table gathers are XLA glue (no Pallas gather needed here).
    x = (params["word_emb"][input_ids]
         + params["pos_emb"][jnp.arange(s)][None, :, :]
         + params["type_emb"][token_type_ids])                        # (B, S, H)
    x = x.reshape(b * s, HIDDEN).astype(jnp.float32)

    mask_i = attention_mask.astype(jnp.int32)                         # (B, S)
    mask_add = (1.0 - attention_mask.astype(jnp.float32)) * -10000.0  # (B, S)

    packed = _pack_layer_params(params["layers"])
    emb_g = params["emb_ln_g"].reshape(1, HIDDEN)
    emb_b = params["emb_ln_b"].reshape(1, HIDDEN)
    cls_w = params["cls_w"]
    cls_b = params["cls_b"].reshape(1, CLASS_NUM)
    crf_s = params["crf_start"].reshape(1, CLASS_NUM)
    crf_e = params["crf_end"].reshape(1, CLASS_NUM)
    crf_t = params["crf_trans"]

    smem = pl.BlockSpec(memory_space=pltpu.MemorySpace.SMEM)
    vmem = pl.BlockSpec(memory_space=pltpu.MemorySpace.VMEM)

    tags = pl.pallas_call(
        functools.partial(_bert_crf_kernel, batch=b, seq=s),
        out_shape=jax.ShapeDtypeStruct((b, s), jnp.int32),
        in_specs=[smem] + [vmem] * 21,
        out_specs=pl.BlockSpec(memory_space=pltpu.MemorySpace.VMEM),
        scratch_shapes=[
            pltpu.VMEM((b * s, 3 * HIDDEN), jnp.float32),   # fused QKV slab
            pltpu.VMEM((b * s, HIDDEN), jnp.float32),       # attention output
            pltpu.VMEM((b * s, CLASS_NUM), jnp.float32),    # CRF emissions
        ],
    )(mask_i, x, mask_add, emb_g, emb_b, *packed,
      cls_w, cls_b, crf_s, crf_e, crf_t)
    return tags


# ----------------------------------- main -------------------------------------
if __name__ == "__main__":
    key = jax.random.PRNGKey(0)
    pkey, ikey = jax.random.split(key)
    params = init_params(pkey)

    B, S = 2, 8
    input_ids = jax.random.randint(ikey, (B, S), 0, VOCAB, dtype=jnp.int32)
    attention_mask = jnp.array([[1, 1, 1, 1, 1, 1, 0, 0],
                                [1, 1, 1, 1, 1, 1, 1, 1]], dtype=jnp.int32)
    token_type_ids = jnp.zeros((B, S), dtype=jnp.int32)

    tags = bert_crf_forward(params, input_ids, attention_mask, token_type_ids)
    jax.block_until_ready(tags)
    print("KERNEL_OK")
</pallas_src>

<mosaic_0001>
module attributes {stable_mosaic.version = 11 : i64} {
  func.func @_bert_crf_kernel(%arg0: memref<2x8xi32, #tpu.memory_space<smem>>, %arg1: memref<16x32xf32, #tpu.memory_space<vmem>>, %arg2: memref<2x8xf32, #tpu.memory_space<vmem>>, %arg3: memref<1x32xf32, #tpu.memory_space<vmem>>, %arg4: memref<1x32xf32, #tpu.memory_space<vmem>>, %arg5: memref<2x32x96xf32, #tpu.memory_space<vmem>>, %arg6: memref<2x1x96xf32, #tpu.memory_space<vmem>>, %arg7: memref<2x32x32xf32, #tpu.memory_space<vmem>>, %arg8: memref<2x1x32xf32, #tpu.memory_space<vmem>>, %arg9: memref<2x1x32xf32, #tpu.memory_space<vmem>>, %arg10: memref<2x1x32xf32, #tpu.memory_space<vmem>>, %arg11: memref<2x32x64xf32, #tpu.memory_space<vmem>>, %arg12: memref<2x1x64xf32, #tpu.memory_space<vmem>>, %arg13: memref<2x64x32xf32, #tpu.memory_space<vmem>>, %arg14: memref<2x1x32xf32, #tpu.memory_space<vmem>>, %arg15: memref<2x1x32xf32, #tpu.memory_space<vmem>>, %arg16: memref<2x1x32xf32, #tpu.memory_space<vmem>>, %arg17: memref<32x8xf32, #tpu.memory_space<vmem>>, %arg18: memref<1x8xf32, #tpu.memory_space<vmem>>, %arg19: memref<1x8xf32, #tpu.memory_space<vmem>>, %arg20: memref<1x8xf32, #tpu.memory_space<vmem>>, %arg21: memref<8x8xf32, #tpu.memory_space<vmem>>, %arg22: memref<2x8xi32, #tpu.memory_space<vmem>>, %arg23: memref<16x96xf32, #tpu.memory_space<vmem>>, %arg24: memref<16x32xf32, #tpu.memory_space<vmem>>, %arg25: memref<16x8xf32, #tpu.memory_space<vmem>>) attributes {dimension_semantics = [], scalar_prefetch = 0 : i64, scratch_operands = 3 : i64, tpu.core_type = #tpu.core_type<tc>} {
    %c0 = arith.constant 0 : index
    %c0_0 = arith.constant 0 : index
    %0 = vector.load %arg1[%c0, %c0_0] : memref<16x32xf32, #tpu.memory_space<vmem>>, vector<16x32xf32>
    %c0_1 = arith.constant 0 : index
    %c0_2 = arith.constant 0 : index
    %1 = vector.load %arg3[%c0_1, %c0_2] : memref<1x32xf32, #tpu.memory_space<vmem>>, vector<1x32xf32>
    %c0_3 = arith.constant 0 : index
    %c0_4 = arith.constant 0 : index
    %2 = vector.load %arg4[%c0_3, %c0_4] : memref<1x32xf32, #tpu.memory_space<vmem>>, vector<1x32xf32>
    %cst = arith.constant dense<0.000000e+00> : vector<16xf32>
    %3 = vector.multi_reduction <add>, %0, %cst [1] : vector<16x32xf32> to vector<16xf32>
    %4 = vector.shape_cast %3 : vector<16xf32> to vector<16x1xf32>
    %cst_5 = arith.constant 3.200000e+01 : f32
    %5 = vector.broadcast %cst_5 : f32 to vector<16x1xf32>
    %6 = arith.divf %4, %5 : vector<16x1xf32>
    %7 = vector.broadcast %6 : vector<16x1xf32> to vector<16x32xf32>
    %8 = arith.subf %0, %7 : vector<16x32xf32>
    %9 = arith.mulf %8, %8 : vector<16x32xf32>
    %cst_6 = arith.constant dense<0.000000e+00> : vector<16xf32>
    %10 = vector.multi_reduction <add>, %9, %cst_6 [1] : vector<16x32xf32> to vector<16xf32>
    %11 = vector.shape_cast %10 : vector<16xf32> to vector<16x1xf32>
    %cst_7 = arith.constant 3.200000e+01 : f32
    %12 = vector.broadcast %cst_7 : f32 to vector<16x1xf32>
    %13 = arith.divf %11, %12 : vector<16x1xf32>
    %14 = vector.broadcast %6 : vector<16x1xf32> to vector<16x32xf32>
    %15 = arith.subf %0, %14 : vector<16x32xf32>
    %cst_8 = arith.constant 9.99999996E-13 : f32
    %16 = vector.broadcast %cst_8 : f32 to vector<16x1xf32>
    %17 = arith.addf %13, %16 : vector<16x1xf32>
    %18 = math.rsqrt %17 : vector<16x1xf32>
    %19 = vector.broadcast %18 : vector<16x1xf32> to vector<16x32xf32>
    %20 = arith.mulf %15, %19 : vector<16x32xf32>
    %21 = vector.broadcast %1 : vector<1x32xf32> to vector<16x32xf32>
    %22 = arith.mulf %20, %21 : vector<16x32xf32>
    %23 = vector.broadcast %2 : vector<1x32xf32> to vector<16x32xf32>
    %24 = arith.addf %22, %23 : vector<16x32xf32>
    %c0_9 = arith.constant 0 : index
    %c0_10 = arith.constant 0 : index
    %c0_11 = arith.constant 0 : index
    %25 = vector.load %arg5[%c0_9, %c0_10, %c0_11] : memref<2x32x96xf32, #tpu.memory_space<vmem>>, vector<1x32x96xf32>
    %26 = vector.shape_cast %25 : vector<1x32x96xf32> to vector<32x96xf32>
    %cst_12 = arith.constant dense<0.000000e+00> : vector<16x96xf32>
    %27 = tpu.matmul %24, %26, %cst_12 {dimension_numbers = #tpu.dot_dimension_numbers<[1], [0], [0], [1], [0, 0, 1, 1], [], []>} : vector<16x32xf32>, vector<32x96xf32>, vector<16x96xf32> -> vector<16x96xf32>
    %c0_13 = arith.constant 0 : index
    %c0_14 = arith.constant 0 : index
    %c0_15 = arith.constant 0 : index
    %28 = vector.load %arg6[%c0_13, %c0_14, %c0_15] : memref<2x1x96xf32, #tpu.memory_space<vmem>>, vector<1x1x96xf32>
    %29 = vector.shape_cast %28 : vector<1x1x96xf32> to vector<1x96xf32>
    %30 = vector.broadcast %29 : vector<1x96xf32> to vector<16x96xf32>
    %31 = arith.addf %27, %30 : vector<16x96xf32>
    %c0_16 = arith.constant 0 : index
    %c0_17 = arith.constant 0 : index
    %32 = vector.load %arg23[%c0_16, %c0_17] : memref<16x96xf32, #tpu.memory_space<vmem>>, vector<16x96xf32>
    tpu.vector_store %arg23[%c0_16, %c0_17], %31 {strides = array<i32>} : memref<16x96xf32, #tpu.memory_space<vmem>>, vector<16x96xf32>,
    %c0_18 = arith.constant 0 : index
    %c0_19 = arith.constant 0 : index
    %c0_20 = arith.constant 0 : index
    %33 = vector.load %arg7[%c0_18, %c0_19, %c0_20] : memref<2x32x32xf32, #tpu.memory_space<vmem>>, vector<1x32x32xf32>
    %34 = vector.shape_cast %33 : vector<1x32x32xf32> to vector<32x32xf32>
    %c0_21 = arith.constant 0 : index
    %c0_22 = arith.constant 0 : index
    %35 = vector.load %arg2[%c0_21, %c0_22] : memref<2x8xf32, #tpu.memory_space<vmem>>, vector<1x8xf32>
    %cst_23 = arith.constant 0.000000e+00 : f32
    %36 = vector.broadcast %cst_23 : f32 to vector<8x32xf32>
    %c0_24 = arith.constant 0 : index
    %c0_25 = arith.constant 0 : index
    %37 = vector.load %arg23[%c0_24, %c0_25] : memref<16x96xf32, #tpu.memory_space<vmem>>, vector<8x16xf32>
    %c0_26 = arith.constant 0 : index
    %c32 = arith.constant 32 : index
    %38 = vector.load %arg23[%c0_26, %c32] : memref<16x96xf32, #tpu.memory_space<vmem>>, vector<8x16xf32>
    %c0_27 = arith.constant 0 : index
    %c64 = arith.constant 64 : index
    %39 = vector.load %arg23[%c0_27, %c64] : memref<16x96xf32, #tpu.memory_space<vmem>>, vector<8x16xf32>
    %40 = tpu.transpose %38, [1, 0] : vector<8x16xf32> -> vector<16x8xf32>
    %cst_28 = arith.constant dense<0.000000e+00> : vector<8x8xf32>
    %41 = tpu.matmul %37, %40, %cst_28 {dimension_numbers = #tpu.dot_dimension_numbers<[1], [0], [0], [1], [0, 0, 1, 1], [], []>} : vector<8x16xf32>, vector<16x8xf32>, vector<8x8xf32> -> vector<8x8xf32>
    %cst_29 = arith.constant 2.500000e-01 : f32
    %42 = vector.broadcast %cst_29 : f32 to vector<8x8xf32>
    %43 = arith.mulf %41, %42 : vector<8x8xf32>
    %44 = vector.broadcast %35 : vector<1x8xf32> to vector<8x8xf32>
    %45 = arith.addf %43, %44 : vector<8x8xf32>
    %cst_30 = arith.constant dense<0xFF800000> : vector<8xf32>
    %46 = vector.multi_reduction <maximumf>, %45, %cst_30 [1] : vector<8x8xf32> to vector<8xf32>
    %47 = vector.shape_cast %46 : vector<8xf32> to vector<8x1xf32>
    %48 = vector.broadcast %47 : vector<8x1xf32> to vector<8x8xf32>
    %49 = arith.subf %45, %48 : vector<8x8xf32>
    %50 = math.exp %49 : vector<8x8xf32>
    %cst_31 = arith.constant dense<0.000000e+00> : vector<8xf32>
    %51 = vector.multi_reduction <add>, %50, %cst_31 [1] : vector<8x8xf32> to vector<8xf32>
    %52 = vector.shape_cast %51 : vector<8xf32> to vector<8x1xf32>
    %53 = tpu.reciprocal %52 {approx = true} : vector<8x1xf32> -> vector<8x1xf32>
    %54 = vector.broadcast %53 : vector<8x1xf32> to vector<8x8xf32>
    %55 = arith.mulf %50, %54 : vector<8x8xf32>
    %cst_32 = arith.constant dense<0.000000e+00> : vector<8x16xf32>
    %56 = tpu.matmul %55, %39, %cst_32 {dimension_numbers = #tpu.dot_dimension_numbers<[1], [0], [0], [1], [0, 0, 1, 1], [], []>} : vector<8x8xf32>, vector<8x16xf32>, vector<8x16xf32> -> vector<8x16xf32>
    %57 = vector.extract_strided_slice %34 {offsets = [0, 0], sizes = [16, 32], strides = [1, 1]} : vector<32x32xf32> to vector<16x32xf32>
    %cst_33 = arith.constant dense<0.000000e+00> : vector<8x32xf32>
    %58 = tpu.matmul %56, %57, %cst_33 {dimension_numbers = #tpu.dot_dimension_numbers<[1], [0], [0], [1], [0, 0, 1, 1], [], []>} : vector<8x16xf32>, vector<16x32xf32>, vector<8x32xf32> -> vector<8x32xf32>
    %59 = arith.addf %36, %58 : vector<8x32xf32>
    %c0_34 = arith.constant 0 : index
    %c16 = arith.constant 16 : index
    %60 = vector.load %arg23[%c0_34, %c16] : memref<16x96xf32, #tpu.memory_space<vmem>>, vector<8x16xf32>
    %c0_35 = arith.constant 0 : index
    %c48 = arith.constant 48 : index
    %61 = vector.load %arg23[%c0_35, %c48] : memref<16x96xf32, #tpu.memory_space<vmem>>, vector<8x16xf32>
    %c0_36 = arith.constant 0 : index
    %c80 = arith.constant 80 : index
    %62 = vector.load %arg23[%c0_36, %c80] : memref<16x96xf32, #tpu.memory_space<vmem>>, vector<8x16xf32>
    %63 = tpu.transpose %61, [1, 0] : vector<8x16xf32> -> vector<16x8xf32>
    %cst_37 = arith.constant dense<0.000000e+00> : vector<8x8xf32>
    %64 = tpu.matmul %60, %63, %cst_37 {dimension_numbers = #tpu.dot_dimension_numbers<[1], [0], [0], [1], [0, 0, 1, 1], [], []>} : vector<8x16xf32>, vector<16x8xf32>, vector<8x8xf32> -> vector<8x8xf32>
    %cst_38 = arith.constant 2.500000e-01 : f32
    %65 = vector.broadcast %cst_38 : f32 to vector<8x8xf32>
    %66 = arith.mulf %64, %65 : vector<8x8xf32>
    %67 = vector.broadcast %35 : vector<1x8xf32> to vector<8x8xf32>
    %68 = arith.addf %66, %67 : vector<8x8xf32>
    %cst_39 = arith.constant dense<0xFF800000> : vector<8xf32>
    %69 = vector.multi_reduction <maximumf>, %68, %cst_39 [1] : vector<8x8xf32> to vector<8xf32>
    %70 = vector.shape_cast %69 : vector<8xf32> to vector<8x1xf32>
    %71 = vector.broadcast %70 : vector<8x1xf32> to vector<8x8xf32>
    %72 = arith.subf %68, %71 : vector<8x8xf32>
    %73 = math.exp %72 : vector<8x8xf32>
    %cst_40 = arith.constant dense<0.000000e+00> : vector<8xf32>
    %74 = vector.multi_reduction <add>, %73, %cst_40 [1] : vector<8x8xf32> to vector<8xf32>
    %75 = vector.shape_cast %74 : vector<8xf32> to vector<8x1xf32>
    %76 = tpu.reciprocal %75 {approx = true} : vector<8x1xf32> -> vector<8x1xf32>
    %77 = vector.broadcast %76 : vector<8x1xf32> to vector<8x8xf32>
    %78 = arith.mulf %73, %77 : vector<8x8xf32>
    %cst_41 = arith.constant dense<0.000000e+00> : vector<8x16xf32>
    %79 = tpu.matmul %78, %62, %cst_41 {dimension_numbers = #tpu.dot_dimension_numbers<[1], [0], [0], [1], [0, 0, 1, 1], [], []>} : vector<8x8xf32>, vector<8x16xf32>, vector<8x16xf32> -> vector<8x16xf32>
    %80 = vector.extract_strided_slice %34 {offsets = [16, 0], sizes = [16, 32], strides = [1, 1]} : vector<32x32xf32> to vector<16x32xf32>
    %cst_42 = arith.constant dense<0.000000e+00> : vector<8x32xf32>
    %81 = tpu.matmul %79, %80, %cst_42 {dimension_numbers = #tpu.dot_dimension_numbers<[1], [0], [0], [1], [0, 0, 1, 1], [], []>} : vector<8x16xf32>, vector<16x32xf32>, vector<8x32xf32> -> vector<8x32xf32>
    %82 = arith.addf %59, %81 : vector<8x32xf32>
    %c0_43 = arith.constant 0 : index
    %c0_44 = arith.constant 0 : index
    %83 = vector.load %arg24[%c0_43, %c0_44] : memref<16x32xf32, #tpu.memory_space<vmem>>, vector<8x32xf32>
    tpu.vector_store %arg24[%c0_43, %c0_44], %82 {strides = array<i32>} : memref<16x32xf32, #tpu.memory_space<vmem>>, vector<8x32xf32>,
    %c1 = arith.constant 1 : index
    %c0_45 = arith.constant 0 : index
    %84 = vector.load %arg2[%c1, %c0_45] : memref<2x8xf32, #tpu.memory_space<vmem>>, vector<1x8xf32>
    %cst_46 = arith.constant 0.000000e+00 : f32
    %85 = vector.broadcast %cst_46 : f32 to vector<8x32xf32>
    %c8 = arith.constant 8 : index
    %c0_47 = arith.constant 0 : index
    %86 = vector.load %arg23[%c8, %c0_47] : memref<16x96xf32, #tpu.memory_space<vmem>>, vector<8x16xf32>
    %c8_48 = arith.constant 8 : index
    %c32_49 = arith.constant 32 : index
    %87 = vector.load %arg23[%c8_48, %c32_49] : memref<16x96xf32, #tpu.memory_space<vmem>>, vector<8x16xf32>
    %c8_50 = arith.constant 8 : index
    %c64_51 = arith.constant 64 : index
    %88 = vector.load %arg23[%c8_50, %c64_51] : memref<16x96xf32, #tpu.memory_space<vmem>>, vector<8x16xf32>
    %89 = tpu.transpose %87, [1, 0] : vector<8x16xf32> -> vector<16x8xf32>
    %cst_52 = arith.constant dense<0.000000e+00> : vector<8x8xf32>
    %90 = tpu.matmul %86, %89, %cst_52 {dimension_numbers = #tpu.dot_dimension_numbers<[1], [0], [0], [1], [0, 0, 1, 1], [], []>} : vector<8x16xf32>, vector<16x8xf32>, vector<8x8xf32> -> vector<8x8xf32>
    %cst_53 = arith.constant 2.500000e-01 : f32
    %91 = vector.broadcast %cst_53 : f32 to vector<8x8xf32>
    %92 = arith.mulf %90, %91 : vector<8x8xf32>
    %93 = vector.broadcast %84 : vector<1x8xf32> to vector<8x8xf32>
    %94 = arith.addf %92, %93 : vector<8x8xf32>
    %cst_54 = arith.constant dense<0xFF800000> : vector<8xf32>
    %95 = vector.multi_reduction <maximumf>, %94, %cst_54 [1] : vector<8x8xf32> to vector<8xf32>
    %96 = vector.shape_cast %95 : vector<8xf32> to vector<8x1xf32>
    %97 = vector.broadcast %96 : vector<8x1xf32> to vector<8x8xf32>
    %98 = arith.subf %94, %97 : vector<8x8xf32>
    %99 = math.exp %98 : vector<8x8xf32>
    %cst_55 = arith.constant dense<0.000000e+00> : vector<8xf32>
    %100 = vector.multi_reduction <add>, %99, %cst_55 [1] : vector<8x8xf32> to vector<8xf32>
    %101 = vector.shape_cast %100 : vector<8xf32> to vector<8x1xf32>
    %102 = tpu.reciprocal %101 {approx = true} : vector<8x1xf32> -> vector<8x1xf32>
    %103 = vector.broadcast %102 : vector<8x1xf32> to vector<8x8xf32>
    %104 = arith.mulf %99, %103 : vector<8x8xf32>
    %cst_56 = arith.constant dense<0.000000e+00> : vector<8x16xf32>
    %105 = tpu.matmul %104, %88, %cst_56 {dimension_numbers = #tpu.dot_dimension_numbers<[1], [0], [0], [1], [0, 0, 1, 1], [], []>} : vector<8x8xf32>, vector<8x16xf32>, vector<8x16xf32> -> vector<8x16xf32>
    %106 = vector.extract_strided_slice %34 {offsets = [0, 0], sizes = [16, 32], strides = [1, 1]} : vector<32x32xf32> to vector<16x32xf32>
    %cst_57 = arith.constant dense<0.000000e+00> : vector<8x32xf32>
    %107 = tpu.matmul %105, %106, %cst_57 {dimension_numbers = #tpu.dot_dimension_numbers<[1], [0], [0], [1], [0, 0, 1, 1], [], []>} : vector<8x16xf32>, vector<16x32xf32>, vector<8x32xf32> -> vector<8x32xf32>
    %108 = arith.addf %85, %107 : vector<8x32xf32>
    %c8_58 = arith.constant 8 : index
    %c16_59 = arith.constant 16 : index
    %109 = vector.load %arg23[%c8_58, %c16_59] : memref<16x96xf32, #tpu.memory_space<vmem>>, vector<8x16xf32>
    %c8_60 = arith.constant 8 : index
    %c48_61 = arith.constant 48 : index
    %110 = vector.load %arg23[%c8_60, %c48_61] : memref<16x96xf32, #tpu.memory_space<vmem>>, vector<8x16xf32>
    %c8_62 = arith.constant 8 : index
    %c80_63 = arith.constant 80 : index
    %111 = vector.load %arg23[%c8_62, %c80_63] : memref<16x96xf32, #tpu.memory_space<vmem>>, vector<8x16xf32>
    %112 = tpu.transpose %110, [1, 0] : vector<8x16xf32> -> vector<16x8xf32>
    %cst_64 = arith.constant dense<0.000000e+00> : vector<8x8xf32>
    %113 = tpu.matmul %109, %112, %cst_64 {dimension_numbers = #tpu.dot_dimension_numbers<[1], [0], [0], [1], [0, 0, 1, 1], [], []>} : vector<8x16xf32>, vector<16x8xf32>, vector<8x8xf32> -> vector<8x8xf32>
    %cst_65 = arith.constant 2.500000e-01 : f32
    %114 = vector.broadcast %cst_65 : f32 to vector<8x8xf32>
    %115 = arith.mulf %113, %114 : vector<8x8xf32>
    %116 = vector.broadcast %84 : vector<1x8xf32> to vector<8x8xf32>
    %117 = arith.addf %115, %116 : vector<8x8xf32>
    %cst_66 = arith.constant dense<0xFF800000> : vector<8xf32>
    %118 = vector.multi_reduction <maximumf>, %117, %cst_66 [1] : vector<8x8xf32> to vector<8xf32>
    %119 = vector.shape_cast %118 : vector<8xf32> to vector<8x1xf32>
    %120 = vector.broadcast %119 : vector<8x1xf32> to vector<8x8xf32>
    %121 = arith.subf %117, %120 : vector<8x8xf32>
    %122 = math.exp %121 : vector<8x8xf32>
    %cst_67 = arith.constant dense<0.000000e+00> : vector<8xf32>
    %123 = vector.multi_reduction <add>, %122, %cst_67 [1] : vector<8x8xf32> to vector<8xf32>
    %124 = vector.shape_cast %123 : vector<8xf32> to vector<8x1xf32>
    %125 = tpu.reciprocal %124 {approx = true} : vector<8x1xf32> -> vector<8x1xf32>
    %126 = vector.broadcast %125 : vector<8x1xf32> to vector<8x8xf32>
    %127 = arith.mulf %122, %126 : vector<8x8xf32>
    %cst_68 = arith.constant dense<0.000000e+00> : vector<8x16xf32>
    %128 = tpu.matmul %127, %111, %cst_68 {dimension_numbers = #tpu.dot_dimension_numbers<[1], [0], [0], [1], [0, 0, 1, 1], [], []>} : vector<8x8xf32>, vector<8x16xf32>, vector<8x16xf32> -> vector<8x16xf32>
    %129 = vector.extract_strided_slice %34 {offsets = [16, 0], sizes = [16, 32], strides = [1, 1]} : vector<32x32xf32> to vector<16x32xf32>
    %cst_69 = arith.constant dense<0.000000e+00> : vector<8x32xf32>
    %130 = tpu.matmul %128, %129, %cst_69 {dimension_numbers = #tpu.dot_dimension_numbers<[1], [0], [0], [1], [0, 0, 1, 1], [], []>} : vector<8x16xf32>, vector<16x32xf32>, vector<8x32xf32> -> vector<8x32xf32>
    %131 = arith.addf %108, %130 : vector<8x32xf32>
    %c8_70 = arith.constant 8 : index
    %c0_71 = arith.constant 0 : index
    %132 = vector.load %arg24[%c8_70, %c0_71] : memref<16x32xf32, #tpu.memory_space<vmem>>, vector<8x32xf32>
    tpu.vector_store %arg24[%c8_70, %c0_71], %131 {strides = array<i32>} : memref<16x32xf32, #tpu.memory_space<vmem>>, vector<8x32xf32>,
    %c0_72 = arith.constant 0 : index
    %c0_73 = arith.constant 0 : index
    %133 = vector.load %arg24[%c0_72, %c0_73] : memref<16x32xf32, #tpu.memory_space<vmem>>, vector<16x32xf32>
    %c0_74 = arith.constant 0 : index
    %c0_75 = arith.constant 0 : index
    %c0_76 = arith.constant 0 : index
    %134 = vector.load %arg8[%c0_74, %c0_75, %c0_76] : memref<2x1x32xf32, #tpu.memory_space<vmem>>, vector<1x1x32xf32>
    %135 = vector.shape_cast %134 : vector<1x1x32xf32> to vector<1x32xf32>
    %136 = vector.broadcast %135 : vector<1x32xf32> to vector<16x32xf32>
    %137 = arith.addf %133, %136 : vector<16x32xf32>
    %138 = arith.addf %137, %24 : vector<16x32xf32>
    %c0_77 = arith.constant 0 : index
    %c0_78 = arith.constant 0 : index
    %c0_79 = arith.constant 0 : index
    %139 = vector.load %arg9[%c0_77, %c0_78, %c0_79] : memref<2x1x32xf32, #tpu.memory_space<vmem>>, vector<1x1x32xf32>
    %140 = vector.shape_cast %139 : vector<1x1x32xf32> to vector<1x32xf32>
    %c0_80 = arith.constant 0 : index
    %c0_81 = arith.constant 0 : index
    %c0_82 = arith.constant 0 : index
    %141 = vector.load %arg10[%c0_80, %c0_81, %c0_82] : memref<2x1x32xf32, #tpu.memory_space<vmem>>, vector<1x1x32xf32>
    %142 = vector.shape_cast %141 : vector<1x1x32xf32> to vector<1x32xf32>
    %cst_83 = arith.constant dense<0.000000e+00> : vector<16xf32>
    %143 = vector.multi_reduction <add>, %138, %cst_83 [1] : vector<16x32xf32> to vector<16xf32>
    %144 = vector.shape_cast %143 : vector<16xf32> to vector<16x1xf32>
    %cst_84 = arith.constant 3.200000e+01 : f32
    %145 = vector.broadcast %cst_84 : f32 to vector<16x1xf32>
    %146 = arith.divf %144, %145 : vector<16x1xf32>
    %147 = vector.broadcast %146 : vector<16x1xf32> to vector<16x32xf32>
    %148 = arith.subf %138, %147 : vector<16x32xf32>
    %149 = arith.mulf %148, %148 : vector<16x32xf32>
    %cst_85 = arith.constant dense<0.000000e+00> : vector<16xf32>
    %150 = vector.multi_reduction <add>, %149, %cst_85 [1] : vector<16x32xf32> to vector<16xf32>
    %151 = vector.shape_cast %150 : vector<16xf32> to vector<16x1xf32>
    %cst_86 = arith.constant 3.200000e+01 : f32
    %152 = vector.broadcast %cst_86 : f32 to vector<16x1xf32>
    %153 = arith.divf %151, %152 : vector<16x1xf32>
    %154 = vector.broadcast %146 : vector<16x1xf32> to vector<16x32xf32>
    %155 = arith.subf %138, %154 : vector<16x32xf32>
    %cst_87 = arith.constant 9.99999996E-13 : f32
    %156 = vector.broadcast %cst_87 : f32 to vector<16x1xf32>
    %157 = arith.addf %153, %156 : vector<16x1xf32>
    %158 = math.rsqrt %157 : vector<16x1xf32>
    %159 = vector.broadcast %158 : vector<16x1xf32> to vector<16x32xf32>
    %160 = arith.mulf %155, %159 : vector<16x32xf32>
    %161 = vector.broadcast %140 : vector<1x32xf32> to vector<16x32xf32>
    %162 = arith.mulf %160, %161 : vector<16x32xf32>
    %163 = vector.broadcast %142 : vector<1x32xf32> to vector<16x32xf32>
    %164 = arith.addf %162, %163 : vector<16x32xf32>
    %c0_88 = arith.constant 0 : index
    %c0_89 = arith.constant 0 : index
    %c0_90 = arith.constant 0 : index
    %165 = vector.load %arg11[%c0_88, %c0_89, %c0_90] : memref<2x32x64xf32, #tpu.memory_space<vmem>>, vector<1x32x64xf32>
    %166 = vector.shape_cast %165 : vector<1x32x64xf32> to vector<32x64xf32>
    %cst_91 = arith.constant dense<0.000000e+00> : vector<16x64xf32>
    %167 = tpu.matmul %164, %166, %cst_91 {dimension_numbers = #tpu.dot_dimension_numbers<[1], [0], [0], [1], [0, 0, 1, 1], [], []>} : vector<16x32xf32>, vector<32x64xf32>, vector<16x64xf32> -> vector<16x64xf32>
    %c0_92 = arith.constant 0 : index
    %c0_93 = arith.constant 0 : index
    %c0_94 = arith.constant 0 : index
    %168 = vector.load %arg12[%c0_92, %c0_93, %c0_94] : memref<2x1x64xf32, #tpu.memory_space<vmem>>, vector<1x1x64xf32>
    %169 = vector.shape_cast %168 : vector<1x1x64xf32> to vector<1x64xf32>
    %170 = vector.broadcast %169 : vector<1x64xf32> to vector<16x64xf32>
    %171 = arith.addf %167, %170 : vector<16x64xf32>
    %cst_95 = arith.constant 5.000000e-01 : f32
    %172 = vector.broadcast %cst_95 : f32 to vector<16x64xf32>
    %173 = arith.mulf %172, %171 : vector<16x64xf32>
    %cst_96 = arith.constant 4.471500e-02 : f32
    %174 = vector.broadcast %cst_96 : f32 to vector<16x64xf32>
    %175 = arith.mulf %174, %171 : vector<16x64xf32>
    %176 = arith.mulf %175, %171 : vector<16x64xf32>
    %177 = arith.mulf %176, %171 : vector<16x64xf32>
    %178 = arith.addf %171, %177 : vector<16x64xf32>
    %cst_97 = arith.constant 0.797884583 : f32
    %179 = vector.broadcast %cst_97 : f32 to vector<16x64xf32>
    %180 = arith.mulf %179, %178 : vector<16x64xf32>
    %181 = math.tanh %180 : vector<16x64xf32>
    %cst_98 = arith.constant 1.000000e+00 : f32
    %182 = vector.broadcast %cst_98 : f32 to vector<16x64xf32>
    %183 = arith.addf %182, %181 : vector<16x64xf32>
    %184 = arith.mulf %173, %183 : vector<16x64xf32>
    %c0_99 = arith.constant 0 : index
    %c0_100 = arith.constant 0 : index
    %c0_101 = arith.constant 0 : index
    %185 = vector.load %arg13[%c0_99, %c0_100, %c0_101] : memref<2x64x32xf32, #tpu.memory_space<vmem>>, vector<1x64x32xf32>
    %186 = vector.shape_cast %185 : vector<1x64x32xf32> to vector<64x32xf32>
    %cst_102 = arith.constant dense<0.000000e+00> : vector<16x32xf32>
    %187 = tpu.matmul %184, %186, %cst_102 {dimension_numbers = #tpu.dot_dimension_numbers<[1], [0], [0], [1], [0, 0, 1, 1], [], []>} : vector<16x64xf32>, vector<64x32xf32>, vector<16x32xf32> -> vector<16x32xf32>
    %c0_103 = arith.constant 0 : index
    %c0_104 = arith.constant 0 : index
    %c0_105 = arith.constant 0 : index
    %188 = vector.load %arg14[%c0_103, %c0_104, %c0_105] : memref<2x1x32xf32, #tpu.memory_space<vmem>>, vector<1x1x32xf32>
    %189 = vector.shape_cast %188 : vector<1x1x32xf32> to vector<1x32xf32>
    %190 = vector.broadcast %189 : vector<1x32xf32> to vector<16x32xf32>
    %191 = arith.addf %187, %190 : vector<16x32xf32>
    %192 = arith.addf %191, %164 : vector<16x32xf32>
    %c0_106 = arith.constant 0 : index
    %c0_107 = arith.constant 0 : index
    %c0_108 = arith.constant 0 : index
    %193 = vector.load %arg15[%c0_106, %c0_107, %c0_108] : memref<2x1x32xf32, #tpu.memory_space<vmem>>, vector<1x1x32xf32>
    %194 = vector.shape_cast %193 : vector<1x1x32xf32> to vector<1x32xf32>
    %c0_109 = arith.constant 0 : index
    %c0_110 = arith.constant 0 : index
    %c0_111 = arith.constant 0 : index
    %195 = vector.load %arg16[%c0_109, %c0_110, %c0_111] : memref<2x1x32xf32, #tpu.memory_space<vmem>>, vector<1x1x32xf32>
    %196 = vector.shape_cast %195 : vector<1x1x32xf32> to vector<1x32xf32>
    %cst_112 = arith.constant dense<0.000000e+00> : vector<16xf32>
    %197 = vector.multi_reduction <add>, %192, %cst_112 [1] : vector<16x32xf32> to vector<16xf32>
    %198 = vector.shape_cast %197 : vector<16xf32> to vector<16x1xf32>
    %cst_113 = arith.constant 3.200000e+01 : f32
    %199 = vector.broadcast %cst_113 : f32 to vector<16x1xf32>
    %200 = arith.divf %198, %199 : vector<16x1xf32>
    %201 = vector.broadcast %200 : vector<16x1xf32> to vector<16x32xf32>
    %202 = arith.subf %192, %201 : vector<16x32xf32>
    %203 = arith.mulf %202, %202 : vector<16x32xf32>
    %cst_114 = arith.constant dense<0.000000e+00> : vector<16xf32>
    %204 = vector.multi_reduction <add>, %203, %cst_114 [1] : vector<16x32xf32> to vector<16xf32>
    %205 = vector.shape_cast %204 : vector<16xf32> to vector<16x1xf32>
    %cst_115 = arith.constant 3.200000e+01 : f32
    %206 = vector.broadcast %cst_115 : f32 to vector<16x1xf32>
    %207 = arith.divf %205, %206 : vector<16x1xf32>
    %208 = vector.broadcast %200 : vector<16x1xf32> to vector<16x32xf32>
    %209 = arith.subf %192, %208 : vector<16x32xf32>
    %cst_116 = arith.constant 9.99999996E-13 : f32
    %210 = vector.broadcast %cst_116 : f32 to vector<16x1xf32>
    %211 = arith.addf %207, %210 : vector<16x1xf32>
    %212 = math.rsqrt %211 : vector<16x1xf32>
    %213 = vector.broadcast %212 : vector<16x1xf32> to vector<16x32xf32>
    %214 = arith.mulf %209, %213 : vector<16x32xf32>
    %215 = vector.broadcast %194 : vector<1x32xf32> to vector<16x32xf32>
    %216 = arith.mulf %214, %215 : vector<16x32xf32>
    %217 = vector.broadcast %196 : vector<1x32xf32> to vector<16x32xf32>
    %218 = arith.addf %216, %217 : vector<16x32xf32>
    %c1_117 = arith.constant 1 : index
    %c0_118 = arith.constant 0 : index
    %c0_119 = arith.constant 0 : index
    %219 = vector.load %arg5[%c1_117, %c0_118, %c0_119] : memref<2x32x96xf32, #tpu.memory_space<vmem>>, vector<1x32x96xf32>
    %220 = vector.shape_cast %219 : vector<1x32x96xf32> to vector<32x96xf32>
    %cst_120 = arith.constant dense<0.000000e+00> : vector<16x96xf32>
    %221 = tpu.matmul %218, %220, %cst_120 {dimension_numbers = #tpu.dot_dimension_numbers<[1], [0], [0], [1], [0, 0, 1, 1], [], []>} : vector<16x32xf32>, vector<32x96xf32>, vector<16x96xf32> -> vector<16x96xf32>
    %c1_121 = arith.constant 1 : index
    %c0_122 = arith.constant 0 : index
    %c0_123 = arith.constant 0 : index
    %222 = vector.load %arg6[%c1_121, %c0_122, %c0_123] : memref<2x1x96xf32, #tpu.memory_space<vmem>>, vector<1x1x96xf32>
    %223 = vector.shape_cast %222 : vector<1x1x96xf32> to vector<1x96xf32>
    %224 = vector.broadcast %223 : vector<1x96xf32> to vector<16x96xf32>
    %225 = arith.addf %221, %224 : vector<16x96xf32>
    %c0_124 = arith.constant 0 : index
    %c0_125 = arith.constant 0 : index
    %226 = vector.load %arg23[%c0_124, %c0_125] : memref<16x96xf32, #tpu.memory_space<vmem>>, vector<16x96xf32>
    tpu.vector_store %arg23[%c0_124, %c0_125], %225 {strides = array<i32>} : memref<16x96xf32, #tpu.memory_space<vmem>>, vector<16x96xf32>,
    %c1_126 = arith.constant 1 : index
    %c0_127 = arith.constant 0 : index
    %c0_128 = arith.constant 0 : index
    %227 = vector.load %arg7[%c1_126, %c0_127, %c0_128] : memref<2x32x32xf32, #tpu.memory_space<vmem>>, vector<1x32x32xf32>
    %228 = vector.shape_cast %227 : vector<1x32x32xf32> to vector<32x32xf32>
    %c0_129 = arith.constant 0 : index
    %c0_130 = arith.constant 0 : index
    %229 = vector.load %arg2[%c0_129, %c0_130] : memref<2x8xf32, #tpu.memory_space<vmem>>, vector<1x8xf32>
    %cst_131 = arith.constant 0.000000e+00 : f32
    %230 = vector.broadcast %cst_131 : f32 to vector<8x32xf32>
    %c0_132 = arith.constant 0 : index
    %c0_133 = arith.constant 0 : index
    %231 = vector.load %arg23[%c0_132, %c0_133] : memref<16x96xf32, #tpu.memory_space<vmem>>, vector<8x16xf32>
    %c0_134 = arith.constant 0 : index
    %c32_135 = arith.constant 32 : index
    %232 = vector.load %arg23[%c0_134, %c32_135] : memref<16x96xf32, #tpu.memory_space<vmem>>, vector<8x16xf32>
    %c0_136 = arith.constant 0 : index
    %c64_137 = arith.constant 64 : index
    %233 = vector.load %arg23[%c0_136, %c64_137] : memref<16x96xf32, #tpu.memory_space<vmem>>, vector<8x16xf32>
    %234 = tpu.transpose %232, [1, 0] : vector<8x16xf32> -> vector<16x8xf32>
    %cst_138 = arith.constant dense<0.000000e+00> : vector<8x8xf32>
    %235 = tpu.matmul %231, %234, %cst_138 {dimension_numbers = #tpu.dot_dimension_numbers<[1], [0], [0], [1], [0, 0, 1, 1], [], []>} : vector<8x16xf32>, vector<16x8xf32>, vector<8x8xf32> -> vector<8x8xf32>
    %cst_139 = arith.constant 2.500000e-01 : f32
    %236 = vector.broadcast %cst_139 : f32 to vector<8x8xf32>
    %237 = arith.mulf %235, %236 : vector<8x8xf32>
    %238 = vector.broadcast %229 : vector<1x8xf32> to vector<8x8xf32>
    %239 = arith.addf %237, %238 : vector<8x8xf32>
    %cst_140 = arith.constant dense<0xFF800000> : vector<8xf32>
    %240 = vector.multi_reduction <maximumf>, %239, %cst_140 [1] : vector<8x8xf32> to vector<8xf32>
    %241 = vector.shape_cast %240 : vector<8xf32> to vector<8x1xf32>
    %242 = vector.broadcast %241 : vector<8x1xf32> to vector<8x8xf32>
    %243 = arith.subf %239, %242 : vector<8x8xf32>
    %244 = math.exp %243 : vector<8x8xf32>
    %cst_141 = arith.constant dense<0.000000e+00> : vector<8xf32>
    %245 = vector.multi_reduction <add>, %244, %cst_141 [1] : vector<8x8xf32> to vector<8xf32>
    %246 = vector.shape_cast %245 : vector<8xf32> to vector<8x1xf32>
    %247 = tpu.reciprocal %246 {approx = true} : vector<8x1xf32> -> vector<8x1xf32>
    %248 = vector.broadcast %247 : vector<8x1xf32> to vector<8x8xf32>
    %249 = arith.mulf %244, %248 : vector<8x8xf32>
    %cst_142 = arith.constant dense<0.000000e+00> : vector<8x16xf32>
    %250 = tpu.matmul %249, %233, %cst_142 {dimension_numbers = #tpu.dot_dimension_numbers<[1], [0], [0], [1], [0, 0, 1, 1], [], []>} : vector<8x8xf32>, vector<8x16xf32>, vector<8x16xf32> -> vector<8x16xf32>
    %251 = vector.extract_strided_slice %228 {offsets = [0, 0], sizes = [16, 32], strides = [1, 1]} : vector<32x32xf32> to vector<16x32xf32>
    %cst_143 = arith.constant dense<0.000000e+00> : vector<8x32xf32>
    %252 = tpu.matmul %250, %251, %cst_143 {dimension_numbers = #tpu.dot_dimension_numbers<[1], [0], [0], [1], [0, 0, 1, 1], [], []>} : vector<8x16xf32>, vector<16x32xf32>, vector<8x32xf32> -> vector<8x32xf32>
    %253 = arith.addf %230, %252 : vector<8x32xf32>
    %c0_144 = arith.constant 0 : index
    %c16_145 = arith.constant 16 : index
    %254 = vector.load %arg23[%c0_144, %c16_145] : memref<16x96xf32, #tpu.memory_space<vmem>>, vector<8x16xf32>
    %c0_146 = arith.constant 0 : index
    %c48_147 = arith.constant 48 : index
    %255 = vector.load %arg23[%c0_146, %c48_147] : memref<16x96xf32, #tpu.memory_space<vmem>>, vector<8x16xf32>
    %c0_148 = arith.constant 0 : index
    %c80_149 = arith.constant 80 : index
    %256 = vector.load %arg23[%c0_148, %c80_149] : memref<16x96xf32, #tpu.memory_space<vmem>>, vector<8x16xf32>
    %257 = tpu.transpose %255, [1, 0] : vector<8x16xf32> -> vector<16x8xf32>
    %cst_150 = arith.constant dense<0.000000e+00> : vector<8x8xf32>
    %258 = tpu.matmul %254, %257, %cst_150 {dimension_numbers = #tpu.dot_dimension_numbers<[1], [0], [0], [1], [0, 0, 1, 1], [], []>} : vector<8x16xf32>, vector<16x8xf32>, vector<8x8xf32> -> vector<8x8xf32>
    %cst_151 = arith.constant 2.500000e-01 : f32
    %259 = vector.broadcast %cst_151 : f32 to vector<8x8xf32>
    %260 = arith.mulf %258, %259 : vector<8x8xf32>
    %261 = vector.broadcast %229 : vector<1x8xf32> to vector<8x8xf32>
    %262 = arith.addf %260, %261 : vector<8x8xf32>
    %cst_152 = arith.constant dense<0xFF800000> : vector<8xf32>
    %263 = vector.multi_reduction <maximumf>, %262, %cst_152 [1] : vector<8x8xf32> to vector<8xf32>
    %264 = vector.shape_cast %263 : vector<8xf32> to vector<8x1xf32>
    %265 = vector.broadcast %264 : vector<8x1xf32> to vector<8x8xf32>
    %266 = arith.subf %262, %265 : vector<8x8xf32>
    %267 = math.exp %266 : vector<8x8xf32>
    %cst_153 = arith.constant dense<0.000000e+00> : vector<8xf32>
    %268 = vector.multi_reduction <add>, %267, %cst_153 [1] : vector<8x8xf32> to vector<8xf32>
    %269 = vector.shape_cast %268 : vector<8xf32> to vector<8x1xf32>
    %270 = tpu.reciprocal %269 {approx = true} : vector<8x1xf32> -> vector<8x1xf32>
    %271 = vector.broadcast %270 : vector<8x1xf32> to vector<8x8xf32>
    %272 = arith.mulf %267, %271 : vector<8x8xf32>
    %cst_154 = arith.constant dense<0.000000e+00> : vector<8x16xf32>
    %273 = tpu.matmul %272, %256, %cst_154 {dimension_numbers = #tpu.dot_dimension_numbers<[1], [0], [0], [1], [0, 0, 1, 1], [], []>} : vector<8x8xf32>, vector<8x16xf32>, vector<8x16xf32> -> vector<8x16xf32>
    %274 = vector.extract_strided_slice %228 {offsets = [16, 0], sizes = [16, 32], strides = [1, 1]} : vector<32x32xf32> to vector<16x32xf32>
    %cst_155 = arith.constant dense<0.000000e+00> : vector<8x32xf32>
    %275 = tpu.matmul %273, %274, %cst_155 {dimension_numbers = #tpu.dot_dimension_numbers<[1], [0], [0], [1], [0, 0, 1, 1], [], []>} : vector<8x16xf32>, vector<16x32xf32>, vector<8x32xf32> -> vector<8x32xf32>
    %276 = arith.addf %253, %275 : vector<8x32xf32>
    %c0_156 = arith.constant 0 : index
    %c0_157 = arith.constant 0 : index
    %277 = vector.load %arg24[%c0_156, %c0_157] : memref<16x32xf32, #tpu.memory_space<vmem>>, vector<8x32xf32>
    tpu.vector_store %arg24[%c0_156, %c0_157], %276 {strides = array<i32>} : memref<16x32xf32, #tpu.memory_space<vmem>>, vector<8x32xf32>,
    %c1_158 = arith.constant 1 : index
    %c0_159 = arith.constant 0 : index
    %278 = vector.load %arg2[%c1_158, %c0_159] : memref<2x8xf32, #tpu.memory_space<vmem>>, vector<1x8xf32>
    %cst_160 = arith.constant 0.000000e+00 : f32
    %279 = vector.broadcast %cst_160 : f32 to vector<8x32xf32>
    %c8_161 = arith.constant 8 : index
    %c0_162 = arith.constant 0 : index
    %280 = vector.load %arg23[%c8_161, %c0_162] : memref<16x96xf32, #tpu.memory_space<vmem>>, vector<8x16xf32>
    %c8_163 = arith.constant 8 : index
    %c32_164 = arith.constant 32 : index
    %281 = vector.load %arg23[%c8_163, %c32_164] : memref<16x96xf32, #tpu.memory_space<vmem>>, vector<8x16xf32>
    %c8_165 = arith.constant 8 : index
    %c64_166 = arith.constant 64 : index
    %282 = vector.load %arg23[%c8_165, %c64_166] : memref<16x96xf32, #tpu.memory_space<vmem>>, vector<8x16xf32>
    %283 = tpu.transpose %281, [1, 0] : vector<8x16xf32> -> vector<16x8xf32>
    %cst_167 = arith.constant dense<0.000000e+00> : vector<8x8xf32>
    %284 = tpu.matmul %280, %283, %cst_167 {dimension_numbers = #tpu.dot_dimension_numbers<[1], [0], [0], [1], [0, 0, 1, 1], [], []>} : vector<8x16xf32>, vector<16x8xf32>, vector<8x8xf32> -> vector<8x8xf32>
    %cst_168 = arith.constant 2.500000e-01 : f32
    %285 = vector.broadcast %cst_168 : f32 to vector<8x8xf32>
    %286 = arith.mulf %284, %285 : vector<8x8xf32>
    %287 = vector.broadcast %278 : vector<1x8xf32> to vector<8x8xf32>
    %288 = arith.addf %286, %287 : vector<8x8xf32>
    %cst_169 = arith.constant dense<0xFF800000> : vector<8xf32>
    %289 = vector.multi_reduction <maximumf>, %288, %cst_169 [1] : vector<8x8xf32> to vector<8xf32>
    %290 = vector.shape_cast %289 : vector<8xf32> to vector<8x1xf32>
    %291 = vector.broadcast %290 : vector<8x1xf32> to vector<8x8xf32>
    %292 = arith.subf %288, %291 : vector<8x8xf32>
    %293 = math.exp %292 : vector<8x8xf32>
    %cst_170 = arith.constant dense<0.000000e+00> : vector<8xf32>
    %294 = vector.multi_reduction <add>, %293, %cst_170 [1] : vector<8x8xf32> to vector<8xf32>
    %295 = vector.shape_cast %294 : vector<8xf32> to vector<8x1xf32>
    %296 = tpu.reciprocal %295 {approx = true} : vector<8x1xf32> -> vector<8x1xf32>
    %297 = vector.broadcast %296 : vector<8x1xf32> to vector<8x8xf32>
    %298 = arith.mulf %293, %297 : vector<8x8xf32>
    %cst_171 = arith.constant dense<0.000000e+00> : vector<8x16xf32>
    %299 = tpu.matmul %298, %282, %cst_171 {dimension_numbers = #tpu.dot_dimension_numbers<[1], [0], [0], [1], [0, 0, 1, 1], [], []>} : vector<8x8xf32>, vector<8x16xf32>, vector<8x16xf32> -> vector<8x16xf32>
    %300 = vector.extract_strided_slice %228 {offsets = [0, 0], sizes = [16, 32], strides = [1, 1]} : vector<32x32xf32> to vector<16x32xf32>
    %cst_172 = arith.constant dense<0.000000e+00> : vector<8x32xf32>
    %301 = tpu.matmul %299, %300, %cst_172 {dimension_numbers = #tpu.dot_dimension_numbers<[1], [0], [0], [1], [0, 0, 1, 1], [], []>} : vector<8x16xf32>, vector<16x32xf32>, vector<8x32xf32> -> vector<8x32xf32>
    %302 = arith.addf %279, %301 : vector<8x32xf32>
    %c8_173 = arith.constant 8 : index
    %c16_174 = arith.constant 16 : index
    %303 = vector.load %arg23[%c8_173, %c16_174] : memref<16x96xf32, #tpu.memory_space<vmem>>, vector<8x16xf32>
    %c8_175 = arith.constant 8 : index
    %c48_176 = arith.constant 48 : index
    %304 = vector.load %arg23[%c8_175, %c48_176] : memref<16x96xf32, #tpu.memory_space<vmem>>, vector<8x16xf32>
    %c8_177 = arith.constant 8 : index
    %c80_178 = arith.constant 80 : index
    %305 = vector.load %arg23[%c8_177, %c80_178] : memref<16x96xf32, #tpu.memory_space<vmem>>, vector<8x16xf32>
    %306 = tpu.transpose %304, [1, 0] : vector<8x16xf32> -> vector<16x8xf32>
    %cst_179 = arith.constant dense<0.000000e+00> : vector<8x8xf32>
    %307 = tpu.matmul %303, %306, %cst_179 {dimension_numbers = #tpu.dot_dimension_numbers<[1], [0], [0], [1], [0, 0, 1, 1], [], []>} : vector<8x16xf32>, vector<16x8xf32>, vector<8x8xf32> -> vector<8x8xf32>
    %cst_180 = arith.constant 2.500000e-01 : f32
    %308 = vector.broadcast %cst_180 : f32 to vector<8x8xf32>
    %309 = arith.mulf %307, %308 : vector<8x8xf32>
    %310 = vector.broadcast %278 : vector<1x8xf32> to vector<8x8xf32>
    %311 = arith.addf %309, %310 : vector<8x8xf32>
    %cst_181 = arith.constant dense<0xFF800000> : vector<8xf32>
    %312 = vector.multi_reduction <maximumf>, %311, %cst_181 [1] : vector<8x8xf32> to vector<8xf32>
    %313 = vector.shape_cast %312 : vector<8xf32> to vector<8x1xf32>
    %314 = vector.broadcast %313 : vector<8x1xf32> to vector<8x8xf32>
    %315 = arith.subf %311, %314 : vector<8x8xf32>
    %316 = math.exp %315 : vector<8x8xf32>
    %cst_182 = arith.constant dense<0.000000e+00> : vector<8xf32>
    %317 = vector.multi_reduction <add>, %316, %cst_182 [1] : vector<8x8xf32> to vector<8xf32>
    %318 = vector.shape_cast %317 : vector<8xf32> to vector<8x1xf32>
    %319 = tpu.reciprocal %318 {approx = true} : vector<8x1xf32> -> vector<8x1xf32>
    %320 = vector.broadcast %319 : vector<8x1xf32> to vector<8x8xf32>
    %321 = arith.mulf %316, %320 : vector<8x8xf32>
    %cst_183 = arith.constant dense<0.000000e+00> : vector<8x16xf32>
    %322 = tpu.matmul %321, %305, %cst_183 {dimension_numbers = #tpu.dot_dimension_numbers<[1], [0], [0], [1], [0, 0, 1, 1], [], []>} : vector<8x8xf32>, vector<8x16xf32>, vector<8x16xf32> -> vector<8x16xf32>
    %323 = vector.extract_strided_slice %228 {offsets = [16, 0], sizes = [16, 32], strides = [1, 1]} : vector<32x32xf32> to vector<16x32xf32>
    %cst_184 = arith.constant dense<0.000000e+00> : vector<8x32xf32>
    %324 = tpu.matmul %322, %323, %cst_184 {dimension_numbers = #tpu.dot_dimension_numbers<[1], [0], [0], [1], [0, 0, 1, 1], [], []>} : vector<8x16xf32>, vector<16x32xf32>, vector<8x32xf32> -> vector<8x32xf32>
    %325 = arith.addf %302, %324 : vector<8x32xf32>
    %c8_185 = arith.constant 8 : index
    %c0_186 = arith.constant 0 : index
    %326 = vector.load %arg24[%c8_185, %c0_186] : memref<16x32xf32, #tpu.memory_space<vmem>>, vector<8x32xf32>
    tpu.vector_store %arg24[%c8_185, %c0_186], %325 {strides = array<i32>} : memref<16x32xf32, #tpu.memory_space<vmem>>, vector<8x32xf32>,
    %c0_187 = arith.constant 0 : index
    %c0_188 = arith.constant 0 : index
    %327 = vector.load %arg24[%c0_187, %c0_188] : memref<16x32xf32, #tpu.memory_space<vmem>>, vector<16x32xf32>
    %c1_189 = arith.constant 1 : index
    %c0_190 = arith.constant 0 : index
    %c0_191 = arith.constant 0 : index
    %328 = vector.load %arg8[%c1_189, %c0_190, %c0_191] : memref<2x1x32xf32, #tpu.memory_space<vmem>>, vector<1x1x32xf32>
    %329 = vector.shape_cast %328 : vector<1x1x32xf32> to vector<1x32xf32>
    %330 = vector.broadcast %329 : vector<1x32xf32> to vector<16x32xf32>
    %331 = arith.addf %327, %330 : vector<16x32xf32>
    %332 = arith.addf %331, %218 : vector<16x32xf32>
    %c1_192 = arith.constant 1 : index
    %c0_193 = arith.constant 0 : index
    %c0_194 = arith.constant 0 : index
    %333 = vector.load %arg9[%c1_192, %c0_193, %c0_194] : memref<2x1x32xf32, #tpu.memory_space<vmem>>, vector<1x1x32xf32>
    %334 = vector.shape_cast %333 : vector<1x1x32xf32> to vector<1x32xf32>
    %c1_195 = arith.constant 1 : index
    %c0_196 = arith.constant 0 : index
    %c0_197 = arith.constant 0 : index
    %335 = vector.load %arg10[%c1_195, %c0_196, %c0_197] : memref<2x1x32xf32, #tpu.memory_space<vmem>>, vector<1x1x32xf32>
    %336 = vector.shape_cast %335 : vector<1x1x32xf32> to vector<1x32xf32>
    %cst_198 = arith.constant dense<0.000000e+00> : vector<16xf32>
    %337 = vector.multi_reduction <add>, %332, %cst_198 [1] : vector<16x32xf32> to vector<16xf32>
    %338 = vector.shape_cast %337 : vector<16xf32> to vector<16x1xf32>
    %cst_199 = arith.constant 3.200000e+01 : f32
    %339 = vector.broadcast %cst_199 : f32 to vector<16x1xf32>
    %340 = arith.divf %338, %339 : vector<16x1xf32>
    %341 = vector.broadcast %340 : vector<16x1xf32> to vector<16x32xf32>
    %342 = arith.subf %332, %341 : vector<16x32xf32>
    %343 = arith.mulf %342, %342 : vector<16x32xf32>
    %cst_200 = arith.constant dense<0.000000e+00> : vector<16xf32>
    %344 = vector.multi_reduction <add>, %343, %cst_200 [1] : vector<16x32xf32> to vector<16xf32>
    %345 = vector.shape_cast %344 : vector<16xf32> to vector<16x1xf32>
    %cst_201 = arith.constant 3.200000e+01 : f32
    %346 = vector.broadcast %cst_201 : f32 to vector<16x1xf32>
    %347 = arith.divf %345, %346 : vector<16x1xf32>
    %348 = vector.broadcast %340 : vector<16x1xf32> to vector<16x32xf32>
    %349 = arith.subf %332, %348 : vector<16x32xf32>
    %cst_202 = arith.constant 9.99999996E-13 : f32
    %350 = vector.broadcast %cst_202 : f32 to vector<16x1xf32>
    %351 = arith.addf %347, %350 : vector<16x1xf32>
    %352 = math.rsqrt %351 : vector<16x1xf32>
    %353 = vector.broadcast %352 : vector<16x1xf32> to vector<16x32xf32>
    %354 = arith.mulf %349, %353 : vector<16x32xf32>
    %355 = vector.broadcast %334 : vector<1x32xf32> to vector<16x32xf32>
    %356 = arith.mulf %354, %355 : vector<16x32xf32>
    %357 = vector.broadcast %336 : vector<1x32xf32> to vector<16x32xf32>
    %358 = arith.addf %356, %357 : vector<16x32xf32>
    %c1_203 = arith.constant 1 : index
    %c0_204 = arith.constant 0 : index
    %c0_205 = arith.constant 0 : index
    %359 = vector.load %arg11[%c1_203, %c0_204, %c0_205] : memref<2x32x64xf32, #tpu.memory_space<vmem>>, vector<1x32x64xf32>
    %360 = vector.shape_cast %359 : vector<1x32x64xf32> to vector<32x64xf32>
    %cst_206 = arith.constant dense<0.000000e+00> : vector<16x64xf32>
    %361 = tpu.matmul %358, %360, %cst_206 {dimension_numbers = #tpu.dot_dimension_numbers<[1], [0], [0], [1], [0, 0, 1, 1], [], []>} : vector<16x32xf32>, vector<32x64xf32>, vector<16x64xf32> -> vector<16x64xf32>
    %c1_207 = arith.constant 1 : index
    %c0_208 = arith.constant 0 : index
    %c0_209 = arith.constant 0 : index
    %362 = vector.load %arg12[%c1_207, %c0_208, %c0_209] : memref<2x1x64xf32, #tpu.memory_space<vmem>>, vector<1x1x64xf32>
    %363 = vector.shape_cast %362 : vector<1x1x64xf32> to vector<1x64xf32>
    %364 = vector.broadcast %363 : vector<1x64xf32> to vector<16x64xf32>
    %365 = arith.addf %361, %364 : vector<16x64xf32>
    %cst_210 = arith.constant 5.000000e-01 : f32
    %366 = vector.broadcast %cst_210 : f32 to vector<16x64xf32>
    %367 = arith.mulf %366, %365 : vector<16x64xf32>
    %cst_211 = arith.constant 4.471500e-02 : f32
    %368 = vector.broadcast %cst_211 : f32 to vector<16x64xf32>
    %369 = arith.mulf %368, %365 : vector<16x64xf32>
    %370 = arith.mulf %369, %365 : vector<16x64xf32>
    %371 = arith.mulf %370, %365 : vector<16x64xf32>
    %372 = arith.addf %365, %371 : vector<16x64xf32>
    %cst_212 = arith.constant 0.797884583 : f32
    %373 = vector.broadcast %cst_212 : f32 to vector<16x64xf32>
    %374 = arith.mulf %373, %372 : vector<16x64xf32>
    %375 = math.tanh %374 : vector<16x64xf32>
    %cst_213 = arith.constant 1.000000e+00 : f32
    %376 = vector.broadcast %cst_213 : f32 to vector<16x64xf32>
    %377 = arith.addf %376, %375 : vector<16x64xf32>
    %378 = arith.mulf %367, %377 : vector<16x64xf32>
    %c1_214 = arith.constant 1 : index
    %c0_215 = arith.constant 0 : index
    %c0_216 = arith.constant 0 : index
    %379 = vector.load %arg13[%c1_214, %c0_215, %c0_216] : memref<2x64x32xf32, #tpu.memory_space<vmem>>, vector<1x64x32xf32>
    %380 = vector.shape_cast %379 : vector<1x64x32xf32> to vector<64x32xf32>
    %cst_217 = arith.constant dense<0.000000e+00> : vector<16x32xf32>
    %381 = tpu.matmul %378, %380, %cst_217 {dimension_numbers = #tpu.dot_dimension_numbers<[1], [0], [0], [1], [0, 0, 1, 1], [], []>} : vector<16x64xf32>, vector<64x32xf32>, vector<16x32xf32> -> vector<16x32xf32>
    %c1_218 = arith.constant 1 : index
    %c0_219 = arith.constant 0 : index
    %c0_220 = arith.constant 0 : index
    %382 = vector.load %arg14[%c1_218, %c0_219, %c0_220] : memref<2x1x32xf32, #tpu.memory_space<vmem>>, vector<1x1x32xf32>
    %383 = vector.shape_cast %382 : vector<1x1x32xf32> to vector<1x32xf32>
    %384 = vector.broadcast %383 : vector<1x32xf32> to vector<16x32xf32>
    %385 = arith.addf %381, %384 : vector<16x32xf32>
    %386 = arith.addf %385, %358 : vector<16x32xf32>
    %c1_221 = arith.constant 1 : index
    %c0_222 = arith.constant 0 : index
    %c0_223 = arith.constant 0 : index
    %387 = vector.load %arg15[%c1_221, %c0_222, %c0_223] : memref<2x1x32xf32, #tpu.memory_space<vmem>>, vector<1x1x32xf32>
    %388 = vector.shape_cast %387 : vector<1x1x32xf32> to vector<1x32xf32>
    %c1_224 = arith.constant 1 : index
    %c0_225 = arith.constant 0 : index
    %c0_226 = arith.constant 0 : index
    %389 = vector.load %arg16[%c1_224, %c0_225, %c0_226] : memref<2x1x32xf32, #tpu.memory_space<vmem>>, vector<1x1x32xf32>
    %390 = vector.shape_cast %389 : vector<1x1x32xf32> to vector<1x32xf32>
    %cst_227 = arith.constant dense<0.000000e+00> : vector<16xf32>
    %391 = vector.multi_reduction <add>, %386, %cst_227 [1] : vector<16x32xf32> to vector<16xf32>
    %392 = vector.shape_cast %391 : vector<16xf32> to vector<16x1xf32>
    %cst_228 = arith.constant 3.200000e+01 : f32
    %393 = vector.broadcast %cst_228 : f32 to vector<16x1xf32>
    %394 = arith.divf %392, %393 : vector<16x1xf32>
    %395 = vector.broadcast %394 : vector<16x1xf32> to vector<16x32xf32>
    %396 = arith.subf %386, %395 : vector<16x32xf32>
    %397 = arith.mulf %396, %396 : vector<16x32xf32>
    %cst_229 = arith.constant dense<0.000000e+00> : vector<16xf32>
    %398 = vector.multi_reduction <add>, %397, %cst_229 [1] : vector<16x32xf32> to vector<16xf32>
    %399 = vector.shape_cast %398 : vector<16xf32> to vector<16x1xf32>
    %cst_230 = arith.constant 3.200000e+01 : f32
    %400 = vector.broadcast %cst_230 : f32 to vector<16x1xf32>
    %401 = arith.divf %399, %400 : vector<16x1xf32>
    %402 = vector.broadcast %394 : vector<16x1xf32> to vector<16x32xf32>
    %403 = arith.subf %386, %402 : vector<16x32xf32>
    %cst_231 = arith.constant 9.99999996E-13 : f32
    %404 = vector.broadcast %cst_231 : f32 to vector<16x1xf32>
    %405 = arith.addf %401, %404 : vector<16x1xf32>
    %406 = math.rsqrt %405 : vector<16x1xf32>
    %407 = vector.broadcast %406 : vector<16x1xf32> to vector<16x32xf32>
    %408 = arith.mulf %403, %407 : vector<16x32xf32>
    %409 = vector.broadcast %388 : vector<1x32xf32> to vector<16x32xf32>
    %410 = arith.mulf %408, %409 : vector<16x32xf32>
    %411 = vector.broadcast %390 : vector<1x32xf32> to vector<16x32xf32>
    %412 = arith.addf %410, %411 : vector<16x32xf32>
    %c0_232 = arith.constant 0 : index
    %c0_233 = arith.constant 0 : index
    %413 = vector.load %arg17[%c0_232, %c0_233] : memref<32x8xf32, #tpu.memory_space<vmem>>, vector<32x8xf32>
    %cst_234 = arith.constant dense<0.000000e+00> : vector<16x8xf32>
    %414 = tpu.matmul %412, %413, %cst_234 {dimension_numbers = #tpu.dot_dimension_numbers<[1], [0], [0], [1], [0, 0, 1, 1], [], []>} : vector<16x32xf32>, vector<32x8xf32>, vector<16x8xf32> -> vector<16x8xf32>
    %c0_235 = arith.constant 0 : index
    %c0_236 = arith.constant 0 : index
    %415 = vector.load %arg18[%c0_235, %c0_236] : memref<1x8xf32, #tpu.memory_space<vmem>>, vector<1x8xf32>
    %416 = vector.broadcast %415 : vector<1x8xf32> to vector<16x8xf32>
    %417 = arith.addf %414, %416 : vector<16x8xf32>
    %c0_237 = arith.constant 0 : index
    %c0_238 = arith.constant 0 : index
    %418 = vector.load %arg25[%c0_237, %c0_238] : memref<16x8xf32, #tpu.memory_space<vmem>>, vector<16x8xf32>
    tpu.vector_store %arg25[%c0_237, %c0_238], %417 {strides = array<i32>} : memref<16x8xf32, #tpu.memory_space<vmem>>, vector<16x8xf32>,
    %c0_239 = arith.constant 0 : index
    %c0_240 = arith.constant 0 : index
    %419 = vector.load %arg21[%c0_239, %c0_240] : memref<8x8xf32, #tpu.memory_space<vmem>>, vector<8x8xf32>
    %c0_241 = arith.constant 0 : index
    %c0_242 = arith.constant 0 : index
    %420 = vector.load %arg19[%c0_241, %c0_242] : memref<1x8xf32, #tpu.memory_space<vmem>>, vector<1x8xf32>
    %c0_243 = arith.constant 0 : index
    %c0_244 = arith.constant 0 : index
    %421 = vector.load %arg20[%c0_243, %c0_244] : memref<1x8xf32, #tpu.memory_space<vmem>>, vector<1x8xf32>
    %422 = tpu.iota {dimensions = array<i32: 0>} : vector<8x8xi32>
    %423 = tpu.iota {dimensions = array<i32: 1>} : vector<1x8xi32>
    %424 = tpu.iota {dimensions = array<i32: 1>} : vector<1x8xi32>
    %c0_245 = arith.constant 0 : index
    %c0_246 = arith.constant 0 : index
    %425 = vector.load %arg25[%c0_245, %c0_246] : memref<16x8xf32, #tpu.memory_space<vmem>>, vector<1x8xf32>
    %426 = arith.addf %420, %425 : vector<1x8xf32>
    %c1_247 = arith.constant 1 : index
    %c0_248 = arith.constant 0 : index
    %427 = vector.load %arg25[%c1_247, %c0_248] : memref<16x8xf32, #tpu.memory_space<vmem>>, vector<1x8xf32>
    %428 = tpu.transpose %426, [1, 0] : vector<1x8xf32> -> vector<8x1xf32>
    %429 = vector.broadcast %428 : vector<8x1xf32> to vector<8x8xf32>
    %430 = arith.addf %429, %419 : vector<8x8xf32>
    %431 = vector.broadcast %427 : vector<1x8xf32> to vector<8x8xf32>
    %432 = arith.addf %430, %431 : vector<8x8xf32>
    %cst_249 = arith.constant dense<0xFF800000> : vector<8xf32>
    %433 = vector.multi_reduction <maximumf>, %432, %cst_249 [0] : vector<8x8xf32> to vector<8xf32>
    %434 = vector.shape_cast %433 : vector<8xf32> to vector<1x8xf32>
    %435 = vector.broadcast %434 : vector<1x8xf32> to vector<8x8xf32>
    %436 = arith.cmpf oge, %432, %435 : vector<8x8xf32>
    %c8_i32 = arith.constant 8 : i32
    %437 = vector.broadcast %c8_i32 : i32 to vector<8x8xi32>
    %438 = arith.select %436, %422, %437 : vector<8x8xi1>, vector<8x8xi32>
    %cst_250 = arith.constant dense<2147483647> : vector<8xi32>
    %439 = vector.multi_reduction <minsi>, %438, %cst_250 [0] : vector<8x8xi32> to vector<8xi32>
    %440 = vector.shape_cast %439 : vector<8xi32> to vector<1x8xi32>
    %c0_251 = arith.constant 0 : index
    %c1_252 = arith.constant 1 : index
    %441 = memref.load %arg0[%c0_251, %c1_252] : memref<2x8xi32, #tpu.memory_space<smem>>
    %c0_i32 = arith.constant 0 : i32
    %442 = arith.cmpi sgt, %441, %c0_i32 : i32
    %443 = arith.select %442, %434, %426 : vector<1x8xf32>
    %c2 = arith.constant 2 : index
    %c0_253 = arith.constant 0 : index
    %444 = vector.load %arg25[%c2, %c0_253] : memref<16x8xf32, #tpu.memory_space<vmem>>, vector<1x8xf32>
    %445 = tpu.transpose %443, [1, 0] : vector<1x8xf32> -> vector<8x1xf32>
    %446 = vector.broadcast %445 : vector<8x1xf32> to vector<8x8xf32>
    %447 = arith.addf %446, %419 : vector<8x8xf32>
    %448 = vector.broadcast %444 : vector<1x8xf32> to vector<8x8xf32>
    %449 = arith.addf %447, %448 : vector<8x8xf32>
    %cst_254 = arith.constant dense<0xFF800000> : vector<8xf32>
    %450 = vector.multi_reduction <maximumf>, %449, %cst_254 [0] : vector<8x8xf32> to vector<8xf32>
    %451 = vector.shape_cast %450 : vector<8xf32> to vector<1x8xf32>
    %452 = vector.broadcast %451 : vector<1x8xf32> to vector<8x8xf32>
    %453 = arith.cmpf oge, %449, %452 : vector<8x8xf32>
    %c8_i32_255 = arith.constant 8 : i32
    %454 = vector.broadcast %c8_i32_255 : i32 to vector<8x8xi32>
    %455 = arith.select %453, %422, %454 : vector<8x8xi1>, vector<8x8xi32>
    %cst_256 = arith.constant dense<2147483647> : vector<8xi32>
    %456 = vector.multi_reduction <minsi>, %455, %cst_256 [0] : vector<8x8xi32> to vector<8xi32>
    %457 = vector.shape_cast %456 : vector<8xi32> to vector<1x8xi32>
    %c0_257 = arith.constant 0 : index
    %c2_258 = arith.constant 2 : index
    %458 = memref.load %arg0[%c0_257, %c2_258] : memref<2x8xi32, #tpu.memory_space<smem>>
    %c0_i32_259 = arith.constant 0 : i32
    %459 = arith.cmpi sgt, %458, %c0_i32_259 : i32
    %460 = arith.select %459, %451, %443 : vector<1x8xf32>
    %c3 = arith.constant 3 : index
    %c0_260 = arith.constant 0 : index
    %461 = vector.load %arg25[%c3, %c0_260] : memref<16x8xf32, #tpu.memory_space<vmem>>, vector<1x8xf32>
    %462 = tpu.transpose %460, [1, 0] : vector<1x8xf32> -> vector<8x1xf32>
    %463 = vector.broadcast %462 : vector<8x1xf32> to vector<8x8xf32>
    %464 = arith.addf %463, %419 : vector<8x8xf32>
    %465 = vector.broadcast %461 : vector<1x8xf32> to vector<8x8xf32>
    %466 = arith.addf %464, %465 : vector<8x8xf32>
    %cst_261 = arith.constant dense<0xFF800000> : vector<8xf32>
    %467 = vector.multi_reduction <maximumf>, %466, %cst_261 [0] : vector<8x8xf32> to vector<8xf32>
    %468 = vector.shape_cast %467 : vector<8xf32> to vector<1x8xf32>
    %469 = vector.broadcast %468 : vector<1x8xf32> to vector<8x8xf32>
    %470 = arith.cmpf oge, %466, %469 : vector<8x8xf32>
    %c8_i32_262 = arith.constant 8 : i32
    %471 = vector.broadcast %c8_i32_262 : i32 to vector<8x8xi32>
    %472 = arith.select %470, %422, %471 : vector<8x8xi1>, vector<8x8xi32>
    %cst_263 = arith.constant dense<2147483647> : vector<8xi32>
    %473 = vector.multi_reduction <minsi>, %472, %cst_263 [0] : vector<8x8xi32> to vector<8xi32>
    %474 = vector.shape_cast %473 : vector<8xi32> to vector<1x8xi32>
    %c0_264 = arith.constant 0 : index
    %c3_265 = arith.constant 3 : index
    %475 = memref.load %arg0[%c0_264, %c3_265] : memref<2x8xi32, #tpu.memory_space<smem>>
    %c0_i32_266 = arith.constant 0 : i32
    %476 = arith.cmpi sgt, %475, %c0_i32_266 : i32
    %477 = arith.select %476, %468, %460 : vector<1x8xf32>
    %c4 = arith.constant 4 : index
    %c0_267 = arith.constant 0 : index
    %478 = vector.load %arg25[%c4, %c0_267] : memref<16x8xf32, #tpu.memory_space<vmem>>, vector<1x8xf32>
    %479 = tpu.transpose %477, [1, 0] : vector<1x8xf32> -> vector<8x1xf32>
    %480 = vector.broadcast %479 : vector<8x1xf32> to vector<8x8xf32>
    %481 = arith.addf %480, %419 : vector<8x8xf32>
    %482 = vector.broadcast %478 : vector<1x8xf32> to vector<8x8xf32>
    %483 = arith.addf %481, %482 : vector<8x8xf32>
    %cst_268 = arith.constant dense<0xFF800000> : vector<8xf32>
    %484 = vector.multi_reduction <maximumf>, %483, %cst_268 [0] : vector<8x8xf32> to vector<8xf32>
    %485 = vector.shape_cast %484 : vector<8xf32> to vector<1x8xf32>
    %486 = vector.broadcast %485 : vector<1x8xf32> to vector<8x8xf32>
    %487 = arith.cmpf oge, %483, %486 : vector<8x8xf32>
    %c8_i32_269 = arith.constant 8 : i32
    %488 = vector.broadcast %c8_i32_269 : i32 to vector<8x8xi32>
    %489 = arith.select %487, %422, %488 : vector<8x8xi1>, vector<8x8xi32>
    %cst_270 = arith.constant dense<2147483647> : vector<8xi32>
    %490 = vector.multi_reduction <minsi>, %489, %cst_270 [0] : vector<8x8xi32> to vector<8xi32>
    %491 = vector.shape_cast %490 : vector<8xi32> to vector<1x8xi32>
    %c0_271 = arith.constant 0 : index
    %c4_272 = arith.constant 4 : index
    %492 = memref.load %arg0[%c0_271, %c4_272] : memref<2x8xi32, #tpu.memory_space<smem>>
    %c0_i32_273 = arith.constant 0 : i32
    %493 = arith.cmpi sgt, %492, %c0_i32_273 : i32
    %494 = arith.select %493, %485, %477 : vector<1x8xf32>
    %c5 = arith.constant 5 : index
    %c0_274 = arith.constant 0 : index
    %495 = vector.load %arg25[%c5, %c0_274] : memref<16x8xf32, #tpu.memory_space<vmem>>, vector<1x8xf32>
    %496 = tpu.transpose %494, [1, 0] : vector<1x8xf32> -> vector<8x1xf32>
    %497 = vector.broadcast %496 : vector<8x1xf32> to vector<8x8xf32>
    %498 = arith.addf %497, %419 : vector<8x8xf32>
    %499 = vector.broadcast %495 : vector<1x8xf32> to vector<8x8xf32>
    %500 = arith.addf %498, %499 : vector<8x8xf32>
    %cst_275 = arith.constant dense<0xFF800000> : vector<8xf32>
    %501 = vector.multi_reduction <maximumf>, %500, %cst_275 [0] : vector<8x8xf32> to vector<8xf32>
    %502 = vector.shape_cast %501 : vector<8xf32> to vector<1x8xf32>
    %503 = vector.broadcast %502 : vector<1x8xf32> to vector<8x8xf32>
    %504 = arith.cmpf oge, %500, %503 : vector<8x8xf32>
    %c8_i32_276 = arith.constant 8 : i32
    %505 = vector.broadcast %c8_i32_276 : i32 to vector<8x8xi32>
    %506 = arith.select %504, %422, %505 : vector<8x8xi1>, vector<8x8xi32>
    %cst_277 = arith.constant dense<2147483647> : vector<8xi32>
    %507 = vector.multi_reduction <minsi>, %506, %cst_277 [0] : vector<8x8xi32> to vector<8xi32>
    %508 = vector.shape_cast %507 : vector<8xi32> to vector<1x8xi32>
    %c0_278 = arith.constant 0 : index
    %c5_279 = arith.constant 5 : index
    %509 = memref.load %arg0[%c0_278, %c5_279] : memref<2x8xi32, #tpu.memory_space<smem>>
    %c0_i32_280 = arith.constant 0 : i32
    %510 = arith.cmpi sgt, %509, %c0_i32_280 : i32
    %511 = arith.select %510, %502, %494 : vector<1x8xf32>
    %c6 = arith.constant 6 : index
    %c0_281 = arith.constant 0 : index
    %512 = vector.load %arg25[%c6, %c0_281] : memref<16x8xf32, #tpu.memory_space<vmem>>, vector<1x8xf32>
    %513 = tpu.transpose %511, [1, 0] : vector<1x8xf32> -> vector<8x1xf32>
    %514 = vector.broadcast %513 : vector<8x1xf32> to vector<8x8xf32>
    %515 = arith.addf %514, %419 : vector<8x8xf32>
    %516 = vector.broadcast %512 : vector<1x8xf32> to vector<8x8xf32>
    %517 = arith.addf %515, %516 : vector<8x8xf32>
    %cst_282 = arith.constant dense<0xFF800000> : vector<8xf32>
    %518 = vector.multi_reduction <maximumf>, %517, %cst_282 [0] : vector<8x8xf32> to vector<8xf32>
    %519 = vector.shape_cast %518 : vector<8xf32> to vector<1x8xf32>
    %520 = vector.broadcast %519 : vector<1x8xf32> to vector<8x8xf32>
    %521 = arith.cmpf oge, %517, %520 : vector<8x8xf32>
    %c8_i32_283 = arith.constant 8 : i32
    %522 = vector.broadcast %c8_i32_283 : i32 to vector<8x8xi32>
    %523 = arith.select %521, %422, %522 : vector<8x8xi1>, vector<8x8xi32>
    %cst_284 = arith.constant dense<2147483647> : vector<8xi32>
    %524 = vector.multi_reduction <minsi>, %523, %cst_284 [0] : vector<8x8xi32> to vector<8xi32>
    %525 = vector.shape_cast %524 : vector<8xi32> to vector<1x8xi32>
    %c0_285 = arith.constant 0 : index
    %c6_286 = arith.constant 6 : index
    %526 = memref.load %arg0[%c0_285, %c6_286] : memref<2x8xi32, #tpu.memory_space<smem>>
    %c0_i32_287 = arith.constant 0 : i32
    %527 = arith.cmpi sgt, %526, %c0_i32_287 : i32
    %528 = arith.select %527, %519, %511 : vector<1x8xf32>
    %c7 = arith.constant 7 : index
    %c0_288 = arith.constant 0 : index
    %529 = vector.load %arg25[%c7, %c0_288] : memref<16x8xf32, #tpu.memory_space<vmem>>, vector<1x8xf32>
    %530 = tpu.transpose %528, [1, 0] : vector<1x8xf32> -> vector<8x1xf32>
    %531 = vector.broadcast %530 : vector<8x1xf32> to vector<8x8xf32>
    %532 = arith.addf %531, %419 : vector<8x8xf32>
    %533 = vector.broadcast %529 : vector<1x8xf32> to vector<8x8xf32>
    %534 = arith.addf %532, %533 : vector<8x8xf32>
    %cst_289 = arith.constant dense<0xFF800000> : vector<8xf32>
    %535 = vector.multi_reduction <maximumf>, %534, %cst_289 [0] : vector<8x8xf32> to vector<8xf32>
    %536 = vector.shape_cast %535 : vector<8xf32> to vector<1x8xf32>
    %537 = vector.broadcast %536 : vector<1x8xf32> to vector<8x8xf32>
    %538 = arith.cmpf oge, %534, %537 : vector<8x8xf32>
    %c8_i32_290 = arith.constant 8 : i32
    %539 = vector.broadcast %c8_i32_290 : i32 to vector<8x8xi32>
    %540 = arith.select %538, %422, %539 : vector<8x8xi1>, vector<8x8xi32>
    %cst_291 = arith.constant dense<2147483647> : vector<8xi32>
    %541 = vector.multi_reduction <minsi>, %540, %cst_291 [0] : vector<8x8xi32> to vector<8xi32>
    %542 = vector.shape_cast %541 : vector<8xi32> to vector<1x8xi32>
    %c0_292 = arith.constant 0 : index
    %c7_293 = arith.constant 7 : index
    %543 = memref.load %arg0[%c0_292, %c7_293] : memref<2x8xi32, #tpu.memory_space<smem>>
    %c0_i32_294 = arith.constant 0 : i32
    %544 = arith.cmpi sgt, %543, %c0_i32_294 : i32
    %545 = arith.select %544, %536, %528 : vector<1x8xf32>
    %546 = arith.addf %545, %421 : vector<1x8xf32>
    %cst_295 = arith.constant dense<0xFF800000> : vector<1xf32>
    %547 = vector.multi_reduction <maximumf>, %546, %cst_295 [1] : vector<1x8xf32> to vector<1xf32>
    %548 = vector.shape_cast %547 : vector<1xf32> to vector<1x1xf32>
    %549 = vector.broadcast %548 : vector<1x1xf32> to vector<1x8xf32>
    %550 = arith.cmpf oge, %546, %549 : vector<1x8xf32>
    %c8_i32_296 = arith.constant 8 : i32
    %551 = vector.broadcast %c8_i32_296 : i32 to vector<1x8xi32>
    %552 = arith.select %550, %423, %551 : vector<1x8xi1>, vector<1x8xi32>
    %cst_297 = arith.constant dense<2147483647> : vector<1xi32>
    %553 = vector.multi_reduction <minsi>, %552, %cst_297 [1] : vector<1x8xi32> to vector<1xi32>
    %554 = vector.shape_cast %553 : vector<1xi32> to vector<1x1xi32>
    %c0_298 = arith.constant 0 : index
    %c0_299 = arith.constant 0 : index
    %555 = memref.load %arg0[%c0_298, %c0_299] : memref<2x8xi32, #tpu.memory_space<smem>>
    %c0_300 = arith.constant 0 : index
    %c1_301 = arith.constant 1 : index
    %556 = memref.load %arg0[%c0_300, %c1_301] : memref<2x8xi32, #tpu.memory_space<smem>>
    %557 = arith.addi %555, %556 : i32
    %c0_302 = arith.constant 0 : index
    %c2_303 = arith.constant 2 : index
    %558 = memref.load %arg0[%c0_302, %c2_303] : memref<2x8xi32, #tpu.memory_space<smem>>
    %559 = arith.addi %557, %558 : i32
    %c0_304 = arith.constant 0 : index
    %c3_305 = arith.constant 3 : index
    %560 = memref.load %arg0[%c0_304, %c3_305] : memref<2x8xi32, #tpu.memory_space<smem>>
    %561 = arith.addi %559, %560 : i32
    %c0_306 = arith.constant 0 : index
    %c4_307 = arith.constant 4 : index
    %562 = memref.load %arg0[%c0_306, %c4_307] : memref<2x8xi32, #tpu.memory_space<smem>>
    %563 = arith.addi %561, %562 : i32
    %c0_308 = arith.constant 0 : index
    %c5_309 = arith.constant 5 : index
    %564 = memref.load %arg0[%c0_308, %c5_309] : memref<2x8xi32, #tpu.memory_space<smem>>
    %565 = arith.addi %563, %564 : i32
    %c0_310 = arith.constant 0 : index
    %c6_311 = arith.constant 6 : index
    %566 = memref.load %arg0[%c0_310, %c6_311] : memref<2x8xi32, #tpu.memory_space<smem>>
    %567 = arith.addi %565, %566 : i32
    %c0_312 = arith.constant 0 : index
    %c7_313 = arith.constant 7 : index
    %568 = memref.load %arg0[%c0_312, %c7_313] : memref<2x8xi32, #tpu.memory_space<smem>>
    %569 = arith.addi %567, %568 : i32
    %c1_i32 = arith.constant 1 : i32
    %570 = arith.subi %569, %c1_i32 : i32
    %c0_i32_314 = arith.constant 0 : i32
    %571 = vector.broadcast %c0_i32_314 : i32 to vector<1x8xi32>
    %c7_i32 = arith.constant 7 : i32
    %572 = arith.cmpi sge, %570, %c7_i32 : i32
    %c7_i32_315 = arith.constant 7 : i32
    %573 = vector.broadcast %c7_i32_315 : i32 to vector<1x8xi32>
    %574 = arith.cmpi eq, %424, %573 : vector<1x8xi32>
    %575 = vector.broadcast %572 : i1 to vector<1x8xi1>
    %576 = arith.andi %574, %575 : vector<1x8xi1>
    %577 = vector.shape_cast %554 : vector<1x1xi32> to vector<1x1xi32>
    %578 = vector.broadcast %577 : vector<1x1xi32> to vector<1x8xi32>
    %579 = arith.select %576, %578, %571 : vector<1x8xi1>, vector<1x8xi32>
    %580 = vector.broadcast %554 : vector<1x1xi32> to vector<1x8xi32>
    %581 = arith.cmpi eq, %423, %580 : vector<1x8xi32>
    %c0_i32_316 = arith.constant 0 : i32
    %582 = vector.broadcast %c0_i32_316 : i32 to vector<1x8xi32>
    %583 = arith.select %581, %542, %582 : vector<1x8xi1>, vector<1x8xi32>
    %cst_317 = arith.constant dense<0> : vector<1xi32>
    %584 = vector.multi_reduction <add>, %583, %cst_317 [1] : vector<1x8xi32> to vector<1xi32>
    %585 = vector.shape_cast %584 : vector<1xi32> to vector<1x1xi32>
    %586 = arith.select %572, %585, %554 : vector<1x1xi32>
    %c6_i32 = arith.constant 6 : i32
    %587 = arith.cmpi sge, %570, %c6_i32 : i32
    %c6_i32_318 = arith.constant 6 : i32
    %588 = vector.broadcast %c6_i32_318 : i32 to vector<1x8xi32>
    %589 = arith.cmpi eq, %424, %588 : vector<1x8xi32>
    %590 = vector.broadcast %587 : i1 to vector<1x8xi1>
    %591 = arith.andi %589, %590 : vector<1x8xi1>
    %592 = vector.shape_cast %586 : vector<1x1xi32> to vector<1x1xi32>
    %593 = vector.broadcast %592 : vector<1x1xi32> to vector<1x8xi32>
    %594 = arith.select %591, %593, %579 : vector<1x8xi1>, vector<1x8xi32>
    %595 = vector.broadcast %586 : vector<1x1xi32> to vector<1x8xi32>
    %596 = arith.cmpi eq, %423, %595 : vector<1x8xi32>
    %c0_i32_319 = arith.constant 0 : i32
    %597 = vector.broadcast %c0_i32_319 : i32 to vector<1x8xi32>
    %598 = arith.select %596, %525, %597 : vector<1x8xi1>, vector<1x8xi32>
    %cst_320 = arith.constant dense<0> : vector<1xi32>
    %599 = vector.multi_reduction <add>, %598, %cst_320 [1] : vector<1x8xi32> to vector<1xi32>
    %600 = vector.shape_cast %599 : vector<1xi32> to vector<1x1xi32>
    %601 = arith.select %587, %600, %586 : vector<1x1xi32>
    %c5_i32 = arith.constant 5 : i32
    %602 = arith.cmpi sge, %570, %c5_i32 : i32
    %c5_i32_321 = arith.constant 5 : i32
    %603 = vector.broadcast %c5_i32_321 : i32 to vector<1x8xi32>
    %604 = arith.cmpi eq, %424, %603 : vector<1x8xi32>
    %605 = vector.broadcast %602 : i1 to vector<1x8xi1>
    %606 = arith.andi %604, %605 : vector<1x8xi1>
    %607 = vector.shape_cast %601 : vector<1x1xi32> to vector<1x1xi32>
    %608 = vector.broadcast %607 : vector<1x1xi32> to vector<1x8xi32>
    %609 = arith.select %606, %608, %594 : vector<1x8xi1>, vector<1x8xi32>
    %610 = vector.broadcast %601 : vector<1x1xi32> to vector<1x8xi32>
    %611 = arith.cmpi eq, %423, %610 : vector<1x8xi32>
    %c0_i32_322 = arith.constant 0 : i32
    %612 = vector.broadcast %c0_i32_322 : i32 to vector<1x8xi32>
    %613 = arith.select %611, %508, %612 : vector<1x8xi1>, vector<1x8xi32>
    %cst_323 = arith.constant dense<0> : vector<1xi32>
    %614 = vector.multi_reduction <add>, %613, %cst_323 [1] : vector<1x8xi32> to vector<1xi32>
    %615 = vector.shape_cast %614 : vector<1xi32> to vector<1x1xi32>
    %616 = arith.select %602, %615, %601 : vector<1x1xi32>
    %c4_i32 = arith.constant 4 : i32
    %617 = arith.cmpi sge, %570, %c4_i32 : i32
    %c4_i32_324 = arith.constant 4 : i32
    %618 = vector.broadcast %c4_i32_324 : i32 to vector<1x8xi32>
    %619 = arith.cmpi eq, %424, %618 : vector<1x8xi32>
    %620 = vector.broadcast %617 : i1 to vector<1x8xi1>
    %621 = arith.andi %619, %620 : vector<1x8xi1>
    %622 = vector.shape_cast %616 : vector<1x1xi32> to vector<1x1xi32>
    %623 = vector.broadcast %622 : vector<1x1xi32> to vector<1x8xi32>
    %624 = arith.select %621, %623, %609 : vector<1x8xi1>, vector<1x8xi32>
    %625 = vector.broadcast %616 : vector<1x1xi32> to vector<1x8xi32>
    %626 = arith.cmpi eq, %423, %625 : vector<1x8xi32>
    %c0_i32_325 = arith.constant 0 : i32
    %627 = vector.broadcast %c0_i32_325 : i32 to vector<1x8xi32>
    %628 = arith.select %626, %491, %627 : vector<1x8xi1>, vector<1x8xi32>
    %cst_326 = arith.constant dense<0> : vector<1xi32>
    %629 = vector.multi_reduction <add>, %628, %cst_326 [1] : vector<1x8xi32> to vector<1xi32>
    %630 = vector.shape_cast %629 : vector<1xi32> to vector<1x1xi32>
    %631 = arith.select %617, %630, %616 : vector<1x1xi32>
    %c3_i32 = arith.constant 3 : i32
    %632 = arith.cmpi sge, %570, %c3_i32 : i32
    %c3_i32_327 = arith.constant 3 : i32
    %633 = vector.broadcast %c3_i32_327 : i32 to vector<1x8xi32>
    %634 = arith.cmpi eq, %424, %633 : vector<1x8xi32>
    %635 = vector.broadcast %632 : i1 to vector<1x8xi1>
    %636 = arith.andi %634, %635 : vector<1x8xi1>
    %637 = vector.shape_cast %631 : vector<1x1xi32> to vector<1x1xi32>
    %638 = vector.broadcast %637 : vector<1x1xi32> to vector<1x8xi32>
    %639 = arith.select %636, %638, %624 : vector<1x8xi1>, vector<1x8xi32>
    %640 = vector.broadcast %631 : vector<1x1xi32> to vector<1x8xi32>
    %641 = arith.cmpi eq, %423, %640 : vector<1x8xi32>
    %c0_i32_328 = arith.constant 0 : i32
    %642 = vector.broadcast %c0_i32_328 : i32 to vector<1x8xi32>
    %643 = arith.select %641, %474, %642 : vector<1x8xi1>, vector<1x8xi32>
    %cst_329 = arith.constant dense<0> : vector<1xi32>
    %644 = vector.multi_reduction <add>, %643, %cst_329 [1] : vector<1x8xi32> to vector<1xi32>
    %645 = vector.shape_cast %644 : vector<1xi32> to vector<1x1xi32>
    %646 = arith.select %632, %645, %631 : vector<1x1xi32>
    %c2_i32 = arith.constant 2 : i32
    %647 = arith.cmpi sge, %570, %c2_i32 : i32
    %c2_i32_330 = arith.constant 2 : i32
    %648 = vector.broadcast %c2_i32_330 : i32 to vector<1x8xi32>
    %649 = arith.cmpi eq, %424, %648 : vector<1x8xi32>
    %650 = vector.broadcast %647 : i1 to vector<1x8xi1>
    %651 = arith.andi %649, %650 : vector<1x8xi1>
    %652 = vector.shape_cast %646 : vector<1x1xi32> to vector<1x1xi32>
    %653 = vector.broadcast %652 : vector<1x1xi32> to vector<1x8xi32>
    %654 = arith.select %651, %653, %639 : vector<1x8xi1>, vector<1x8xi32>
    %655 = vector.broadcast %646 : vector<1x1xi32> to vector<1x8xi32>
    %656 = arith.cmpi eq, %423, %655 : vector<1x8xi32>
    %c0_i32_331 = arith.constant 0 : i32
    %657 = vector.broadcast %c0_i32_331 : i32 to vector<1x8xi32>
    %658 = arith.select %656, %457, %657 : vector<1x8xi1>, vector<1x8xi32>
    %cst_332 = arith.constant dense<0> : vector<1xi32>
    %659 = vector.multi_reduction <add>, %658, %cst_332 [1] : vector<1x8xi32> to vector<1xi32>
    %660 = vector.shape_cast %659 : vector<1xi32> to vector<1x1xi32>
    %661 = arith.select %647, %660, %646 : vector<1x1xi32>
    %c1_i32_333 = arith.constant 1 : i32
    %662 = arith.cmpi sge, %570, %c1_i32_333 : i32
    %c1_i32_334 = arith.constant 1 : i32
    %663 = vector.broadcast %c1_i32_334 : i32 to vector<1x8xi32>
    %664 = arith.cmpi eq, %424, %663 : vector<1x8xi32>
    %665 = vector.broadcast %662 : i1 to vector<1x8xi1>
    %666 = arith.andi %664, %665 : vector<1x8xi1>
    %667 = vector.shape_cast %661 : vector<1x1xi32> to vector<1x1xi32>
    %668 = vector.broadcast %667 : vector<1x1xi32> to vector<1x8xi32>
    %669 = arith.select %666, %668, %654 : vector<1x8xi1>, vector<1x8xi32>
    %670 = vector.broadcast %661 : vector<1x1xi32> to vector<1x8xi32>
    %671 = arith.cmpi eq, %423, %670 : vector<1x8xi32>
    %c0_i32_335 = arith.constant 0 : i32
    %672 = vector.broadcast %c0_i32_335 : i32 to vector<1x8xi32>
    %673 = arith.select %671, %440, %672 : vector<1x8xi1>, vector<1x8xi32>
    %cst_336 = arith.constant dense<0> : vector<1xi32>
    %674 = vector.multi_reduction <add>, %673, %cst_336 [1] : vector<1x8xi32> to vector<1xi32>
    %675 = vector.shape_cast %674 : vector<1xi32> to vector<1x1xi32>
    %676 = arith.select %662, %675, %661 : vector<1x1xi32>
    %c0_i32_337 = arith.constant 0 : i32
    %677 = vector.broadcast %c0_i32_337 : i32 to vector<1x8xi32>
    %678 = arith.cmpi eq, %424, %677 : vector<1x8xi32>
    %679 = vector.shape_cast %676 : vector<1x1xi32> to vector<1x1xi32>
    %680 = vector.broadcast %679 : vector<1x1xi32> to vector<1x8xi32>
    %681 = arith.select %678, %680, %669 : vector<1x8xi1>, vector<1x8xi32>
    %c0_338 = arith.constant 0 : index
    %c0_339 = arith.constant 0 : index
    %682 = vector.load %arg22[%c0_338, %c0_339] : memref<2x8xi32, #tpu.memory_space<vmem>>, vector<1x8xi32>
    tpu.vector_store %arg22[%c0_338, %c0_339], %681 {strides = array<i32>} : memref<2x8xi32, #tpu.memory_space<vmem>>, vector<1x8xi32>,
    %c8_340 = arith.constant 8 : index
    %c0_341 = arith.constant 0 : index
    %683 = vector.load %arg25[%c8_340, %c0_341] : memref<16x8xf32, #tpu.memory_space<vmem>>, vector<1x8xf32>
    %684 = arith.addf %420, %683 : vector<1x8xf32>
    %c9 = arith.constant 9 : index
    %c0_342 = arith.constant 0 : index
    %685 = vector.load %arg25[%c9, %c0_342] : memref<16x8xf32, #tpu.memory_space<vmem>>, vector<1x8xf32>
    %686 = tpu.transpose %684, [1, 0] : vector<1x8xf32> -> vector<8x1xf32>
    %687 = vector.broadcast %686 : vector<8x1xf32> to vector<8x8xf32>
    %688 = arith.addf %687, %419 : vector<8x8xf32>
    %689 = vector.broadcast %685 : vector<1x8xf32> to vector<8x8xf32>
    %690 = arith.addf %688, %689 : vector<8x8xf32>
    %cst_343 = arith.constant dense<0xFF800000> : vector<8xf32>
    %691 = vector.multi_reduction <maximumf>, %690, %cst_343 [0] : vector<8x8xf32> to vector<8xf32>
    %692 = vector.shape_cast %691 : vector<8xf32> to vector<1x8xf32>
    %693 = vector.broadcast %692 : vector<1x8xf32> to vector<8x8xf32>
    %694 = arith.cmpf oge, %690, %693 : vector<8x8xf32>
    %c8_i32_344 = arith.constant 8 : i32
    %695 = vector.broadcast %c8_i32_344 : i32 to vector<8x8xi32>
    %696 = arith.select %694, %422, %695 : vector<8x8xi1>, vector<8x8xi32>
    %cst_345 = arith.constant dense<2147483647> : vector<8xi32>
    %697 = vector.multi_reduction <minsi>, %696, %cst_345 [0] : vector<8x8xi32> to vector<8xi32>
    %698 = vector.shape_cast %697 : vector<8xi32> to vector<1x8xi32>
    %c1_346 = arith.constant 1 : index
    %c1_347 = arith.constant 1 : index
    %699 = memref.load %arg0[%c1_346, %c1_347] : memref<2x8xi32, #tpu.memory_space<smem>>
    %c0_i32_348 = arith.constant 0 : i32
    %700 = arith.cmpi sgt, %699, %c0_i32_348 : i32
    %701 = arith.select %700, %692, %684 : vector<1x8xf32>
    %c10 = arith.constant 10 : index
    %c0_349 = arith.constant 0 : index
    %702 = vector.load %arg25[%c10, %c0_349] : memref<16x8xf32, #tpu.memory_space<vmem>>, vector<1x8xf32>
    %703 = tpu.transpose %701, [1, 0] : vector<1x8xf32> -> vector<8x1xf32>
    %704 = vector.broadcast %703 : vector<8x1xf32> to vector<8x8xf32>
    %705 = arith.addf %704, %419 : vector<8x8xf32>
    %706 = vector.broadcast %702 : vector<1x8xf32> to vector<8x8xf32>
    %707 = arith.addf %705, %706 : vector<8x8xf32>
    %cst_350 = arith.constant dense<0xFF800000> : vector<8xf32>
    %708 = vector.multi_reduction <maximumf>, %707, %cst_350 [0] : vector<8x8xf32> to vector<8xf32>
    %709 = vector.shape_cast %708 : vector<8xf32> to vector<1x8xf32>
    %710 = vector.broadcast %709 : vector<1x8xf32> to vector<8x8xf32>
    %711 = arith.cmpf oge, %707, %710 : vector<8x8xf32>
    %c8_i32_351 = arith.constant 8 : i32
    %712 = vector.broadcast %c8_i32_351 : i32 to vector<8x8xi32>
    %713 = arith.select %711, %422, %712 : vector<8x8xi1>, vector<8x8xi32>
    %cst_352 = arith.constant dense<2147483647> : vector<8xi32>
    %714 = vector.multi_reduction <minsi>, %713, %cst_352 [0] : vector<8x8xi32> to vector<8xi32>
    %715 = vector.shape_cast %714 : vector<8xi32> to vector<1x8xi32>
    %c1_353 = arith.constant 1 : index
    %c2_354 = arith.constant 2 : index
    %716 = memref.load %arg0[%c1_353, %c2_354] : memref<2x8xi32, #tpu.memory_space<smem>>
    %c0_i32_355 = arith.constant 0 : i32
    %717 = arith.cmpi sgt, %716, %c0_i32_355 : i32
    %718 = arith.select %717, %709, %701 : vector<1x8xf32>
    %c11 = arith.constant 11 : index
    %c0_356 = arith.constant 0 : index
    %719 = vector.load %arg25[%c11, %c0_356] : memref<16x8xf32, #tpu.memory_space<vmem>>, vector<1x8xf32>
    %720 = tpu.transpose %718, [1, 0] : vector<1x8xf32> -> vector<8x1xf32>
    %721 = vector.broadcast %720 : vector<8x1xf32> to vector<8x8xf32>
    %722 = arith.addf %721, %419 : vector<8x8xf32>
    %723 = vector.broadcast %719 : vector<1x8xf32> to vector<8x8xf32>
    %724 = arith.addf %722, %723 : vector<8x8xf32>
    %cst_357 = arith.constant dense<0xFF800000> : vector<8xf32>
    %725 = vector.multi_reduction <maximumf>, %724, %cst_357 [0] : vector<8x8xf32> to vector<8xf32>
    %726 = vector.shape_cast %725 : vector<8xf32> to vector<1x8xf32>
    %727 = vector.broadcast %726 : vector<1x8xf32> to vector<8x8xf32>
    %728 = arith.cmpf oge, %724, %727 : vector<8x8xf32>
    %c8_i32_358 = arith.constant 8 : i32
    %729 = vector.broadcast %c8_i32_358 : i32 to vector<8x8xi32>
    %730 = arith.select %728, %422, %729 : vector<8x8xi1>, vector<8x8xi32>
    %cst_359 = arith.constant dense<2147483647> : vector<8xi32>
    %731 = vector.multi_reduction <minsi>, %730, %cst_359 [0] : vector<8x8xi32> to vector<8xi32>
    %732 = vector.shape_cast %731 : vector<8xi32> to vector<1x8xi32>
    %c1_360 = arith.constant 1 : index
    %c3_361 = arith.constant 3 : index
    %733 = memref.load %arg0[%c1_360, %c3_361] : memref<2x8xi32, #tpu.memory_space<smem>>
    %c0_i32_362 = arith.constant 0 : i32
    %734 = arith.cmpi sgt, %733, %c0_i32_362 : i32
    %735 = arith.select %734, %726, %718 : vector<1x8xf32>
    %c12 = arith.constant 12 : index
    %c0_363 = arith.constant 0 : index
    %736 = vector.load %arg25[%c12, %c0_363] : memref<16x8xf32, #tpu.memory_space<vmem>>, vector<1x8xf32>
    %737 = tpu.transpose %735, [1, 0] : vector<1x8xf32> -> vector<8x1xf32>
    %738 = vector.broadcast %737 : vector<8x1xf32> to vector<8x8xf32>
    %739 = arith.addf %738, %419 : vector<8x8xf32>
    %740 = vector.broadcast %736 : vector<1x8xf32> to vector<8x8xf32>
    %741 = arith.addf %739, %740 : vector<8x8xf32>
    %cst_364 = arith.constant dense<0xFF800000> : vector<8xf32>
    %742 = vector.multi_reduction <maximumf>, %741, %cst_364 [0] : vector<8x8xf32> to vector<8xf32>
    %743 = vector.shape_cast %742 : vector<8xf32> to vector<1x8xf32>
    %744 = vector.broadcast %743 : vector<1x8xf32> to vector<8x8xf32>
    %745 = arith.cmpf oge, %741, %744 : vector<8x8xf32>
    %c8_i32_365 = arith.constant 8 : i32
    %746 = vector.broadcast %c8_i32_365 : i32 to vector<8x8xi32>
    %747 = arith.select %745, %422, %746 : vector<8x8xi1>, vector<8x8xi32>
    %cst_366 = arith.constant dense<2147483647> : vector<8xi32>
    %748 = vector.multi_reduction <minsi>, %747, %cst_366 [0] : vector<8x8xi32> to vector<8xi32>
    %749 = vector.shape_cast %748 : vector<8xi32> to vector<1x8xi32>
    %c1_367 = arith.constant 1 : index
    %c4_368 = arith.constant 4 : index
    %750 = memref.load %arg0[%c1_367, %c4_368] : memref<2x8xi32, #tpu.memory_space<smem>>
    %c0_i32_369 = arith.constant 0 : i32
    %751 = arith.cmpi sgt, %750, %c0_i32_369 : i32
    %752 = arith.select %751, %743, %735 : vector<1x8xf32>
    %c13 = arith.constant 13 : index
    %c0_370 = arith.constant 0 : index
    %753 = vector.load %arg25[%c13, %c0_370] : memref<16x8xf32, #tpu.memory_space<vmem>>, vector<1x8xf32>
    %754 = tpu.transpose %752, [1, 0] : vector<1x8xf32> -> vector<8x1xf32>
    %755 = vector.broadcast %754 : vector<8x1xf32> to vector<8x8xf32>
    %756 = arith.addf %755, %419 : vector<8x8xf32>
    %757 = vector.broadcast %753 : vector<1x8xf32> to vector<8x8xf32>
    %758 = arith.addf %756, %757 : vector<8x8xf32>
    %cst_371 = arith.constant dense<0xFF800000> : vector<8xf32>
    %759 = vector.multi_reduction <maximumf>, %758, %cst_371 [0] : vector<8x8xf32> to vector<8xf32>
    %760 = vector.shape_cast %759 : vector<8xf32> to vector<1x8xf32>
    %761 = vector.broadcast %760 : vector<1x8xf32> to vector<8x8xf32>
    %762 = arith.cmpf oge, %758, %761 : vector<8x8xf32>
    %c8_i32_372 = arith.constant 8 : i32
    %763 = vector.broadcast %c8_i32_372 : i32 to vector<8x8xi32>
    %764 = arith.select %762, %422, %763 : vector<8x8xi1>, vector<8x8xi32>
    %cst_373 = arith.constant dense<2147483647> : vector<8xi32>
    %765 = vector.multi_reduction <minsi>, %764, %cst_373 [0] : vector<8x8xi32> to vector<8xi32>
    %766 = vector.shape_cast %765 : vector<8xi32> to vector<1x8xi32>
    %c1_374 = arith.constant 1 : index
    %c5_375 = arith.constant 5 : index
    %767 = memref.load %arg0[%c1_374, %c5_375] : memref<2x8xi32, #tpu.memory_space<smem>>
    %c0_i32_376 = arith.constant 0 : i32
    %768 = arith.cmpi sgt, %767, %c0_i32_376 : i32
    %769 = arith.select %768, %760, %752 : vector<1x8xf32>
    %c14 = arith.constant 14 : index
    %c0_377 = arith.constant 0 : index
    %770 = vector.load %arg25[%c14, %c0_377] : memref<16x8xf32, #tpu.memory_space<vmem>>, vector<1x8xf32>
    %771 = tpu.transpose %769, [1, 0] : vector<1x8xf32> -> vector<8x1xf32>
    %772 = vector.broadcast %771 : vector<8x1xf32> to vector<8x8xf32>
    %773 = arith.addf %772, %419 : vector<8x8xf32>
    %774 = vector.broadcast %770 : vector<1x8xf32> to vector<8x8xf32>
    %775 = arith.addf %773, %774 : vector<8x8xf32>
    %cst_378 = arith.constant dense<0xFF800000> : vector<8xf32>
    %776 = vector.multi_reduction <maximumf>, %775, %cst_378 [0] : vector<8x8xf32> to vector<8xf32>
    %777 = vector.shape_cast %776 : vector<8xf32> to vector<1x8xf32>
    %778 = vector.broadcast %777 : vector<1x8xf32> to vector<8x8xf32>
    %779 = arith.cmpf oge, %775, %778 : vector<8x8xf32>
    %c8_i32_379 = arith.constant 8 : i32
    %780 = vector.broadcast %c8_i32_379 : i32 to vector<8x8xi32>
    %781 = arith.select %779, %422, %780 : vector<8x8xi1>, vector<8x8xi32>
    %cst_380 = arith.constant dense<2147483647> : vector<8xi32>
    %782 = vector.multi_reduction <minsi>, %781, %cst_380 [0] : vector<8x8xi32> to vector<8xi32>
    %783 = vector.shape_cast %782 : vector<8xi32> to vector<1x8xi32>
    %c1_381 = arith.constant 1 : index
    %c6_382 = arith.constant 6 : index
    %784 = memref.load %arg0[%c1_381, %c6_382] : memref<2x8xi32, #tpu.memory_space<smem>>
    %c0_i32_383 = arith.constant 0 : i32
    %785 = arith.cmpi sgt, %784, %c0_i32_383 : i32
    %786 = arith.select %785, %777, %769 : vector<1x8xf32>
    %c15 = arith.constant 15 : index
    %c0_384 = arith.constant 0 : index
    %787 = vector.load %arg25[%c15, %c0_384] : memref<16x8xf32, #tpu.memory_space<vmem>>, vector<1x8xf32>
    %788 = tpu.transpose %786, [1, 0] : vector<1x8xf32> -> vector<8x1xf32>
    %789 = vector.broadcast %788 : vector<8x1xf32> to vector<8x8xf32>
    %790 = arith.addf %789, %419 : vector<8x8xf32>
    %791 = vector.broadcast %787 : vector<1x8xf32> to vector<8x8xf32>
    %792 = arith.addf %790, %791 : vector<8x8xf32>
    %cst_385 = arith.constant dense<0xFF800000> : vector<8xf32>
    %793 = vector.multi_reduction <maximumf>, %792, %cst_385 [0] : vector<8x8xf32> to vector<8xf32>
    %794 = vector.shape_cast %793 : vector<8xf32> to vector<1x8xf32>
    %795 = vector.broadcast %794 : vector<1x8xf32> to vector<8x8xf32>
    %796 = arith.cmpf oge, %792, %795 : vector<8x8xf32>
    %c8_i32_386 = arith.constant 8 : i32
    %797 = vector.broadcast %c8_i32_386 : i32 to vector<8x8xi32>
    %798 = arith.select %796, %422, %797 : vector<8x8xi1>, vector<8x8xi32>
    %cst_387 = arith.constant dense<2147483647> : vector<8xi32>
    %799 = vector.multi_reduction <minsi>, %798, %cst_387 [0] : vector<8x8xi32> to vector<8xi32>
    %800 = vector.shape_cast %799 : vector<8xi32> to vector<1x8xi32>
    %c1_388 = arith.constant 1 : index
    %c7_389 = arith.constant 7 : index
    %801 = memref.load %arg0[%c1_388, %c7_389] : memref<2x8xi32, #tpu.memory_space<smem>>
    %c0_i32_390 = arith.constant 0 : i32
    %802 = arith.cmpi sgt, %801, %c0_i32_390 : i32
    %803 = arith.select %802, %794, %786 : vector<1x8xf32>
    %804 = arith.addf %803, %421 : vector<1x8xf32>
    %cst_391 = arith.constant dense<0xFF800000> : vector<1xf32>
    %805 = vector.multi_reduction <maximumf>, %804, %cst_391 [1] : vector<1x8xf32> to vector<1xf32>
    %806 = vector.shape_cast %805 : vector<1xf32> to vector<1x1xf32>
    %807 = vector.broadcast %806 : vector<1x1xf32> to vector<1x8xf32>
    %808 = arith.cmpf oge, %804, %807 : vector<1x8xf32>
    %c8_i32_392 = arith.constant 8 : i32
    %809 = vector.broadcast %c8_i32_392 : i32 to vector<1x8xi32>
    %810 = arith.select %808, %423, %809 : vector<1x8xi1>, vector<1x8xi32>
    %cst_393 = arith.constant dense<2147483647> : vector<1xi32>
    %811 = vector.multi_reduction <minsi>, %810, %cst_393 [1] : vector<1x8xi32> to vector<1xi32>
    %812 = vector.shape_cast %811 : vector<1xi32> to vector<1x1xi32>
    %c1_394 = arith.constant 1 : index
    %c0_395 = arith.constant 0 : index
    %813 = memref.load %arg0[%c1_394, %c0_395] : memref<2x8xi32, #tpu.memory_space<smem>>
    %c1_396 = arith.constant 1 : index
    %c1_397 = arith.constant 1 : index
    %814 = memref.load %arg0[%c1_396, %c1_397] : memref<2x8xi32, #tpu.memory_space<smem>>
    %815 = arith.addi %813, %814 : i32
    %c1_398 = arith.constant 1 : index
    %c2_399 = arith.constant 2 : index
    %816 = memref.load %arg0[%c1_398, %c2_399] : memref<2x8xi32, #tpu.memory_space<smem>>
    %817 = arith.addi %815, %816 : i32
    %c1_400 = arith.constant 1 : index
    %c3_401 = arith.constant 3 : index
    %818 = memref.load %arg0[%c1_400, %c3_401] : memref<2x8xi32, #tpu.memory_space<smem>>
    %819 = arith.addi %817, %818 : i32
    %c1_402 = arith.constant 1 : index
    %c4_403 = arith.constant 4 : index
    %820 = memref.load %arg0[%c1_402, %c4_403] : memref<2x8xi32, #tpu.memory_space<smem>>
    %821 = arith.addi %819, %820 : i32
    %c1_404 = arith.constant 1 : index
    %c5_405 = arith.constant 5 : index
    %822 = memref.load %arg0[%c1_404, %c5_405] : memref<2x8xi32, #tpu.memory_space<smem>>
    %823 = arith.addi %821, %822 : i32
    %c1_406 = arith.constant 1 : index
    %c6_407 = arith.constant 6 : index
    %824 = memref.load %arg0[%c1_406, %c6_407] : memref<2x8xi32, #tpu.memory_space<smem>>
    %825 = arith.addi %823, %824 : i32
    %c1_408 = arith.constant 1 : index
    %c7_409 = arith.constant 7 : index
    %826 = memref.load %arg0[%c1_408, %c7_409] : memref<2x8xi32, #tpu.memory_space<smem>>
    %827 = arith.addi %825, %826 : i32
    %c1_i32_410 = arith.constant 1 : i32
    %828 = arith.subi %827, %c1_i32_410 : i32
    %c0_i32_411 = arith.constant 0 : i32
    %829 = vector.broadcast %c0_i32_411 : i32 to vector<1x8xi32>
    %c7_i32_412 = arith.constant 7 : i32
    %830 = arith.cmpi sge, %828, %c7_i32_412 : i32
    %c7_i32_413 = arith.constant 7 : i32
    %831 = vector.broadcast %c7_i32_413 : i32 to vector<1x8xi32>
    %832 = arith.cmpi eq, %424, %831 : vector<1x8xi32>
    %833 = vector.broadcast %830 : i1 to vector<1x8xi1>
    %834 = arith.andi %832, %833 : vector<1x8xi1>
    %835 = vector.shape_cast %812 : vector<1x1xi32> to vector<1x1xi32>
    %836 = vector.broadcast %835 : vector<1x1xi32> to vector<1x8xi32>
    %837 = arith.select %834, %836, %829 : vector<1x8xi1>, vector<1x8xi32>
    %838 = vector.broadcast %812 : vector<1x1xi32> to vector<1x8xi32>
    %839 = arith.cmpi eq, %423, %838 : vector<1x8xi32>
    %c0_i32_414 = arith.constant 0 : i32
    %840 = vector.broadcast %c0_i32_414 : i32 to vector<1x8xi32>
    %841 = arith.select %839, %800, %840 : vector<1x8xi1>, vector<1x8xi32>
    %cst_415 = arith.constant dense<0> : vector<1xi32>
    %842 = vector.multi_reduction <add>, %841, %cst_415 [1] : vector<1x8xi32> to vector<1xi32>
    %843 = vector.shape_cast %842 : vector<1xi32> to vector<1x1xi32>
    %844 = arith.select %830, %843, %812 : vector<1x1xi32>
    %c6_i32_416 = arith.constant 6 : i32
    %845 = arith.cmpi sge, %828, %c6_i32_416 : i32
    %c6_i32_417 = arith.constant 6 : i32
    %846 = vector.broadcast %c6_i32_417 : i32 to vector<1x8xi32>
    %847 = arith.cmpi eq, %424, %846 : vector<1x8xi32>
    %848 = vector.broadcast %845 : i1 to vector<1x8xi1>
    %849 = arith.andi %847, %848 : vector<1x8xi1>
    %850 = vector.shape_cast %844 : vector<1x1xi32> to vector<1x1xi32>
    %851 = vector.broadcast %850 : vector<1x1xi32> to vector<1x8xi32>
    %852 = arith.select %849, %851, %837 : vector<1x8xi1>, vector<1x8xi32>
    %853 = vector.broadcast %844 : vector<1x1xi32> to vector<1x8xi32>
    %854 = arith.cmpi eq, %423, %853 : vector<1x8xi32>
    %c0_i32_418 = arith.constant 0 : i32
    %855 = vector.broadcast %c0_i32_418 : i32 to vector<1x8xi32>
    %856 = arith.select %854, %783, %855 : vector<1x8xi1>, vector<1x8xi32>
    %cst_419 = arith.constant dense<0> : vector<1xi32>
    %857 = vector.multi_reduction <add>, %856, %cst_419 [1] : vector<1x8xi32> to vector<1xi32>
    %858 = vector.shape_cast %857 : vector<1xi32> to vector<1x1xi32>
    %859 = arith.select %845, %858, %844 : vector<1x1xi32>
    %c5_i32_420 = arith.constant 5 : i32
    %860 = arith.cmpi sge, %828, %c5_i32_420 : i32
    %c5_i32_421 = arith.constant 5 : i32
    %861 = vector.broadcast %c5_i32_421 : i32 to vector<1x8xi32>
    %862 = arith.cmpi eq, %424, %861 : vector<1x8xi32>
    %863 = vector.broadcast %860 : i1 to vector<1x8xi1>
    %864 = arith.andi %862, %863 : vector<1x8xi1>
    %865 = vector.shape_cast %859 : vector<1x1xi32> to vector<1x1xi32>
    %866 = vector.broadcast %865 : vector<1x1xi32> to vector<1x8xi32>
    %867 = arith.select %864, %866, %852 : vector<1x8xi1>, vector<1x8xi32>
    %868 = vector.broadcast %859 : vector<1x1xi32> to vector<1x8xi32>
    %869 = arith.cmpi eq, %423, %868 : vector<1x8xi32>
    %c0_i32_422 = arith.constant 0 : i32
    %870 = vector.broadcast %c0_i32_422 : i32 to vector<1x8xi32>
    %871 = arith.select %869, %766, %870 : vector<1x8xi1>, vector<1x8xi32>
    %cst_423 = arith.constant dense<0> : vector<1xi32>
    %872 = vector.multi_reduction <add>, %871, %cst_423 [1] : vector<1x8xi32> to vector<1xi32>
    %873 = vector.shape_cast %872 : vector<1xi32> to vector<1x1xi32>
    %874 = arith.select %860, %873, %859 : vector<1x1xi32>
    %c4_i32_424 = arith.constant 4 : i32
    %875 = arith.cmpi sge, %828, %c4_i32_424 : i32
    %c4_i32_425 = arith.constant 4 : i32
    %876 = vector.broadcast %c4_i32_425 : i32 to vector<1x8xi32>
    %877 = arith.cmpi eq, %424, %876 : vector<1x8xi32>
    %878 = vector.broadcast %875 : i1 to vector<1x8xi1>
    %879 = arith.andi %877, %878 : vector<1x8xi1>
    %880 = vector.shape_cast %874 : vector<1x1xi32> to vector<1x1xi32>
    %881 = vector.broadcast %880 : vector<1x1xi32> to vector<1x8xi32>
    %882 = arith.select %879, %881, %867 : vector<1x8xi1>, vector<1x8xi32>
    %883 = vector.broadcast %874 : vector<1x1xi32> to vector<1x8xi32>
    %884 = arith.cmpi eq, %423, %883 : vector<1x8xi32>
    %c0_i32_426 = arith.constant 0 : i32
    %885 = vector.broadcast %c0_i32_426 : i32 to vector<1x8xi32>
    %886 = arith.select %884, %749, %885 : vector<1x8xi1>, vector<1x8xi32>
    %cst_427 = arith.constant dense<0> : vector<1xi32>
    %887 = vector.multi_reduction <add>, %886, %cst_427 [1] : vector<1x8xi32> to vector<1xi32>
    %888 = vector.shape_cast %887 : vector<1xi32> to vector<1x1xi32>
    %889 = arith.select %875, %888, %874 : vector<1x1xi32>
    %c3_i32_428 = arith.constant 3 : i32
    %890 = arith.cmpi sge, %828, %c3_i32_428 : i32
    %c3_i32_429 = arith.constant 3 : i32
    %891 = vector.broadcast %c3_i32_429 : i32 to vector<1x8xi32>
    %892 = arith.cmpi eq, %424, %891 : vector<1x8xi32>
    %893 = vector.broadcast %890 : i1 to vector<1x8xi1>
    %894 = arith.andi %892, %893 : vector<1x8xi1>
    %895 = vector.shape_cast %889 : vector<1x1xi32> to vector<1x1xi32>
    %896 = vector.broadcast %895 : vector<1x1xi32> to vector<1x8xi32>
    %897 = arith.select %894, %896, %882 : vector<1x8xi1>, vector<1x8xi32>
    %898 = vector.broadcast %889 : vector<1x1xi32> to vector<1x8xi32>
    %899 = arith.cmpi eq, %423, %898 : vector<1x8xi32>
    %c0_i32_430 = arith.constant 0 : i32
    %900 = vector.broadcast %c0_i32_430 : i32 to vector<1x8xi32>
    %901 = arith.select %899, %732, %900 : vector<1x8xi1>, vector<1x8xi32>
    %cst_431 = arith.constant dense<0> : vector<1xi32>
    %902 = vector.multi_reduction <add>, %901, %cst_431 [1] : vector<1x8xi32> to vector<1xi32>
    %903 = vector.shape_cast %902 : vector<1xi32> to vector<1x1xi32>
    %904 = arith.select %890, %903, %889 : vector<1x1xi32>
    %c2_i32_432 = arith.constant 2 : i32
    %905 = arith.cmpi sge, %828, %c2_i32_432 : i32
    %c2_i32_433 = arith.constant 2 : i32
    %906 = vector.broadcast %c2_i32_433 : i32 to vector<1x8xi32>
    %907 = arith.cmpi eq, %424, %906 : vector<1x8xi32>
    %908 = vector.broadcast %905 : i1 to vector<1x8xi1>
    %909 = arith.andi %907, %908 : vector<1x8xi1>
    %910 = vector.shape_cast %904 : vector<1x1xi32> to vector<1x1xi32>
    %911 = vector.broadcast %910 : vector<1x1xi32> to vector<1x8xi32>
    %912 = arith.select %909, %911, %897 : vector<1x8xi1>, vector<1x8xi32>
    %913 = vector.broadcast %904 : vector<1x1xi32> to vector<1x8xi32>
    %914 = arith.cmpi eq, %423, %913 : vector<1x8xi32>
    %c0_i32_434 = arith.constant 0 : i32
    %915 = vector.broadcast %c0_i32_434 : i32 to vector<1x8xi32>
    %916 = arith.select %914, %715, %915 : vector<1x8xi1>, vector<1x8xi32>
    %cst_435 = arith.constant dense<0> : vector<1xi32>
    %917 = vector.multi_reduction <add>, %916, %cst_435 [1] : vector<1x8xi32> to vector<1xi32>
    %918 = vector.shape_cast %917 : vector<1xi32> to vector<1x1xi32>
    %919 = arith.select %905, %918, %904 : vector<1x1xi32>
    %c1_i32_436 = arith.constant 1 : i32
    %920 = arith.cmpi sge, %828, %c1_i32_436 : i32
    %c1_i32_437 = arith.constant 1 : i32
    %921 = vector.broadcast %c1_i32_437 : i32 to vector<1x8xi32>
    %922 = arith.cmpi eq, %424, %921 : vector<1x8xi32>
    %923 = vector.broadcast %920 : i1 to vector<1x8xi1>
    %924 = arith.andi %922, %923 : vector<1x8xi1>
    %925 = vector.shape_cast %919 : vector<1x1xi32> to vector<1x1xi32>
    %926 = vector.broadcast %925 : vector<1x1xi32> to vector<1x8xi32>
    %927 = arith.select %924, %926, %912 : vector<1x8xi1>, vector<1x8xi32>
    %928 = vector.broadcast %919 : vector<1x1xi32> to vector<1x8xi32>
    %929 = arith.cmpi eq, %423, %928 : vector<1x8xi32>
    %c0_i32_438 = arith.constant 0 : i32
    %930 = vector.broadcast %c0_i32_438 : i32 to vector<1x8xi32>
    %931 = arith.select %929, %698, %930 : vector<1x8xi1>, vector<1x8xi32>
    %cst_439 = arith.constant dense<0> : vector<1xi32>
    %932 = vector.multi_reduction <add>, %931, %cst_439 [1] : vector<1x8xi32> to vector<1xi32>
    %933 = vector.shape_cast %932 : vector<1xi32> to vector<1x1xi32>
    %934 = arith.select %920, %933, %919 : vector<1x1xi32>
    %c0_i32_440 = arith.constant 0 : i32
    %935 = vector.broadcast %c0_i32_440 : i32 to vector<1x8xi32>
    %936 = arith.cmpi eq, %424, %935 : vector<1x8xi32>
    %937 = vector.shape_cast %934 : vector<1x1xi32> to vector<1x1xi32>
    %938 = vector.broadcast %937 : vector<1x1xi32> to vector<1x8xi32>
    %939 = arith.select %936, %938, %927 : vector<1x8xi1>, vector<1x8xi32>
    %c1_441 = arith.constant 1 : index
    %c0_442 = arith.constant 0 : index
    %940 = vector.load %arg22[%c1_441, %c0_442] : memref<2x8xi32, #tpu.memory_space<vmem>>, vector<1x8xi32>
    tpu.vector_store %arg22[%c1_441, %c0_442], %939 {strides = array<i32>} : memref<2x8xi32, #tpu.memory_space<vmem>>, vector<1x8xi32>,
    return
  }
}

</mosaic_0001>

<bundles_post_ra>
// kernel: bert_crf_forward.1
= control target key start
LH: loop header
LB: loop body
LE: loop exit
PB: predicated region body
PF: predicated region fallthrough
CT: control target
= control target key end

     0   :  { %s6130_s0 = inlined_call_operand.vmem [shape: s32[2,8], index: 0, kind: input, shape index: {}]   ;;  %s6131_s1 = inlined_call_operand.vmem [shape: f32[16,32], index: 1, kind: input, shape index: {}]   ;;  %s6132_s2 = inlined_call_operand.vmem [shape: f32[2,8], index: 2, kind: input, shape index: {}]   ;;  %s6133_s3 = inlined_call_operand.vmem [shape: f32[1,32], index: 3, kind: input, shape index: {}]   ;;  %s6134_s4 = inlined_call_operand.vmem [shape: f32[1,32], index: 4, kind: input, shape index: {}]   ;;  %s6135_s5 = inlined_call_operand.vmem [shape: f32[2,32,96], index: 5, kind: input, shape index: {}]   ;;  %s6136_s6 = inlined_call_operand.vmem [shape: f32[2,1,96], index: 6, kind: input, shape index: {}]   ;;  %s6137_s7 = inlined_call_operand.vmem [shape: f32[2,32,32], index: 7, kind: input, shape index: {}]   ;;  %s6138_s8 = inlined_call_operand.vmem [shape: f32[2,1,32], index: 8, kind: input, shape index: {}]   ;;  %s6139_s9 = inlined_call_operand.vmem [shape: f32[2,1,32], index: 9, kind: input, shape index: {}]   ;;  %s6140_s10 = inlined_call_operand.vmem [shape: f32[2,1,32], index: 10, kind: input, shape index: {}]   ;;  %s6141_s11 = inlined_call_operand.vmem [shape: f32[2,32,64], index: 11, kind: input, shape index: {}]   ;;  %s6142_s12 = inlined_call_operand.vmem [shape: f32[2,1,64], index: 12, kind: input, shape index: {}]   ;;  %s6143_s13 = inlined_call_operand.vmem [shape: f32[2,64,32], index: 13, kind: input, shape index: {}]   ;;  %s6144_s14 = inlined_call_operand.vmem [shape: f32[2,1,32], index: 14, kind: input, shape index: {}]   ;;  %s6145_s15 = inlined_call_operand.vmem [shape: f32[2,1,32], index: 15, kind: input, shape index: {}]   ;;  %s6146_s16 = inlined_call_operand.vmem [shape: f32[2,1,32], index: 16, kind: input, shape index: {}]   ;;  %s6147_s17 = inlined_call_operand.vmem [shape: f32[32,8], index: 17, kind: input, shape index: {}]   ;;  %s6148_s18 = inlined_call_operand.vmem [shape: f32[1,8], index: 18, kind: input, shape index: {}]   ;;  %s6149_s19 = inlined_call_operand.vmem [shape: f32[1,8], index: 19, kind: input, shape index: {}]   ;;  %s6150_s20 = inlined_call_operand.vmem [shape: f32[1,8], index: 20, kind: input, shape index: {}]   ;;  %s6151_s21 = inlined_call_operand.vmem [shape: f32[8,8], index: 21, kind: input, shape index: {}]   ;;  %s6152_s22 = inlined_call_operand.hbm [shape: s32[2,8], index: 22, kind: output, shape index: {}]  }
   0x1   :  { %6162 = sst [smem:[#allocation11_spill]] %s6130_s0 }
   0x2   :  { %6163 = sst [smem:[#allocation12_spill]] %s6131_s1 }
   0x3   :  { %6164 = sst [smem:[#allocation13_spill]] %s6132_s2 }
   0x4   :  { %6165 = sst [smem:[#allocation14_spill]] %s6133_s3 }
   0x5   :  { %6166 = sst [smem:[#allocation15_spill]] %s6134_s4 }
   0x6   :  { %6167 = sst [smem:[#allocation16_spill]] %s6135_s5 }
   0x7   :  { %6168 = sst [smem:[#allocation17_spill]] %s6136_s6 }
   0x8   :  { %27 = vsyncpa [#allocation7], 0 }
   0x9   :  { %28 = vsyncpa [#allocation6], 0  ;;  %s6169_s29 = sld [smem:[#allocation11_spill]] }
   0xf   :  { %s35_s30 = sshll.u32 %s6169_s29, 4  ;;  %s36_s30 = int_to_ptr.vmem [resolvable:$true] %s35_s30 }
  0x10   :  { %s4909_s4 = scalar_lea.vmem %s36_s30, 32  ;;  %p4914_p1 = scmp.lt.s32.totalorder %s36_s30, %s36_s30 }
  0x11   :  { %p4910_p0 = scmp.ne.s32.totalorder %s36_s30, %s4909_s4  ;;  %p4915_p2 = scmp.lt.s32.totalorder %s4909_s4, %s4909_s4 }
  0x13   :  { %p4916_p3 = por %p4915_p2, %p4914_p1 }
  0x15   :  { %p4917_p4 = pnand %p4916_p3, %p4910_p0 }
  0x17   :  { %4920 = shalt.err (!%p4917_p4)
}
  0x18   :  { %s4945_s0 = smov [#allocation5]  }
  0x19   :  { %38 = dma.vmem_to_smem %s36_s30, 32, %s4945_s0, [#allocation7]  }
  0x1a   :  { %4941 = dma.done.wait [#allocation7], 32  }
  0x1b   :  { %4942 = vsyncadd [#allocation7], 4294967264 }
  0x1c   :  { %84 = sfence }
  0x1d   :  { %s6170_s5 = sld [smem:[#allocation12_spill]]  ;;  %vm89_vm0 = vcmask 261120   ;;  %v4946_v34 = vmov 0.0   ;;  %vm225_vm1 = vcmask 785408   ;;  %vm4947_vm2 = vmmov 0   ;;  %s4948_s3 = smov 80  }
  0x1e   :  { %s6171_s2 = sld [smem:[#allocation16_spill]]  ;;  %4619 = vmatprep.subr.mxu1 %v4946_v34  ;;  %4621 = vmatprep.mubr.msk.f32.mxu1 %vm4947_vm2, %v4946_v34  ;;  %s4949_s28 = smov 96   ;;  %vm237_vm3 = vcmask 130048   ;;  %vm318_vm4 = vcmask 64512   ;;  %vm1388_vm5 = vcmask 523264   ;;  %vm6157_vm8 = vcmask 57344  }
  0x1f   :  { %s6172_s1 = sld [smem:[#allocation14_spill]]  ;;  %s4950_s29 = smov 112  }
  0x20   :  { %s6173_s6 = sld [smem:[#allocation15_spill]]  ;;  %s4951_s23 = smov 64  }
  0x21   :  { %s6174_s27 = sld [smem:[#allocation17_spill]] }
  0x22   :  { %s6175_s0 = sld [smem:[#allocation13_spill]] }
  0x23   :  { %v85_v0 = vld [vmem:[%s6170_s5] sm:$0xff]  ;;  %v86_v1 = vld [vmem:[%s6170_s5 + $0x8] sm:$0xff]  ;;  %s4500_s5 = sld [smem:[#allocation5 + $0x80]] }
  0x24   :  { %v90_v2 = vsel %vm89_vm0, %v85_v0, 0.0  ;;  %v93_v3 = vsel %vm89_vm0, %v86_v1, 0.0  ;;  %v136_v14 = vld [vmem:[%s6171_s2 + $0x18] sm:$0xff]  ;;  %v135_v15 = vld [vmem:[%s6171_s2 + $0x10] sm:$0xff]  ;;  %v134_v16 = vld [vmem:[%s6171_s2 + $0x8] sm:$0xff]  ;;  %s3515_s24 = sld [smem:[#allocation5]] }
  0x25   :  { %91 = vadd.xlane.f32.xlu0 %v90_v2  ;;  %4608 = vmatprep.subr.mxu0 %v136_v14  ;;  %v133_v17 = vld [vmem:[%s6171_s2] sm:$0xff] }
  0x26   :  { %4609 = vmatpush3.msra.mxu0 %v136_v14  ;;  %v4374_v25 = vld [vmem:[%s6172_s1] ss:$0 sm:$0xff]  ;;  %s4952_s1 = smov 48  }
  0x27   :  { %4610 = vmatprep.subr.mxu0 %v135_v15  ;;  %v4375_v27 = vld [vmem:[%s6173_s6] ss:$0 sm:$0xff]  ;;  %s5596_s6 = sld [smem:[#allocation5 + $0x3]] }
  0x28   :  { %4611 = vmatpush3.msra.mxu0 %v135_v15  ;;  %v4376_v35 = vld [vmem:[%s6174_s27] ss:$0 sm:$0xff] }
  0x29   :  { %94 = vadd.xlane.f32.xlu0 %v93_v3  ;;  %4612 = vmatprep.subr.mxu0 %v134_v16  ;;  %v5136_v45 = vld [vmem:[%s6175_s0] ss:$0 sm:$0xff] }
  0x2a   :  { %4613 = vmatpush3.msra.mxu0 %v134_v16 }
  0x2b   :  { %4614 = vmatprep.subr.mxu0 %v133_v17 }
  0x2c   :  { %4615 = vmatpush3.msra.mxu0 %v133_v17 }
  0x2d   :  { %4629 = vmatprep.subr.mxu0 %v4946_v34  ;;  %p3212_p10 = scmp.gt.s32.totalorder %s5596_s6, 0 }
  0x2f   :  { %s3213_s26 = scalar_select %p3212_p10, 1, 0 }
  0xae   :  { %v92_v4 = vpop.xlane.xlu0 %91 }
  0xaf   :  { %v97_v5 = vmul.f32 0.03125, %v92_v4 }
  0xb1   :  { %v99_v6 = vsub.f32 %v85_v0, %v97_v5 }
  0xb2   :  { %v95_v7 = vpop.xlane.xlu0 %94 }
  0xb3   :  { %v98_v8 = vmul.f32 0.03125, %v95_v7  ;;  %v101_v9 = vmul.f32 %v99_v6, %v99_v6 }
  0xb5   :  { %v100_v10 = vsub.f32 %v86_v1, %v98_v8  ;;  %v103_v11 = vsel %vm89_vm0, %v101_v9, 0.0 }
  0xb6   :  { %104 = vadd.xlane.f32.xlu1 %v103_v11  ;;  %v5172_v11 = vld [vmem:[%s6137_s7] sm:$0xff] }
  0xb7   :  { %v102_v12 = vmul.f32 %v100_v10, %v100_v10 }
  0xb9   :  { %v106_v13 = vsel %vm89_vm0, %v102_v12, 0.0  ;;  %v231_v12 = vld [vmem:[%s6137_s7 + $0x18] sm:$0xff] }
  0xba   :  { %107 = vadd.xlane.f32.xlu1 %v106_v13  ;;  %v230_v13 = vld [vmem:[%s6137_s7 + $0x10] sm:$0xff] }
 0x13f   :  { %v105_v18 = vpop.xlane.xlu1 %104 }
 0x140   :  { %v109_v19 = vmul.f32 0.03125, %v105_v18 }
 0x142   :  { %v111_v20 = vadd.f32 1e-12, %v109_v19 }
 0x143   :  { %v108_v21 = vpop.xlane.xlu1 %107 }
 0x144   :  { %4849 = vrsqrt.f32 %v111_v20  ;;  %v110_v22 = vmul.f32 0.03125, %v108_v21 }
 0x146   :  { %v112_v23 = vadd.f32 1e-12, %v110_v22 }
 0x148   :  { %4851 = vrsqrt.f32 %v112_v23 }
 0x151   :  { %v4850_v24 = vpop.eup %4849 }
 0x152   :  { %v115_v26 = vmul.f32 %v4850_v24, %v99_v6 }
 0x154   :  { %v123_v28 = vmul.f32 %v4374_v25, %v115_v26 }
 0x155   :  { %v4852_v29 = vpop.eup %4851 }
 0x156   :  { %v116_v30 = vmul.f32 %v4852_v29, %v100_v10  ;;  %v5101_v31 = vadd.f32 %v4375_v27, %v123_v28  ;;  %v5162_v10 = vld [vmem:[%s6137_s7 + $0x8] sm:$0xff] }
 0x158   :  { %v124_v32 = vmul.f32 %v4374_v25, %v116_v30  ;;  %4616 = vmatprep.mubr.msk.f32.mxu0 %vm89_vm0, %v5101_v31 }
 0x15a   :  { %v5105_v33 = vadd.f32 %v4375_v27, %v124_v32  ;;  %v5206_v27 = vld [vmem:[%s6175_s0 + $0x1] ss:$0 sm:$0xff] }
 0x15c   :  { %4617 = vmatmul.mubr.msk.f32.vlgmr.msra.gmra.mxu0 %vm89_vm0, %v5105_v33 }
 0x15d   :  { %4631 = vmatprep.mubr.msk.f32.mxu0 %vm4947_vm2, %v4946_v34 }
 0x21c   :  { %v4618_v36 = vpop.f32.mrf.mxu0 }
 0x21d   :  { %v222_v37 = vadd.f32 %v4618_v36, %v4376_v35 }
 0x21e   :  { %v216_v38 = vpop.f32.mrf.mxu0 }
 0x21f   :  { %227 = vst.msk [vmem:[#allocation2 + $0x8] sm:$0xff] %vm225_vm1, %v222_v37  ;;  %v217_v39 = vadd.f32 %v4376_v35, %v216_v38 }
 0x221   :  { %226 = vst.msk [vmem:[#allocation2] sm:$0xff] %vm225_vm1, %v217_v39 }
 0x226   :  { %v5143_v55 = vld [vmem:[#allocation2 + $0x8] sm:$0xff] }
 0x228   :  { %v233_v40 = vld [vmem:[#allocation2] sm:$0xff] }
 0x229   :  { %408 = vrot.lane.b32.xlu1 %v233_v40, %s4948_s3  ;;  %235 = vrot.lane.b32.xlu0 %v233_v40, %s4949_s28 }
 0x22d   :  { %406 = vrot.lane.b32.xlu1 %v233_v40, %s4950_s29 }
 0x29b   :  { %v409_v41 = vpop.permute.xlu1 %408  ;;  %v236_v42 = vpop.permute.xlu0 %235 }
 0x29c   :  { %4620 = vmatpush3.xpose.msk.msra.mxu1 %vm237_vm3, %v236_v42  ;;  %4630 = vmatpush3.xpose.msk.msra.mxu0 %vm237_vm3, %v409_v41  ;;  %v4397_v41 = vld [vmem:[%s6138_s8] ss:$0 sm:$0xff] }
 0x29d   :  { %4624 = vmatprep.subr.mxu1 %v4946_v34  ;;  %4639 = vmatprep.subr.mxu0 %v4946_v34 }
 0x29f   :  { %v407_v43 = vpop.permute.xlu1 %406  ;;  %4622 = vmatmul.mubr.msk.f32.vlgmr.msra.gmra.mxu1 %vm237_vm3, %v233_v40 }
 0x2a0   :  { %4632 = vmatmul.mubr.msk.f32.vlgmr.msra.gmra.mxu0 %vm237_vm3, %v407_v43  ;;  %4626 = vmatprep.mubr.msk.f32.mxu1 %vm4947_vm2, %v4946_v34 }
 0x2a1   :  { %4643 = vmatprep.mubr.msk.f32.mxu0 %vm4947_vm2, %v4946_v34  ;;  %4640 = vmatpush3.msra.mxu0 %v231_v12 }
 0x2a2   :  { %4641 = vmatprep.subr.mxu0 %v4946_v34 }
 0x2a3   :  { %4642 = vmatpush3.msra.mxu0 %v230_v13 }
 0x2a4   :  { %4653 = vmatprep.subr.mxu0 %v4946_v34 }
 0x35f   :  { %v308_v44 = vpop.f32.mrf.mxu1 }
 0x360   :  { %v312_v46 = vmul.f32 0.25, %v308_v44  ;;  %v480_v47 = vpop.f32.mrf.mxu0 }
 0x361   :  { %v484_v48 = vmul.f32 0.25, %v480_v47  ;;  %v4623_v49 = vpop.f32.mrf.mxu1 }
 0x362   :  { %v4633_v50 = vpop.f32.mrf.mxu0  ;;  %v317_v51 = vadd.f32 %v5136_v45, %v312_v46 }
 0x363   :  { %v485_v52 = vadd.f32 %v5136_v45, %v484_v48 }
 0x364   :  { %v319_v53 = vsel %vm318_vm4, %v317_v51, -inf }
 0x365   :  { %320 = vmax.xlane.f32.xlu1 %v319_v53  ;;  %v486_v54 = vsel %vm318_vm4, %v485_v52, -inf }
 0x366   :  { %487 = vmax.xlane.f32.xlu0 %v486_v54 }
 0x376   :  { %330 = vrot.lane.b32.xlu1 %v233_v40, %s4951_s23 }
 0x37a   :  { %723 = vrot.lane.b32.xlu1 %v5143_v55, %s4949_s28 }
 0x37e   :  { %894 = vrot.lane.b32.xlu1 %v5143_v55, %s4948_s3 }
 0x382   :  { %892 = vrot.lane.b32.xlu1 %v5143_v55, %s4950_s29 }
 0x3ee   :  { %v321_v56 = vpop.xlane.xlu1 %320 }
 0x3ef   :  { %v322_v57 = vsub.f32 %v317_v51, %v321_v56  ;;  %v488_v58 = vpop.xlane.xlu0 %487 }
 0x3f0   :  { %v489_v59 = vsub.f32 %v485_v52, %v488_v58 }
 0x3f1   :  { %v323_v60 = vmul.f32 1.442695, %v322_v57 }
 0x3f2   :  { %v490_v61 = vmul.f32 1.442695, %v489_v59  ;;  %v331_v62 = vpop.permute.xlu1 %330 }
 0x3f3   :  { %4853 = vpow2.f32 %v323_v60  ;;  %4625 = vmatpush3.msra.mxu1 %v331_v62 }
 0x3f4   :  { %4634 = vmatprep.subr.mxu1 %v4946_v34  ;;  %4855 = vpow2.f32 %v490_v61 }
 0x3f6   :  { %v724_v14 = vpop.permute.xlu1 %723 }
 0x3fa   :  { %v895_v18 = vpop.permute.xlu1 %894 }
 0x3fe   :  { %v893_v20 = vpop.permute.xlu1 %892 }
 0x400   :  { %v4854_v63 = vpop.eup %4853 }
 0x401   :  { %v325_v0 = vsel %vm318_vm4, %v4854_v63, 0.0  ;;  %v4856_v1 = vpop.eup %4855 }
 0x402   :  { %326 = vadd.xlane.f32.xlu0 %v325_v0  ;;  %v492_v2 = vsel %vm318_vm4, %v4856_v1, 0.0 }
 0x406   :  { %493 = vadd.xlane.f32.xlu0 %v492_v2 }
 0x41c   :  { %497 = vrot.lane.b32.xlu0 %v233_v40, %s4952_s1 }
 0x48b   :  { %v327_v3 = vpop.xlane.xlu0 %326 }
 0x48c   :  { %4857 = vrcp.f32 %v327_v3 }
 0x48f   :  { %v494_v4 = vpop.xlane.xlu0 %493 }
 0x490   :  { %4859 = vrcp.f32 %v494_v4 }
 0x493   :  { %v498_v7 = vpop.permute.xlu0 %497 }
 0x499   :  { %v4858_v5 = vpop.eup %4857 }
 0x49a   :  { %v329_v6 = vmul.f32 %v4858_v5, %v4854_v63 }
 0x49c   :  { %4627 = vmatmul.mubr.msk.f32.vlgmr.msra.gmra.mxu1 %vm318_vm4, %v329_v6 }
 0x49d   :  { %v4860_v8 = vpop.eup %4859  ;;  %4635 = vmatpush3.msra.mxu1 %v498_v7  ;;  %4636 = vmatprep.mubr.msk.f32.mxu1 %vm4947_vm2, %v4946_v34 }
 0x49e   :  { %v496_v9 = vmul.f32 %v4860_v8, %v4856_v1  ;;  %4646 = vmatprep.subr.mxu1 %v4946_v34 }
 0x4a0   :  { %4637 = vmatmul.mubr.msk.f32.vlgmr.msra.gmra.mxu1 %vm318_vm4, %v496_v9 }
 0x4a1   :  { %4647 = vmatpush3.msra.mxu1 %v5162_v10  ;;  %4650 = vmatprep.mubr.msk.f32.mxu1 %vm4947_vm2, %v4946_v34 }
 0x4a2   :  { %4648 = vmatprep.subr.mxu1 %v4946_v34 }
 0x4a3   :  { %4649 = vmatpush3.msra.mxu1 %v5172_v11 }
 0x4a4   :  { %4658 = vmatprep.subr.mxu1 %v4946_v34 }
 0x55c   :  { %v402_v15 = vpop.f32.mrf.mxu1 }
 0x55d   :  { %4651 = vmatmul.mubr.msk.f32.vlgmr.msra.gmra.mxu1 %vm237_vm3, %v402_v15 }
 0x55e   :  { %v4628_v16 = vpop.f32.mrf.mxu1  ;;  %4660 = vmatprep.mubr.msk.f32.mxu1 %vm4947_vm2, %v4946_v34 }
 0x560   :  { %v569_v17 = vpop.f32.mrf.mxu1 }
 0x561   :  { %4644 = vmatmul.mubr.msk.f32.vlgmr.msra.gmra.mxu0 %vm237_vm3, %v569_v17 }
 0x562   :  { %4654 = vmatpush3.xpose.msk.msra.mxu0 %vm237_vm3, %v724_v14  ;;  %v4638_v19 = vpop.f32.mrf.mxu1  ;;  %4655 = vmatprep.mubr.msk.f32.mxu0 %vm4947_vm2, %v4946_v34 }
 0x563   :  { %4663 = vmatprep.subr.mxu0 %v4946_v34 }
 0x565   :  { %4656 = vmatmul.mubr.msk.f32.vlgmr.msra.gmra.mxu0 %vm237_vm3, %v5143_v55 }
 0x566   :  { %4664 = vmatpush3.xpose.msk.msra.mxu0 %vm237_vm3, %v895_v18  ;;  %4665 = vmatprep.mubr.msk.f32.mxu0 %vm4947_vm2, %v4946_v34 }
 0x567   :  { %4673 = vmatprep.subr.mxu0 %v4946_v34 }
 0x569   :  { %4666 = vmatmul.mubr.msk.f32.vlgmr.msra.gmra.mxu0 %vm237_vm3, %v893_v20 }
 0x56a   :  { %4674 = vmatpush3.msra.mxu0 %v231_v12  ;;  %4677 = vmatprep.mubr.msk.f32.mxu0 %vm4947_vm2, %v4946_v34 }
 0x56b   :  { %4675 = vmatprep.subr.mxu0 %v4946_v34 }
 0x56c   :  { %4676 = vmatpush3.msra.mxu0 %v230_v13 }
 0x61d   :  { %v715_v21 = vpop.f32.mrf.mxu1 }
 0x61f   :  { %v4652_v22 = vpop.f32.mrf.mxu1 }
 0x621   :  { %v642_v23 = vpop.f32.mrf.mxu0 }
 0x622   :  { %v716_v24 = vadd.f32 %v715_v21, %v642_v23 }
 0x623   :  { %v4645_v25 = vpop.f32.mrf.mxu0 }
 0x624   :  { %719 = vst.msk [vmem:[#allocation3] sm:$0xff] %vm89_vm0, %v716_v24 }
 0x625   :  { %v795_v26 = vpop.f32.mrf.mxu0 }
 0x626   :  { %v799_v28 = vmul.f32 0.25, %v795_v26 }
 0x627   :  { %v4657_v29 = vpop.f32.mrf.mxu0 }
 0x628   :  { %v804_v30 = vadd.f32 %v5206_v27, %v799_v28  ;;  %v4399_v28 = vld [vmem:[%s6140_s10] ss:$0 sm:$0xff] }
 0x629   :  { %v966_v32 = vpop.f32.mrf.mxu0 }
 0x62a   :  { %v970_v35 = vmul.f32 0.25, %v966_v32  ;;  %v805_v36 = vsel %vm318_vm4, %v804_v30, -inf  ;;  %v1266_v32 = vld [vmem:[%s6141_s11 + $0x18] sm:$0xff] }
 0x62b   :  { %806 = vmax.xlane.f32.xlu0 %v805_v36  ;;  %v4667_v37 = vpop.f32.mrf.mxu0  ;;  %v1206_v40 = vld [vmem:[#allocation3] sm:$0xff]  ;;  %4687 = vmatprep.subr.mxu0 %v1266_v32  ;;  %v1264_v36 = vld [vmem:[%s6141_s11 + $0x8] sm:$0xff] }
 0x62c   :  { %v971_v38 = vadd.f32 %v5206_v27, %v970_v35  ;;  %v1215_v42 = vadd.f32 %v4397_v41, %v1206_v40  ;;  %v1265_v35 = vld [vmem:[%s6141_s11 + $0x10] sm:$0xff]  ;;  %v1263_v37 = vld [vmem:[%s6141_s11] sm:$0xff] }
 0x62e   :  { %v972_v39 = vsel %vm318_vm4, %v971_v38, -inf  ;;  %v1217_v43 = vadd.f32 %v1215_v42, %v5101_v31 }
 0x62f   :  { %973 = vmax.xlane.f32.xlu1 %v972_v39 }
 0x630   :  { %v1221_v44 = vsel %vm89_vm0, %v1217_v43, 0.0 }
 0x640   :  { %983 = vrot.lane.b32.xlu1 %v5143_v55, %s4952_s1 }
 0x664   :  { %1222 = vadd.xlane.f32.xlu1 %v1221_v44 }
 0x6b4   :  { %v807_v46 = vpop.xlane.xlu0 %806 }
 0x6b5   :  { %v808_v47 = vsub.f32 %v804_v30, %v807_v46  ;;  %v1380_v46 = vld [vmem:[%s6143_s13 + $0x38] sm:$0xff] }
 0x6b7   :  { %v809_v48 = vmul.f32 1.442695, %v808_v47  ;;  %v1379_v47 = vld [vmem:[%s6143_s13 + $0x30] sm:$0xff] }
 0x6b8   :  { %v974_v49 = vpop.xlane.xlu1 %973 }
 0x6b9   :  { %4861 = vpow2.f32 %v809_v48  ;;  %v975_v50 = vsub.f32 %v971_v38, %v974_v49  ;;  %v1378_v48 = vld [vmem:[%s6143_s13 + $0x28] sm:$0xff]  ;;  %v1377_v49 = vld [vmem:[%s6143_s13 + $0x20] sm:$0xff] }
 0x6bb   :  { %v976_v51 = vmul.f32 1.442695, %v975_v50  ;;  %v1376_v50 = vld [vmem:[%s6143_s13 + $0x18] sm:$0xff] }
 0x6bc   :  { %v984_v61 = vpop.permute.xlu1 %983 }
 0x6bd   :  { %4863 = vpow2.f32 %v976_v51  ;;  %v1375_v51 = vld [vmem:[%s6143_s13 + $0x10] sm:$0xff] }
 0x6c6   :  { %v4862_v52 = vpop.eup %4861 }
 0x6c7   :  { %v811_v53 = vsel %vm318_vm4, %v4862_v52, 0.0 }
 0x6c8   :  { %812 = vadd.xlane.f32.xlu0 %v811_v53  ;;  %v1373_v53 = vld [vmem:[%s6143_s13] sm:$0xff] }
 0x6ca   :  { %v4864_v54 = vpop.eup %4863 }
 0x6cb   :  { %v978_v56 = vsel %vm318_vm4, %v4864_v54, 0.0 }
 0x6cc   :  { %979 = vadd.xlane.f32.xlu0 %v978_v56 }
 0x6e2   :  { %816 = vrot.lane.b32.xlu0 %v5143_v55, %s4951_s23 }
 0x6ed   :  { %v1223_v8 = vpop.xlane.xlu1 %1222 }
 0x6ee   :  { %v1227_v9 = vmul.f32 0.03125, %v1223_v8 }
 0x6f0   :  { %v1229_v12 = vsub.f32 %v1217_v43, %v1227_v9 }
 0x6f2   :  { %v1231_v15 = vmul.f32 %v1229_v12, %v1229_v12 }
 0x6f4   :  { %v1233_v16 = vsel %vm89_vm0, %v1231_v15, 0.0 }
 0x751   :  { %v813_v31 = vpop.xlane.xlu0 %812 }
 0x752   :  { %4865 = vrcp.f32 %v813_v31 }
 0x755   :  { %v980_v57 = vpop.xlane.xlu0 %979 }
 0x756   :  { %4867 = vrcp.f32 %v980_v57 }
 0x759   :  { %v817_v58 = vpop.permute.xlu0 %816 }
 0x75a   :  { %4659 = vmatpush3.msra.mxu1 %v817_v58 }
 0x75b   :  { %4668 = vmatprep.subr.mxu1 %v4946_v34 }
 0x75f   :  { %v4866_v59 = vpop.eup %4865 }
 0x760   :  { %v815_v60 = vmul.f32 %v4866_v59, %v4862_v52  ;;  %v1374_v52 = vld [vmem:[%s6143_s13 + $0x8] sm:$0xff] }
 0x762   :  { %4661 = vmatmul.mubr.msk.f32.vlgmr.msra.gmra.mxu1 %vm318_vm4, %v815_v60 }
 0x763   :  { %v4868_v62 = vpop.eup %4867  ;;  %4669 = vmatpush3.msra.mxu1 %v984_v61  ;;  %4670 = vmatprep.mubr.msk.f32.mxu1 %vm4947_vm2, %v4946_v34 }
 0x764   :  { %v982_v63 = vmul.f32 %v4868_v62, %v4864_v54  ;;  %4680 = vmatprep.subr.mxu1 %v4946_v34  ;;  %v4400_v54 = vld [vmem:[%s6142_s12] ss:$0 sm:$0xff] }
 0x766   :  { %4671 = vmatmul.mubr.msk.f32.vlgmr.msra.gmra.mxu1 %vm318_vm4, %v982_v63 }
 0x767   :  { %4681 = vmatpush3.msra.mxu1 %v5162_v10  ;;  %4684 = vmatprep.mubr.msk.f32.mxu1 %vm4947_vm2, %v4946_v34 }
 0x768   :  { %4682 = vmatprep.subr.mxu1 %v4946_v34 }
 0x769   :  { %4683 = vmatpush3.msra.mxu1 %v5172_v11 }
 0x76a   :  { %4698 = vmatprep.subr.mxu1 %v1380_v46 }
 0x822   :  { %v888_v55 = vpop.f32.mrf.mxu1 }
 0x823   :  { %4685 = vmatmul.mubr.msk.f32.vlgmr.msra.gmra.mxu1 %vm237_vm3, %v888_v55 }
 0x824   :  { %v4662_v0 = vpop.f32.mrf.mxu1  ;;  %4699 = vmatpush3.msra.mxu1 %v1380_v46  ;;  %v4406_v46 = vld [vmem:[%s6145_s15] ss:$0 sm:$0xff] }
 0x825   :  { %4700 = vmatprep.subr.mxu1 %v1379_v47 }
 0x826   :  { %v1055_v1 = vpop.f32.mrf.mxu1  ;;  %4701 = vmatpush3.msra.mxu1 %v1379_v47 }
 0x827   :  { %4678 = vmatmul.mubr.msk.f32.vlgmr.msra.gmra.mxu0 %vm237_vm3, %v1055_v1  ;;  %4702 = vmatprep.subr.mxu1 %v1378_v48 }
 0x828   :  { %v4672_v2 = vpop.f32.mrf.mxu1  ;;  %4688 = vmatpush3.msra.mxu0 %v1266_v32  ;;  %4703 = vmatpush3.msra.mxu1 %v1378_v48 }
 0x829   :  { %4689 = vmatprep.subr.mxu0 %v1265_v35  ;;  %4704 = vmatprep.subr.mxu1 %v1377_v49 }
 0x82a   :  { %4690 = vmatpush3.msra.mxu0 %v1265_v35  ;;  %4705 = vmatpush3.msra.mxu1 %v1377_v49  ;;  %v4410_v35 = vld [vmem:[%s6171_s2 + $0x30] sm:$0xff] }
 0x82b   :  { %4691 = vmatprep.subr.mxu0 %v1264_v36  ;;  %4706 = vmatprep.subr.mxu1 %v1376_v50 }
 0x82c   :  { %4692 = vmatpush3.msra.mxu0 %v1264_v36  ;;  %4707 = vmatpush3.msra.mxu1 %v1376_v50  ;;  %v4409_v36 = vld [vmem:[%s6171_s2 + $0x28] sm:$0xff] }
 0x82d   :  { %4693 = vmatprep.subr.mxu0 %v1263_v37  ;;  %4708 = vmatprep.subr.mxu1 %v1375_v51 }
 0x82e   :  { %4694 = vmatpush3.msra.mxu0 %v1263_v37  ;;  %4709 = vmatpush3.msra.mxu1 %v1375_v51  ;;  %v4408_v37 = vld [vmem:[%s6171_s2 + $0x20] sm:$0xff] }
 0x82f   :  { %4710 = vmatprep.subr.mxu1 %v1374_v52  ;;  %v4407_v51 = vld [vmem:[%s6146_s16] ss:$0 sm:$0xff] }
 0x830   :  { %4711 = vmatpush3.msra.mxu1 %v1374_v52 }
 0x831   :  { %4712 = vmatprep.subr.mxu1 %v1373_v53 }
 0x832   :  { %4713 = vmatpush3.msra.mxu1 %v1373_v53 }
 0x833   :  { %4733 = vmatprep.subr.mxu1 %v4946_v34 }
 0x8e3   :  { %v1201_v3 = vpop.f32.mrf.mxu1 }
 0x8e5   :  { %v4686_v4 = vpop.f32.mrf.mxu1 }
 0x8e7   :  { %v1128_v5 = vpop.f32.mrf.mxu0 }
 0x8e8   :  { %v1202_v6 = vadd.f32 %v1201_v3, %v1128_v5 }
 0x8e9   :  { %v4679_v7 = vpop.f32.mrf.mxu0 }
 0x8ea   :  { %1205 = vst.msk [vmem:[#allocation3 + $0x8] sm:$0xff] %vm89_vm0, %v1202_v6 }
 0x8f1   :  { %v1207_v10 = vld [vmem:[#allocation3 + $0x8] sm:$0xff] }
 0x8f2   :  { %v1216_v11 = vadd.f32 %v4397_v41, %v1207_v10 }
 0x8f4   :  { %v1218_v13 = vadd.f32 %v1216_v11, %v5105_v33  ;;  %v4398_v33 = vld [vmem:[%s6139_s9] ss:$0 sm:$0xff] }
 0x8f5   :  { %v4403_v11 = vld [vmem:[%s6144_s14] ss:$0 sm:$0xff] }
 0x8f6   :  { %v1224_v14 = vsel %vm89_vm0, %v1218_v13, 0.0 }
 0x8f7   :  { %1225 = vadd.xlane.f32.xlu0 %v1224_v14 }
 0x8fb   :  { %1234 = vadd.xlane.f32.xlu0 %v1233_v16 }
 0x980   :  { %v1226_v17 = vpop.xlane.xlu0 %1225 }
 0x981   :  { %v1228_v18 = vmul.f32 0.03125, %v1226_v17 }
 0x983   :  { %v1230_v19 = vsub.f32 %v1218_v13, %v1228_v18 }
 0x984   :  { %v1235_v20 = vpop.xlane.xlu0 %1234 }
 0x985   :  { %v1239_v21 = vmul.f32 0.03125, %v1235_v20  ;;  %v1232_v22 = vmul.f32 %v1230_v19, %v1230_v19 }
 0x987   :  { %v1241_v23 = vadd.f32 1e-12, %v1239_v21  ;;  %v1236_v24 = vsel %vm89_vm0, %v1232_v22, 0.0 }
 0x988   :  { %1237 = vadd.xlane.f32.xlu1 %v1236_v24 }
 0x989   :  { %4869 = vrsqrt.f32 %v1241_v23 }
 0x996   :  { %v4870_v25 = vpop.eup %4869 }
 0x997   :  { %v1245_v26 = vmul.f32 %v4870_v25, %v1229_v12 }
 0x999   :  { %v1253_v29 = vmul.f32 %v4398_v33, %v1245_v26 }
 0x99b   :  { %v5247_v30 = vadd.f32 %v4399_v28, %v1253_v29 }
 0x99d   :  { %4695 = vmatprep.mubr.msk.f32.mxu0 %vm89_vm0, %v5247_v30 }
 0xa11   :  { %v1238_v38 = vpop.xlane.xlu1 %1237 }
 0xa12   :  { %v1240_v39 = vmul.f32 0.03125, %v1238_v38 }
 0xa14   :  { %v1242_v40 = vadd.f32 1e-12, %v1240_v39 }
 0xa16   :  { %4871 = vrsqrt.f32 %v1242_v40 }
 0xa23   :  { %v4872_v41 = vpop.eup %4871 }
 0xa24   :  { %v1246_v42 = vmul.f32 %v4872_v41, %v1230_v19 }
 0xa26   :  { %v1254_v43 = vmul.f32 %v4398_v33, %v1246_v42 }
 0xa28   :  { %v1262_v44 = vadd.f32 %v4399_v28, %v1254_v43 }
 0xa2a   :  { %4696 = vmatmul.mubr.msk.f32.vlgmr.msra.gmra.mxu0 %vm89_vm0, %v1262_v44 }
 0xaea   :  { %v4697_v56 = vpop.f32.mrf.mxu0 }
 0xaeb   :  { %v1352_v31 = vadd.f32 %v4697_v56, %v4400_v54  ;;  %v4413_v56 = vld [vmem:[%s6174_s27 + $0x1] ss:$0 sm:$0xff]  ;;  %s4489_s27 = sld [smem:[#allocation5 + $0x82]] }
 0xaec   :  { %v1346_v57 = vpop.f32.mrf.mxu0 }
 0xaed   :  { %v1358_v58 = vmul.f32 0.044715, %v1352_v31  ;;  %v1347_v59 = vadd.f32 %v4400_v54, %v1346_v57  ;;  %v1356_v9 = vmul.f32 0.5, %v1352_v31 }
 0xaef   :  { %v1360_v60 = vmul.f32 %v1358_v58, %v1352_v31  ;;  %v1357_v61 = vmul.f32 0.044715, %v1347_v59  ;;  %v1355_v7 = vmul.f32 0.5, %v1347_v59 }
 0xaf1   :  { %v1362_v62 = vmul.f32 %v1360_v60, %v1352_v31  ;;  %v1359_v63 = vmul.f32 %v1357_v61, %v1347_v59  ;;  %p3823_p7 = scmp.gt.s32.totalorder %s4489_s27, 0 }
 0xaf3   :  { %v1364_v55 = vadd.f32 %v1362_v62, %v1352_v31  ;;  %v1361_v0 = vmul.f32 %v1359_v63, %v1347_v59 }
 0xaf5   :  { %v1366_v1 = vmul.f32 0.7978846, %v1364_v55  ;;  %v1363_v2 = vadd.f32 %v1361_v0, %v1347_v59 }
 0xaf7   :  { %4873 = vtanh.f32 %v1366_v1  ;;  %v1365_v3 = vmul.f32 0.7978846, %v1363_v2 }
 0xaf9   :  { %4875 = vtanh.f32 %v1365_v3 }
 0xb04   :  { %v4874_v4 = vpop.eup %4873 }
 0xb05   :  { %v1370_v6 = vadd.f32 1.0, %v4874_v4 }
 0xb06   :  { %v4876_v5 = vpop.eup %4875 }
 0xb07   :  { %v1369_v8 = vadd.f32 1.0, %v4876_v5  ;;  %v1372_v12 = vmul.f32 %v1370_v6, %v1356_v9 }
 0xb09   :  { %v1371_v10 = vmul.f32 %v1369_v8, %v1355_v7 }
 0xb0b   :  { %4714 = vmatprep.mubr.msk.f32.mxu1 %vm1388_vm5, %v1371_v10 }
 0xb0c   :  { %4715 = vmatmul.mubr.msk.f32.vlgmr.msra.gmra.mxu1 %vm1388_vm5, %v1372_v12 }
 0xb0d   :  { %4735 = vmatprep.mubr.msk.f32.mxu1 %vm4947_vm2, %v4946_v34 }
 0xbcc   :  { %v4716_v13 = vpop.f32.mrf.mxu1 }
 0xbcd   :  { %v1467_v14 = vadd.f32 %v4716_v13, %v4403_v11 }
 0xbce   :  { %v1461_v15 = vpop.f32.mrf.mxu1 }
 0xbcf   :  { %v1462_v16 = vadd.f32 %v4403_v11, %v1461_v15  ;;  %v1471_v17 = vadd.f32 %v1467_v14, %v1262_v44 }
 0xbd1   :  { %v1477_v18 = vsel %vm89_vm0, %v1471_v17, 0.0  ;;  %v1470_v19 = vadd.f32 %v1462_v16, %v5247_v30  ;;  %v4411_v30 = vld [vmem:[%s6171_s2 + $0x38] sm:$0xff] }
 0xbd2   :  { %1478 = vadd.xlane.f32.xlu1 %v1477_v18  ;;  %4717 = vmatprep.subr.mxu0 %v4411_v30 }
 0xbd3   :  { %v1474_v20 = vsel %vm89_vm0, %v1470_v19, 0.0  ;;  %4718 = vmatpush3.msra.mxu0 %v4411_v30 }
 0xbd4   :  { %1475 = vadd.xlane.f32.xlu0 %v1474_v20  ;;  %4719 = vmatprep.subr.mxu0 %v4410_v35 }
 0xbd5   :  { %4720 = vmatpush3.msra.mxu0 %v4410_v35 }
 0xbd6   :  { %4721 = vmatprep.subr.mxu0 %v4409_v36 }
 0xbd7   :  { %4722 = vmatpush3.msra.mxu0 %v4409_v36 }
 0xbd8   :  { %4723 = vmatprep.subr.mxu0 %v4408_v37 }
 0xbd9   :  { %4724 = vmatpush3.msra.mxu0 %v4408_v37 }
 0xbda   :  { %4728 = vmatprep.subr.mxu0 %v4946_v34 }
 0xc5b   :  { %v1479_v21 = vpop.xlane.xlu1 %1478 }
 0xc5c   :  { %v1481_v22 = vmul.f32 0.03125, %v1479_v21 }
 0xc5d   :  { %v1476_v23 = vpop.xlane.xlu0 %1475 }
 0xc5e   :  { %v1483_v24 = vsub.f32 %v1471_v17, %v1481_v22  ;;  %v1480_v25 = vmul.f32 0.03125, %v1476_v23 }
 0xc60   :  { %v1482_v33 = vsub.f32 %v1470_v19, %v1480_v25  ;;  %v1485_v26 = vmul.f32 %v1483_v24, %v1483_v24 }
 0xc62   :  { %v1489_v28 = vsel %vm89_vm0, %v1485_v26, 0.0  ;;  %v1484_v29 = vmul.f32 %v1482_v33, %v1482_v33  ;;  %v5375_v26 = vld [vmem:[%s6137_s7 + $0x28] sm:$0xff] }
 0xc63   :  { %1490 = vadd.xlane.f32.xlu1 %v1489_v28  ;;  %v5385_v28 = vld [vmem:[%s6137_s7 + $0x20] sm:$0xff] }
 0xc64   :  { %v1486_v32 = vsel %vm89_vm0, %v1484_v29, 0.0  ;;  %v4419_v29 = vld [vmem:[%s6137_s7 + $0x38] sm:$0xff] }
 0xc65   :  { %1487 = vadd.xlane.f32.xlu0 %v1486_v32  ;;  %v4418_v32 = vld [vmem:[%s6137_s7 + $0x30] sm:$0xff]  ;;  %s4493_s7 = sld [smem:[#allocation5 + $0x84]] }
 0xc6b   :  { %p3961_p11 = scmp.gt.s32.totalorder %s4493_s7, 0 }
 0xcec   :  { %v1491_v38 = vpop.xlane.xlu1 %1490 }
 0xced   :  { %v1493_v39 = vmul.f32 0.03125, %v1491_v38 }
 0xcee   :  { %v1488_v40 = vpop.xlane.xlu0 %1487 }
 0xcef   :  { %v1495_v41 = vadd.f32 1e-12, %v1493_v39  ;;  %v1492_v42 = vmul.f32 0.03125, %v1488_v40 }
 0xcf1   :  { %4877 = vrsqrt.f32 %v1495_v41  ;;  %v1494_v43 = vadd.f32 1e-12, %v1492_v42 }
 0xcf3   :  { %4879 = vrsqrt.f32 %v1494_v43 }
 0xcfe   :  { %v4878_v44 = vpop.eup %4877 }
 0xcff   :  { %v1499_v47 = vmul.f32 %v4878_v44, %v1483_v24 }
 0xd00   :  { %v4880_v48 = vpop.eup %4879 }
 0xd01   :  { %v1498_v49 = vmul.f32 %v4880_v48, %v1482_v33  ;;  %v1507_v50 = vmul.f32 %v4406_v46, %v1499_v47 }
 0xd03   :  { %v1506_v52 = vmul.f32 %v4406_v46, %v1498_v49  ;;  %v5325_v54 = vadd.f32 %v4407_v51, %v1507_v50 }
 0xd05   :  { %v5323_v53 = vadd.f32 %v4407_v51, %v1506_v52 }
 0xd07   :  { %4725 = vmatprep.mubr.msk.f32.mxu0 %vm89_vm0, %v5323_v53 }
 0xd08   :  { %4726 = vmatmul.mubr.msk.f32.vlgmr.msra.gmra.mxu0 %vm89_vm0, %v5325_v54 }
 0xd09   :  { %4730 = vmatprep.mubr.msk.f32.mxu0 %vm4947_vm2, %v4946_v34 }
 0xdc8   :  { %v4727_v31 = vpop.f32.mrf.mxu0 }
 0xdc9   :  { %v1607_v57 = vadd.f32 %v4727_v31, %v4413_v56 }
 0xdca   :  { %v1601_v58 = vpop.f32.mrf.mxu0 }
 0xdcb   :  { %1611 = vst.msk [vmem:[#allocation2 + $0x8] sm:$0xff] %vm225_vm1, %v1607_v57  ;;  %v1602_v59 = vadd.f32 %v4413_v56, %v1601_v58 }
 0xdcd   :  { %1610 = vst.msk [vmem:[#allocation2] sm:$0xff] %vm225_vm1, %v1602_v59 }
 0xdd2   :  { %v5356_v9 = vld [vmem:[#allocation2 + $0x8] sm:$0xff] }
 0xdd4   :  { %v1618_v60 = vld [vmem:[#allocation2] sm:$0xff] }
 0xdd5   :  { %1791 = vrot.lane.b32.xlu1 %v1618_v60, %s4948_s3  ;;  %1620 = vrot.lane.b32.xlu0 %v1618_v60, %s4949_s28 }
 0xdd9   :  { %1789 = vrot.lane.b32.xlu1 %v1618_v60, %s4950_s29 }
 0xe47   :  { %v1621_v61 = vpop.permute.xlu0 %1620  ;;  %v1792_v62 = vpop.permute.xlu1 %1791 }
 0xe48   :  { %4729 = vmatpush3.xpose.msk.msra.mxu0 %vm237_vm3, %v1621_v61 }
 0xe49   :  { %4738 = vmatprep.subr.mxu0 %v4946_v34 }
 0xe4b   :  { %4731 = vmatmul.mubr.msk.f32.vlgmr.msra.gmra.mxu0 %vm237_vm3, %v1618_v60  ;;  %v1790_v63 = vpop.permute.xlu1 %1789 }
 0xe4c   :  { %4739 = vmatpush3.xpose.msk.msra.mxu0 %vm237_vm3, %v1792_v62  ;;  %4740 = vmatprep.mubr.msk.f32.mxu0 %vm4947_vm2, %v4946_v34 }
 0xe4d   :  { %4748 = vmatprep.subr.mxu0 %v4946_v34 }
 0xe4f   :  { %4741 = vmatmul.mubr.msk.f32.vlgmr.msra.gmra.mxu0 %vm237_vm3, %v1790_v63 }
 0xe50   :  { %4752 = vmatprep.mubr.msk.f32.mxu0 %vm4947_vm2, %v4946_v34  ;;  %4749 = vmatpush3.msra.mxu0 %v4419_v29 }
 0xe51   :  { %4750 = vmatprep.subr.mxu0 %v4946_v34 }
 0xe52   :  { %4751 = vmatpush3.msra.mxu0 %v4418_v32 }
 0xe53   :  { %4762 = vmatprep.subr.mxu0 %v4946_v34 }
 0xf0b   :  { %v1692_v55 = vpop.f32.mrf.mxu0 }
 0xf0c   :  { %v1696_v0 = vmul.f32 0.25, %v1692_v55 }
 0xf0d   :  { %v4732_v1 = vpop.f32.mrf.mxu0 }
 0xf0e   :  { %v1701_v2 = vadd.f32 %v5136_v45, %v1696_v0 }
 0xf0f   :  { %v1863_v3 = vpop.f32.mrf.mxu0 }
 0xf10   :  { %v1867_v4 = vmul.f32 0.25, %v1863_v3  ;;  %v1702_v5 = vsel %vm318_vm4, %v1701_v2, -inf }
 0xf11   :  { %1703 = vmax.xlane.f32.xlu1 %v1702_v5  ;;  %v4742_v6 = vpop.f32.mrf.mxu0 }
 0xf12   :  { %v1868_v7 = vadd.f32 %v5136_v45, %v1867_v4 }
 0xf14   :  { %v1869_v8 = vsel %vm318_vm4, %v1868_v7, -inf }
 0xf15   :  { %1870 = vmax.xlane.f32.xlu0 %v1869_v8 }
 0xf22   :  { %1713 = vrot.lane.b32.xlu1 %v1618_v60, %s4951_s23 }
 0xf26   :  { %2106 = vrot.lane.b32.xlu1 %v5356_v9, %s4949_s28 }
 0xf2a   :  { %2277 = vrot.lane.b32.xlu1 %v5356_v9, %s4948_s3 }
 0xf2e   :  { %2275 = vrot.lane.b32.xlu1 %v5356_v9, %s4950_s29  ;;  %s5594_s29 = sld [smem:[#allocation5 + $0x83]] }
 0xf34   :  { %p3892_p9 = scmp.gt.s32.totalorder %s5594_s29, 0 }
 0xf36   :  { %s3893_s25 = scalar_select %p3892_p9, 1, 0 }
 0xf9a   :  { %v1704_v10 = vpop.xlane.xlu1 %1703 }
 0xf9b   :  { %v1705_v12 = vsub.f32 %v1701_v2, %v1704_v10 }
 0xf9d   :  { %v1706_v11 = vmul.f32 1.442695, %v1705_v12 }
 0xf9e   :  { %v1714_v45 = vpop.permute.xlu1 %1713  ;;  %v1871_v13 = vpop.xlane.xlu0 %1870 }
 0xf9f   :  { %4881 = vpow2.f32 %v1706_v11  ;;  %v1872_v14 = vsub.f32 %v1868_v7, %v1871_v13  ;;  %4734 = vmatpush3.msra.mxu1 %v1714_v45 }
 0xfa0   :  { %4743 = vmatprep.subr.mxu1 %v4946_v34 }
 0xfa1   :  { %v1873_v15 = vmul.f32 1.442695, %v1872_v14 }
 0xfa2   :  { %v2107_v30 = vpop.permute.xlu1 %2106 }
 0xfa3   :  { %4883 = vpow2.f32 %v1873_v15 }
 0xfa6   :  { %v2278_v38 = vpop.permute.xlu1 %2277 }
 0xfaa   :  { %v2276_v40 = vpop.permute.xlu1 %2275 }
 0xfac   :  { %v4882_v16 = vpop.eup %4881 }
 0xfad   :  { %v1708_v17 = vsel %vm318_vm4, %v4882_v16, 0.0 }
 0xfae   :  { %1709 = vadd.xlane.f32.xlu0 %v1708_v17 }
 0xfb0   :  { %v4884_v18 = vpop.eup %4883 }
 0xfb1   :  { %v1875_v19 = vsel %vm318_vm4, %v4884_v18, 0.0 }
 0xfb2   :  { %1876 = vadd.xlane.f32.xlu0 %v1875_v19 }
 0xfc8   :  { %1880 = vrot.lane.b32.xlu0 %v1618_v60, %s4952_s1  ;;  %v4439_v60 = vld [vmem:[%s6138_s8 + $0x1] ss:$0 sm:$0xff] }
0x1037   :  { %v1710_v20 = vpop.xlane.xlu0 %1709 }
0x1038   :  { %4885 = vrcp.f32 %v1710_v20 }
0x103b   :  { %v1877_v21 = vpop.xlane.xlu0 %1876 }
0x103c   :  { %4887 = vrcp.f32 %v1877_v21 }
0x103f   :  { %v1881_v24 = vpop.permute.xlu0 %1880 }
0x1045   :  { %v4886_v22 = vpop.eup %4885 }
0x1046   :  { %v1712_v23 = vmul.f32 %v4886_v22, %v4882_v16 }
0x1048   :  { %4736 = vmatmul.mubr.msk.f32.vlgmr.msra.gmra.mxu1 %vm318_vm4, %v1712_v23 }
0x1049   :  { %v4888_v25 = vpop.eup %4887  ;;  %4744 = vmatpush3.msra.mxu1 %v1881_v24  ;;  %4745 = vmatprep.mubr.msk.f32.mxu1 %vm4947_vm2, %v4946_v34 }
0x104a   :  { %v1879_v33 = vmul.f32 %v4888_v25, %v4884_v18  ;;  %4755 = vmatprep.subr.mxu1 %v4946_v34 }
0x104c   :  { %4746 = vmatmul.mubr.msk.f32.vlgmr.msra.gmra.mxu1 %vm318_vm4, %v1879_v33 }
0x104d   :  { %4756 = vmatpush3.msra.mxu1 %v5375_v26  ;;  %4759 = vmatprep.mubr.msk.f32.mxu1 %vm4947_vm2, %v4946_v34 }
0x104e   :  { %4757 = vmatprep.subr.mxu1 %v4946_v34 }
0x104f   :  { %4758 = vmatpush3.msra.mxu1 %v5385_v28 }
0x1050   :  { %4767 = vmatprep.subr.mxu1 %v4946_v34 }
0x1108   :  { %v1785_v35 = vpop.f32.mrf.mxu1 }
0x1109   :  { %4760 = vmatmul.mubr.msk.f32.vlgmr.msra.gmra.mxu1 %vm237_vm3, %v1785_v35 }
0x110a   :  { %v4737_v36 = vpop.f32.mrf.mxu1  ;;  %4769 = vmatprep.mubr.msk.f32.mxu1 %vm4947_vm2, %v4946_v34 }
0x110c   :  { %v1952_v37 = vpop.f32.mrf.mxu1 }
0x110d   :  { %4753 = vmatmul.mubr.msk.f32.vlgmr.msra.gmra.mxu0 %vm237_vm3, %v1952_v37 }
0x110e   :  { %4763 = vmatpush3.xpose.msk.msra.mxu0 %vm237_vm3, %v2107_v30  ;;  %v4747_v39 = vpop.f32.mrf.mxu1  ;;  %4764 = vmatprep.mubr.msk.f32.mxu0 %vm4947_vm2, %v4946_v34 }
0x110f   :  { %4772 = vmatprep.subr.mxu0 %v4946_v34 }
0x1111   :  { %4765 = vmatmul.mubr.msk.f32.vlgmr.msra.gmra.mxu0 %vm237_vm3, %v5356_v9 }
0x1112   :  { %4773 = vmatpush3.xpose.msk.msra.mxu0 %vm237_vm3, %v2278_v38  ;;  %4774 = vmatprep.mubr.msk.f32.mxu0 %vm4947_vm2, %v4946_v34 }
0x1113   :  { %4782 = vmatprep.subr.mxu0 %v4946_v34 }
0x1115   :  { %4775 = vmatmul.mubr.msk.f32.vlgmr.msra.gmra.mxu0 %vm237_vm3, %v2276_v40 }
0x1116   :  { %4783 = vmatpush3.msra.mxu0 %v4419_v29  ;;  %4786 = vmatprep.mubr.msk.f32.mxu0 %vm4947_vm2, %v4946_v34 }
0x1117   :  { %4784 = vmatprep.subr.mxu0 %v4946_v34 }
0x1118   :  { %4785 = vmatpush3.msra.mxu0 %v4418_v32 }
0x11c9   :  { %v2098_v41 = vpop.f32.mrf.mxu1 }
0x11cb   :  { %v4761_v42 = vpop.f32.mrf.mxu1 }
0x11cd   :  { %v2025_v43 = vpop.f32.mrf.mxu0 }
0x11ce   :  { %v2099_v44 = vadd.f32 %v2098_v41, %v2025_v43 }
0x11cf   :  { %v4754_v46 = vpop.f32.mrf.mxu0 }
0x11d0   :  { %2102 = vst.msk [vmem:[#allocation3] sm:$0xff] %vm89_vm0, %v2099_v44  ;;  %v4443_v44 = vld [vmem:[%s6140_s10 + $0x1] ss:$0 sm:$0xff]  ;;  %s3824_s10 = scalar_select %p3823_p7, 1, 0 }
0x11d1   :  { %v2178_v47 = vpop.f32.mrf.mxu0 }
0x11d2   :  { %v2182_v48 = vmul.f32 0.25, %v2178_v47 }
0x11d3   :  { %v4766_v49 = vpop.f32.mrf.mxu0 }
0x11d4   :  { %v2187_v50 = vadd.f32 %v5206_v27, %v2182_v48  ;;  %v4447_v48 = vld [vmem:[%s6141_s11 + $0x38] sm:$0xff]  ;;  %v4446_v49 = vld [vmem:[%s6141_s11 + $0x30] sm:$0xff] }
0x11d5   :  { %v2349_v51 = vpop.f32.mrf.mxu0  ;;  %4796 = vmatprep.subr.mxu0 %v4447_v48 }
0x11d6   :  { %v2353_v52 = vmul.f32 0.25, %v2349_v51  ;;  %v2188_v56 = vsel %vm318_vm4, %v2187_v50, -inf  ;;  %v4444_v51 = vld [vmem:[%s6141_s11 + $0x20] sm:$0xff] }
0x11d7   :  { %2189 = vmax.xlane.f32.xlu0 %v2188_v56  ;;  %v4776_v31 = vpop.f32.mrf.mxu0  ;;  %v2589_v59 = vld [vmem:[#allocation3] sm:$0xff] }
0x11d8   :  { %v2354_v57 = vadd.f32 %v5206_v27, %v2353_v52  ;;  %v2599_v61 = vadd.f32 %v4439_v60, %v2589_v59 }
0x11da   :  { %v2355_v58 = vsel %vm318_vm4, %v2354_v57, -inf  ;;  %v2601_v62 = vadd.f32 %v2599_v61, %v5323_v53  ;;  %v4459_v61 = vld [vmem:[%s6143_s13 + $0x78] sm:$0xff] }
0x11db   :  { %2356 = vmax.xlane.f32.xlu1 %v2355_v58 }
0x11dc   :  { %v2607_v63 = vsel %vm89_vm0, %v2601_v62, 0.0 }
0x11ec   :  { %2366 = vrot.lane.b32.xlu1 %v5356_v9, %s4952_s1 }
0x1210   :  { %2608 = vadd.xlane.f32.xlu1 %v2607_v63  ;;  %v4457_v63 = vld [vmem:[%s6143_s13 + $0x68] sm:$0xff] }
0x1260   :  { %v2190_v55 = vpop.xlane.xlu0 %2189 }
0x1261   :  { %v2191_v0 = vsub.f32 %v2187_v50, %v2190_v55  ;;  %v4445_v50 = vld [vmem:[%s6141_s11 + $0x28] sm:$0xff]  ;;  %v4456_v55 = vld [vmem:[%s6143_s13 + $0x60] sm:$0xff] }
0x1263   :  { %v2192_v27 = vmul.f32 1.442695, %v2191_v0  ;;  %v4455_v0 = vld [vmem:[%s6143_s13 + $0x58] sm:$0xff] }
0x1264   :  { %v2357_v1 = vpop.xlane.xlu1 %2356 }
0x1265   :  { %4889 = vpow2.f32 %v2192_v27  ;;  %v2358_v2 = vsub.f32 %v2354_v57, %v2357_v1  ;;  %v4454_v27 = vld [vmem:[%s6143_s13 + $0x50] sm:$0xff]  ;;  %v4453_v1 = vld [vmem:[%s6143_s13 + $0x48] sm:$0xff] }
0x1267   :  { %v2359_v3 = vmul.f32 1.442695, %v2358_v2  ;;  %v4452_v2 = vld [vmem:[%s6143_s13 + $0x40] sm:$0xff] }
0x1268   :  { %v2367_v45 = vpop.permute.xlu1 %2366 }
0x1269   :  { %4891 = vpow2.f32 %v2359_v3  ;;  %v4449_v3 = vld [vmem:[%s6142_s12 + $0x1] ss:$0 sm:$0xff] }
0x1272   :  { %v4890_v4 = vpop.eup %4889 }
0x1273   :  { %v2194_v5 = vsel %vm318_vm4, %v4890_v4, 0.0 }
0x1274   :  { %2195 = vadd.xlane.f32.xlu0 %v2194_v5 }
0x1276   :  { %v4892_v6 = vpop.eup %4891 }
0x1277   :  { %v2361_v7 = vsel %vm318_vm4, %v4892_v6, 0.0 }
0x1278   :  { %2362 = vadd.xlane.f32.xlu0 %v2361_v7 }
0x128e   :  { %2199 = vrot.lane.b32.xlu0 %v5356_v9, %s4951_s23  ;;  %s3962_s23 = scalar_select %p3961_p11, 1, 0 }
0x1299   :  { %v2609_v23 = vpop.xlane.xlu1 %2608 }
0x129a   :  { %v2613_v24 = vmul.f32 0.03125, %v2609_v23 }
0x129c   :  { %v2615_v25 = vsub.f32 %v2601_v62, %v2613_v24  ;;  %v4458_v62 = vld [vmem:[%s6143_s13 + $0x70] sm:$0xff]  ;;  %v4461_v24 = vld [vmem:[%s6144_s14 + $0x1] ss:$0 sm:$0xff] }
0x129e   :  { %v2617_v29 = vmul.f32 %v2615_v25, %v2615_v25 }
0x12a0   :  { %v2619_v32 = vsel %vm89_vm0, %v2617_v29, 0.0 }
0x12fd   :  { %v2196_v53 = vpop.xlane.xlu0 %2195 }
0x12fe   :  { %4893 = vrcp.f32 %v2196_v53 }
0x1301   :  { %v2363_v8 = vpop.xlane.xlu0 %2362 }
0x1302   :  { %4895 = vrcp.f32 %v2363_v8 }
0x1305   :  { %v2200_v10 = vpop.permute.xlu0 %2199 }
0x1306   :  { %4768 = vmatpush3.msra.mxu1 %v2200_v10 }
0x1307   :  { %4777 = vmatprep.subr.mxu1 %v4946_v34 }
0x130b   :  { %v4894_v12 = vpop.eup %4893 }
0x130c   :  { %v2198_v11 = vmul.f32 %v4894_v12, %v4890_v4 }
0x130e   :  { %4770 = vmatmul.mubr.msk.f32.vlgmr.msra.gmra.mxu1 %vm318_vm4, %v2198_v11 }
0x130f   :  { %v4896_v13 = vpop.eup %4895  ;;  %4778 = vmatpush3.msra.mxu1 %v2367_v45  ;;  %4779 = vmatprep.mubr.msk.f32.mxu1 %vm4947_vm2, %v4946_v34 }
0x1310   :  { %v2365_v14 = vmul.f32 %v4896_v13, %v4892_v6  ;;  %4789 = vmatprep.subr.mxu1 %v4946_v34 }
0x1312   :  { %4780 = vmatmul.mubr.msk.f32.vlgmr.msra.gmra.mxu1 %vm318_vm4, %v2365_v14 }
0x1313   :  { %4790 = vmatpush3.msra.mxu1 %v5375_v26  ;;  %4793 = vmatprep.mubr.msk.f32.mxu1 %vm4947_vm2, %v4946_v34 }
0x1314   :  { %4791 = vmatprep.subr.mxu1 %v4946_v34 }
0x1315   :  { %4792 = vmatpush3.msra.mxu1 %v5385_v28 }
0x1316   :  { %4807 = vmatprep.subr.mxu1 %v4459_v61 }
0x13ce   :  { %v2271_v9 = vpop.f32.mrf.mxu1 }
0x13cf   :  { %4794 = vmatmul.mubr.msk.f32.vlgmr.msra.gmra.mxu1 %vm237_vm3, %v2271_v9 }
0x13d0   :  { %v4771_v15 = vpop.f32.mrf.mxu1  ;;  %4808 = vmatpush3.msra.mxu1 %v4459_v61 }
0x13d1   :  { %4809 = vmatprep.subr.mxu1 %v4458_v62 }
0x13d2   :  { %v2438_v16 = vpop.f32.mrf.mxu1  ;;  %4810 = vmatpush3.msra.mxu1 %v4458_v62 }
0x13d3   :  { %4787 = vmatmul.mubr.msk.f32.vlgmr.msra.gmra.mxu0 %vm237_vm3, %v2438_v16  ;;  %4811 = vmatprep.subr.mxu1 %v4457_v63 }
0x13d4   :  { %v4781_v17 = vpop.f32.mrf.mxu1  ;;  %4797 = vmatpush3.msra.mxu0 %v4447_v48  ;;  %4812 = vmatpush3.msra.mxu1 %v4457_v63  ;;  %v2907_v48 = vld [vmem:[%s6147_s17] sm:$0xff] }
0x13d5   :  { %4798 = vmatprep.subr.mxu0 %v4446_v49  ;;  %4813 = vmatprep.subr.mxu1 %v4456_v55  ;;  %v4467_v63 = vld [vmem:[%s6146_s16 + $0x1] ss:$0 sm:$0xff]  ;;  %s5654_s16 = sld [smem:[#allocation5 + $0x85]] }
0x13d6   :  { %4799 = vmatpush3.msra.mxu0 %v4446_v49  ;;  %4814 = vmatpush3.msra.mxu1 %v4456_v55 }
0x13d7   :  { %4800 = vmatprep.subr.mxu0 %v4445_v50  ;;  %4815 = vmatprep.subr.mxu1 %v4455_v0 }
0x13d8   :  { %4801 = vmatpush3.msra.mxu0 %v4445_v50  ;;  %4816 = vmatpush3.msra.mxu1 %v4455_v0 }
0x13d9   :  { %4802 = vmatprep.subr.mxu0 %v4444_v51  ;;  %4817 = vmatprep.subr.mxu1 %v4454_v27 }
0x13da   :  { %4803 = vmatpush3.msra.mxu0 %v4444_v51  ;;  %4818 = vmatpush3.msra.mxu1 %v4454_v27 }
0x13db   :  { %4819 = vmatprep.subr.mxu1 %v4453_v1  ;;  %p4030_p13 = scmp.gt.s32.totalorder %s5654_s16, 0 }
0x13dc   :  { %4820 = vmatpush3.msra.mxu1 %v4453_v1  ;;  %v4468_v1 = vld [vmem:[%s6148_s18] ss:$0 sm:$0xff]  ;;  %s5537_s18 = sld [smem:[#allocation5 + $0x81]] }
0x13dd   :  { %4821 = vmatprep.subr.mxu1 %v4452_v2 }
0x13de   :  { %4822 = vmatpush3.msra.mxu1 %v4452_v2 }
0x13e2   :  { %p3754_p5 = scmp.gt.s32.totalorder %s5537_s18, 0  ;;  %s4195_s3 = sadd.s32 %s4500_s5, %s5537_s18 }
0x13e3   :  { %s5570_s13 = sadd.s32 %s4489_s27, %s4195_s3  ;;  %s5656_s18 = sld [smem:[#allocation5 + $0x5]] }
0x13e4   :  { %s4197_s0 = sadd.s32 %s5594_s29, %s5570_s13  ;;  %s4482_s5 = sld [smem:[#allocation5 + $0x6]] }
0x13e5   :  { %s5627_s30 = sadd.s32 %s4493_s7, %s4197_s0  ;;  %s5716_s13 = sld [smem:[#allocation5 + $0x7]] }
0x13e6   :  { %s4199_s1 = sadd.s32 %s5654_s16, %s5627_s30 }
0x13e9   :  { %p3350_p0 = scmp.gt.s32.totalorder %s5656_s18, 0 }
0x13ea   :  { %p3419_p2 = scmp.gt.s32.totalorder %s4482_s5, 0 }
0x13eb   :  { %p3488_p4 = scmp.gt.s32.totalorder %s5716_s13, 0 }
0x13ec   :  { %s3420_s3 = scalar_select %p3419_p2, 1, 0 }
0x13ed   :  { %s3489_s29 = scalar_select %p3488_p4, 1, 0 }
0x148f   :  { %v2584_v18 = vpop.f32.mrf.mxu1 }
0x1491   :  { %v4795_v19 = vpop.f32.mrf.mxu1 }
0x1493   :  { %v2511_v20 = vpop.f32.mrf.mxu0 }
0x1494   :  { %v2585_v21 = vadd.f32 %v2584_v18, %v2511_v20 }
0x1495   :  { %v4788_v22 = vpop.f32.mrf.mxu0 }
0x1496   :  { %2588 = vst.msk [vmem:[#allocation3 + $0x8] sm:$0xff] %vm89_vm0, %v2585_v21 }
0x149d   :  { %v2590_v34 = vld [vmem:[#allocation3 + $0x8] sm:$0xff] }
0x149e   :  { %v2600_v33 = vadd.f32 %v4439_v60, %v2590_v34 }
0x14a0   :  { %v2602_v26 = vadd.f32 %v2600_v33, %v5325_v54  ;;  %v4442_v54 = vld [vmem:[%s6139_s9 + $0x1] ss:$0 sm:$0xff]  ;;  %s4474_s9 = sld [smem:[#allocation5 + $0x2]] }
0x14a2   :  { %v2610_v28 = vsel %vm89_vm0, %v2602_v26, 0.0 }
0x14a3   :  { %2611 = vadd.xlane.f32.xlu0 %v2610_v28 }
0x14a6   :  { %p3143_p8 = scmp.gt.s32.totalorder %s4474_s9, 0 }
0x14a7   :  { %2620 = vadd.xlane.f32.xlu0 %v2619_v32 }
0x14a8   :  { %s3144_s28 = scalar_select %p3143_p8, 1, 0 }
0x152c   :  { %v2612_v30 = vpop.xlane.xlu0 %2611 }
0x152d   :  { %v2614_v35 = vmul.f32 0.03125, %v2612_v30 }
0x152f   :  { %v2616_v36 = vsub.f32 %v2602_v26, %v2614_v35 }
0x1530   :  { %v2621_v37 = vpop.xlane.xlu0 %2620 }
0x1531   :  { %v2625_v38 = vmul.f32 0.03125, %v2621_v37  ;;  %v2618_v39 = vmul.f32 %v2616_v36, %v2616_v36 }
0x1533   :  { %v2627_v40 = vadd.f32 1e-12, %v2625_v38  ;;  %v2622_v41 = vsel %vm89_vm0, %v2618_v39, 0.0 }
0x1534   :  { %2623 = vadd.xlane.f32.xlu1 %v2622_v41 }
0x1535   :  { %4897 = vrsqrt.f32 %v2627_v40 }
0x1542   :  { %v4898_v42 = vpop.eup %4897 }
0x1543   :  { %v2631_v43 = vmul.f32 %v4898_v42, %v2615_v25 }
0x1545   :  { %v2639_v46 = vmul.f32 %v4442_v54, %v2631_v43 }
0x1547   :  { %v5455_v47 = vadd.f32 %v4443_v44, %v2639_v46  ;;  %v2909_v46 = vld [vmem:[%s6147_s17 + $0x10] sm:$0xff] }
0x1549   :  { %4804 = vmatprep.mubr.msk.f32.mxu0 %vm89_vm0, %v5455_v47 }
0x15bd   :  { %v2624_v52 = vpop.xlane.xlu1 %2623 }
0x15be   :  { %v2626_v56 = vmul.f32 0.03125, %v2624_v52 }
0x15c0   :  { %v2628_v31 = vadd.f32 1e-12, %v2626_v56 }
0x15c2   :  { %4899 = vrsqrt.f32 %v2628_v31 }
0x15cf   :  { %v4900_v57 = vpop.eup %4899 }
0x15d0   :  { %v2632_v58 = vmul.f32 %v4900_v57, %v2616_v36 }
0x15d2   :  { %v2640_v59 = vmul.f32 %v4442_v54, %v2632_v58  ;;  %v4466_v58 = vld [vmem:[%s6145_s15 + $0x1] ss:$0 sm:$0xff] }
0x15d4   :  { %v2648_v60 = vadd.f32 %v4443_v44, %v2640_v59  ;;  %v2910_v44 = vld [vmem:[%s6147_s17 + $0x18] sm:$0xff] }
0x15d5   :  { %4826 = vmatprep.subr.mxu0 %v2910_v44 }
0x15d6   :  { %4805 = vmatmul.mubr.msk.f32.vlgmr.msra.gmra.mxu0 %vm89_vm0, %v2648_v60 }
0x15d7   :  { %4827 = vmatpush3.msra.mxu0 %v2910_v44 }
0x15d8   :  { %4828 = vmatprep.subr.mxu0 %v2909_v46 }
0x15d9   :  { %4829 = vmatpush3.msra.mxu0 %v2909_v46 }
0x1696   :  { %v4806_v4 = vpop.f32.mrf.mxu0 }
0x1697   :  { %v2740_v5 = vadd.f32 %v4806_v4, %v4449_v3 }
0x1698   :  { %v2734_v6 = vpop.f32.mrf.mxu0 }
0x1699   :  { %v2746_v7 = vmul.f32 0.044715, %v2740_v5  ;;  %v2735_v53 = vadd.f32 %v4449_v3, %v2734_v6  ;;  %v2744_v21 = vmul.f32 0.5, %v2740_v5  ;;  %v3002_v6 = vld [vmem:[%s6149_s19] sm:$0x1]  ;;  %s5544_s19 = sld [smem:[#allocation5 + $0x1]] }
0x169b   :  { %v2748_v8 = vmul.f32 %v2746_v7, %v2740_v5  ;;  %v2745_v10 = vmul.f32 0.044715, %v2735_v53  ;;  %v2743_v19 = vmul.f32 0.5, %v2735_v53 }
0x169d   :  { %v2750_v12 = vmul.f32 %v2748_v8, %v2740_v5  ;;  %v2747_v11 = vmul.f32 %v2745_v10, %v2735_v53 }
0x169f   :  { %v2752_v45 = vadd.f32 %v2750_v12, %v2740_v5  ;;  %v2749_v13 = vmul.f32 %v2747_v11, %v2735_v53  ;;  %v4953_v12 = vmov 0   ;;  %p3074_p6 = scmp.gt.s32.totalorder %s5544_s19, 0  ;;  %s3516_s12 = sadd.s32 %s5544_s19, %s3515_s24 }
0x16a0   :  { %s5572_s14 = sadd.s32 %s4474_s9, %s3516_s12  ;;  %s5714_s12 = sld [smem:[#allocation5 + $0x87]] }
0x16a1   :  { %v2754_v14 = vmul.f32 0.7978846, %v2752_v45  ;;  %v2751_v9 = vadd.f32 %v2749_v13, %v2735_v53  ;;  %v5542_v13 = vld [vmem:[%s6151_s21] sm:$0xff]  ;;  %s3755_s21 = scalar_select %p3754_p5, 1, 0 }
0x16a2   :  { %s3075_s4 = scalar_select %p3074_p6, 1, 0 }
0x16a3   :  { %4901 = vtanh.f32 %v2754_v14  ;;  %v2753_v15 = vmul.f32 0.7978846, %v2751_v9  ;;  %s3518_s11 = sadd.s32 %s5596_s6, %s5572_s14 }
0x16a4   :  { %s4031_s19 = scalar_select %p4030_p13, 1, 0 }
0x16a5   :  { %4903 = vtanh.f32 %v2753_v15 }
0x16a6   :  { %p4168_p3 = scmp.gt.s32.totalorder %s5714_s12, 0 }
0x16b0   :  { %v4902_v16 = vpop.eup %4901 }
0x16b1   :  { %v2758_v18 = vadd.f32 1.0, %v4902_v16 }
0x16b2   :  { %v4904_v17 = vpop.eup %4903 }
0x16b3   :  { %v2757_v20 = vadd.f32 1.0, %v4904_v17  ;;  %v2760_v23 = vmul.f32 %v2758_v18, %v2744_v21 }
0x16b5   :  { %v2759_v22 = vmul.f32 %v2757_v20, %v2743_v19 }
0x16b7   :  { %4823 = vmatprep.mubr.msk.f32.mxu1 %vm1388_vm5, %v2759_v22 }
0x16b8   :  { %4824 = vmatmul.mubr.msk.f32.vlgmr.msra.gmra.mxu1 %vm1388_vm5, %v2760_v23 }
0x1778   :  { %v4825_v34 = vpop.f32.mrf.mxu1 }
0x1779   :  { %v2856_v25 = vadd.f32 %v4825_v34, %v4461_v24 }
0x177a   :  { %v2850_v33 = vpop.f32.mrf.mxu1 }
0x177b   :  { %v2851_v26 = vadd.f32 %v4461_v24, %v2850_v33  ;;  %v2860_v28 = vadd.f32 %v2856_v25, %v2648_v60 }
0x177d   :  { %v2868_v29 = vsel %vm89_vm0, %v2860_v28, 0.0  ;;  %v2859_v32 = vadd.f32 %v2851_v26, %v5455_v47  ;;  %v2908_v47 = vld [vmem:[%s6147_s17 + $0x8] sm:$0xff]  ;;  %s4478_s17 = sld [smem:[#allocation5 + $0x4]] }
0x177e   :  { %2869 = vadd.xlane.f32.xlu1 %v2868_v29  ;;  %4830 = vmatprep.subr.mxu0 %v2908_v47  ;;  %v3756_v29 = vstv %s3755_s21  ;;  %s3351_s21 = scalar_select %p3350_p0, 1, 0 }
0x177f   :  { %v2865_v30 = vsel %vm89_vm0, %v2859_v32, 0.0  ;;  %4831 = vmatpush3.msra.mxu0 %v2908_v47  ;;  %vm3757_vm6 = vcmp.eq.s32.totalorder %v3756_v29, 1 }
0x1780   :  { %2866 = vadd.xlane.f32.xlu0 %v2865_v30  ;;  %4832 = vmatprep.subr.mxu0 %v2907_v48 }
0x1781   :  { %4833 = vmatpush3.msra.mxu0 %v2907_v48 }
0x1783   :  { %s5632_s8 = sadd.s32 %s4478_s17, %s3518_s11  ;;  %p3281_p12 = scmp.gt.s32.totalorder %s4478_s17, 0 }
0x1784   :  { %s3520_s2 = sadd.s32 %s5656_s18, %s5632_s8 }
0x1785   :  { %s3282_s15 = scalar_select %p3281_p12, 1, 0 }
0x1786   :  { %s5692_s27 = sadd.s32 %s4482_s5, %s3520_s2 }
0x1807   :  { %v2870_v35 = vpop.xlane.xlu1 %2869 }
0x1808   :  { %v2872_v36 = vmul.f32 0.03125, %v2870_v35  ;;  %v3076_v35 = vstv %s3075_s4  ;;  %s4497_s4 = sld [smem:[#allocation5 + $0x86]] }
0x1809   :  { %v2867_v37 = vpop.xlane.xlu0 %2866  ;;  %vm3077_vm7 = vcmp.eq.s32.totalorder %v3076_v35, 1 }
0x180a   :  { %v2874_v38 = vsub.f32 %v2860_v28, %v2872_v36  ;;  %v2871_v39 = vmul.f32 0.03125, %v2867_v37 }
0x180c   :  { %v2873_v40 = vsub.f32 %v2859_v32, %v2871_v39  ;;  %v2876_v41 = vmul.f32 %v2874_v38, %v2874_v38 }
0x180e   :  { %v2880_v42 = vsel %vm89_vm0, %v2876_v41, 0.0  ;;  %v2875_v54 = vmul.f32 %v2873_v40, %v2873_v40  ;;  %s5687_s24 = sadd.s32 %s4497_s4, %s4199_s1  ;;  %p4099_p1 = scmp.gt.s32.totalorder %s4497_s4, 0 }
0x180f   :  { %2881 = vadd.xlane.f32.xlu1 %v2880_v42  ;;  %s4201_s14 = sadd.s32 %s5714_s12, %s5687_s24  ;;  %s4954_s4 = smov [#allocation8]  }
0x1810   :  { %v2877_v43 = vsel %vm89_vm0, %v2875_v54, 0.0  ;;  %s4100_s9 = scalar_select %p4099_p1, 1, 0 }
0x1811   :  { %2878 = vadd.xlane.f32.xlu0 %v2877_v43  ;;  %s4365_s5 = sshll.u32 %s4954_s4, 4  ;;  %s4366_s5 = int_to_ptr.vmem [resolvable:$true] %s4365_s5 }
0x1812   :  { %s4921_s24 = scalar_lea.vmem %s4366_s5, 32 }
0x1898   :  { %v2882_v49 = vpop.xlane.xlu1 %2881 }
0x1899   :  { %v2884_v50 = vmul.f32 0.03125, %v2882_v49 }
0x189a   :  { %v2879_v51 = vpop.xlane.xlu0 %2878 }
0x189b   :  { %v2886_v52 = vadd.f32 1e-12, %v2884_v50  ;;  %v2883_v56 = vmul.f32 0.03125, %v2879_v51 }
0x189d   :  { %4905 = vrsqrt.f32 %v2886_v52  ;;  %v2885_v31 = vadd.f32 1e-12, %v2883_v56 }
0x189f   :  { %4907 = vrsqrt.f32 %v2885_v31 }
0x18aa   :  { %v4906_v57 = vpop.eup %4905 }
0x18ab   :  { %v2890_v59 = vmul.f32 %v4906_v57, %v2874_v38 }
0x18ac   :  { %v4908_v60 = vpop.eup %4907 }
0x18ad   :  { %v2889_v61 = vmul.f32 %v4908_v60, %v2873_v40  ;;  %v2898_v62 = vmul.f32 %v4466_v58, %v2890_v59 }
0x18af   :  { %v2897_v55 = vmul.f32 %v4466_v58, %v2889_v61  ;;  %v2906_v27 = vadd.f32 %v4467_v63, %v2898_v62  ;;  %v3825_v62 = vstv %s3824_s10  ;;  %s3522_s10 = sadd.s32 %s5716_s13, %s5692_s27 }
0x18b0   :  { %vm3826_vm10 = vcmp.eq.s32.totalorder %v3825_v62, 1  ;;  %s5785_s11 = sadd.s32 4294967295, %s3522_s10 }
0x18b1   :  { %v2905_v0 = vadd.f32 %v4467_v63, %v2897_v55  ;;  %p3524_p6 = scmp.ge.s32.totalorder %s5785_s11, 7  ;;  %p3547_p8 = scmp.ge.s32.totalorder %s5785_s11, 6 }
0x18b2   :  { %p3570_p10 = scmp.ge.s32.totalorder %s5785_s11, 5  ;;  %p3593_p11 = scmp.ge.s32.totalorder %s5785_s11, 4 }
0x18b3   :  { %4834 = vmatprep.mubr.msk.f32.mxu0 %vm89_vm0, %v2905_v0  ;;  %v3145_v0 = vstv %s3144_s28  ;;  %s4169_s28 = scalar_select %p4168_p3, 1, 0 }
0x18b4   :  { %4835 = vmatmul.mubr.msk.f32.vlgmr.msra.gmra.mxu0 %vm89_vm0, %v2906_v27  ;;  %vm3146_vm11 = vcmp.eq.s32.totalorder %v3145_v0, 1  ;;  %s3549_s17 = scalar_select %p3547_p8, 1, 0 }
0x18b5   :  { %s3572_s8 = scalar_select %p3570_p10, 1, 0 }
0x18b6   :  { %p3616_p13 = scmp.ge.s32.totalorder %s5785_s11, 3  ;;  %p3639_p1 = scmp.ge.s32.totalorder %s5785_s11, 2 }
0x18b7   :  { %p3662_p3 = scmp.ge.s32.totalorder %s5785_s11, 1 }
0x18b8   :  { %s3618_s16 = scalar_select %p3616_p13, 1, 0 }
0x18b9   :  { %s3641_s1 = scalar_select %p3639_p1, 1, 0 }
0x1974   :  { %v4836_v2 = vpop.f32.mrf.mxu0 }
0x1975   :  { %v2996_v3 = vadd.f32 %v4836_v2, %v4468_v1 }
0x1976   :  { %v2990_v4 = vpop.f32.mrf.mxu0 }
0x1977   :  { %3000 = vst.msk [vmem:[#allocation4 + $0x8] sm:$0xff] %vm318_vm4, %v2996_v3  ;;  %v2991_v5 = vadd.f32 %v4468_v1, %v2990_v4 }
0x1979   :  { %2999 = vst.msk [vmem:[#allocation4] sm:$0xff] %vm318_vm4, %v2991_v5 }
0x197e   :  { %v3688_v7 = vld [vmem:[#allocation4 + $0x8] sm:$0x1]  ;;  %v4486_v15 = vld [vmem:[#allocation4 + $0x9] ss:$0 sm:$0xff]  ;;  %v4488_v44 = vld [vmem:[#allocation4 + $0xa] ss:$0 sm:$0xff] }
0x197f   :  { %v3689_v53 = vadd.f32 %v3688_v7, %v3002_v6 }
0x1980   :  { %v3008_v8 = vld [vmem:[#allocation4] sm:$0x1]  ;;  %v4471_v19 = vld [vmem:[#allocation4 + $0x1] ss:$0 sm:$0xff]  ;;  %v4473_v49 = vld [vmem:[#allocation4 + $0x2] ss:$0 sm:$0xff] }
0x1981   :  { %3691 = vxpose.xlu1.b32.start.end [1/1] (short) (narrow) %v3689_v53, 8  ;;  %v3009_v10 = vadd.f32 %v3008_v8, %v3002_v6  ;;  %v4490_v8 = vld [vmem:[#allocation4 + $0xb] ss:$0 sm:$0xff] }
0x1983   :  { %3011 = vxpose.xlu0.b32.start.end [1/1] (short) (narrow) %v3009_v10, 8 }
0x199f   :  { %4848 = vset.pattern.permute.xlu1 %v4953_v12 }
0x19ac   :  { %4847 = vset.pattern.permute.xlu0 %v4953_v12 }
0x19fd   :  { %v3707_v11 = vpop.trf.xlu1 }
0x19fe   :  { %3725 = vperm.xlu1 %4848, %v3707_v11  }
0x19ff   :  { %v3027_v45 = vpop.trf.xlu0 }
0x1a00   :  { %3045 = vperm.xlu0 %4847, %v3027_v45   ;;  %v4475_v45 = vld [vmem:[#allocation4 + $0x3] ss:$0 sm:$0xff] }
0x1a79   :  { %v3726_v14 = vpop.permute.xlu1 %3725 }
0x1a7a   :  { %v3728_v9 = vadd.f32 %v3726_v14, %v5542_v13 }
0x1a7b   :  { %v3046_v16 = vpop.permute.xlu0 %3045 }
0x1a7c   :  { %v5547_v17 = vadd.f32 %v4486_v15, %v3728_v9  ;;  %v3048_v18 = vadd.f32 %v3046_v16, %v5542_v13 }
0x1a7e   :  { %v3734_v20 = vsel %vm318_vm4, %v5547_v17, -inf  ;;  %v5553_v21 = vadd.f32 %v4471_v19, %v3048_v18 }
0x1a7f   :  { %v3735_v22 = vrot.slane %v3734_v20, 4 }
0x1a80   :  { %v3054_v23 = vsel %vm318_vm4, %v5553_v21, -inf }
0x1a81   :  { %v3736_v24 = vmax.f32 %v3734_v20, %v3735_v22  ;;  %v3055_v34 = vrot.slane %v3054_v23, 4 }
0x1a83   :  { %v3737_v25 = vrot.slane %v3736_v24, 2  ;;  %v3056_v33 = vmax.f32 %v3054_v23, %v3055_v34  ;;  %v3894_v34 = vstv %s3893_s25 }
0x1a84   :  { %vm3895_vm14 = vcmp.eq.s32.totalorder %v3894_v34, 1 }
0x1a85   :  { %v3738_v26 = vmax.f32 %v3736_v24, %v3737_v25  ;;  %v3057_v28 = vrot.slane %v3056_v33, 2 }
0x1a87   :  { %v3739_v32 = vrot.slane %v3738_v26, 1  ;;  %v3058_v30 = vmax.f32 %v3056_v33, %v3057_v28 }
0x1a89   :  { %v5558_v36 = vmax.f32 %v3738_v26, %v3739_v32  ;;  %v3059_v37 = vrot.slane %v3058_v30, 1  ;;  %v3214_v26 = vstv %s3213_s26  ;;  %s3526_s26 = scalar_select %p3524_p6, 1, 0 }
0x1a8a   :  { %vm3215_vm15 = vcmp.eq.s32.totalorder %v3214_v26, 1  ;;  %v4032_v26 = vstv %s4031_s19  ;;  %s3664_s19 = scalar_select %p3662_p3, 1, 0 }
0x1a8b   :  { %v5562_v38 = vmax.f32 %v3058_v30, %v3059_v37  ;;  %v3758_v39 = vsel %vm3757_vm6, %v5558_v36, %v3689_v53  ;;  %p4926_p6 = scmp.lt.s32.totalorder %s4366_s5, %s4366_s5 }
0x1a8c   :  { %3760 = vxpose.xlu0.b32.start.end [1/1] (short) (narrow) %v3758_v39, 8 }
0x1a8d   :  { %v3078_v40 = vsel %vm3077_vm7, %v5562_v38, %v3009_v10  ;;  %vm4033_vm7 = vcmp.eq.s32.totalorder %v4032_v26, 1  ;;  %v4483_v26 = vld [vmem:[#allocation4 + $0x7] ss:$0 sm:$0xff] }
0x1a8e   :  { %3080 = vxpose.xlu1.b32.start.end [1/1] (short) (narrow) %v3078_v40, 8 }
0x1b08   :  { %v3776_v41 = vpop.trf.xlu0 }
0x1b09   :  { %3794 = vperm.xlu1 %4848, %v3776_v41  }
0x1b0a   :  { %v3096_v42 = vpop.trf.xlu1 }
0x1b0b   :  { %3114 = vperm.xlu0 %4847, %v3096_v42   ;;  %v4492_v42 = vld [vmem:[#allocation4 + $0xc] ss:$0 sm:$0xff] }
0x1b84   :  { %v3795_v54 = vpop.permute.xlu1 %3794 }
0x1b85   :  { %v3797_v43 = vadd.f32 %v3795_v54, %v5542_v13 }
0x1b86   :  { %v3115_v46 = vpop.permute.xlu0 %3114 }
0x1b87   :  { %v5575_v47 = vadd.f32 %v4488_v44, %v3797_v43  ;;  %v3117_v48 = vadd.f32 %v3115_v46, %v5542_v13  ;;  %v4477_v46 = vld [vmem:[#allocation4 + $0x4] ss:$0 sm:$0xff] }
0x1b89   :  { %v3803_v50 = vsel %vm318_vm4, %v5575_v47, -inf  ;;  %v5580_v51 = vadd.f32 %v4473_v49, %v3117_v48 }
0x1b8a   :  { %v3804_v52 = vrot.slane %v3803_v50, 4 }
0x1b8b   :  { %v3123_v56 = vsel %vm318_vm4, %v5580_v51, -inf }
0x1b8c   :  { %v3805_v31 = vmax.f32 %v3803_v50, %v3804_v52  ;;  %v3124_v57 = vrot.slane %v3123_v56, 4 }
0x1b8e   :  { %v3806_v58 = vrot.slane %v3805_v31, 2  ;;  %v3125_v59 = vmax.f32 %v3123_v56, %v3124_v57 }
0x1b90   :  { %v3807_v60 = vmax.f32 %v3805_v31, %v3806_v58  ;;  %v3126_v61 = vrot.slane %v3125_v59, 2 }
0x1b92   :  { %v3808_v63 = vrot.slane %v3807_v60, 1  ;;  %v3127_v55 = vmax.f32 %v3125_v59, %v3126_v61  ;;  %v3963_v61 = vstv %s3962_s23  ;;  %s3595_s23 = scalar_select %p3593_p11, 1, 0 }
0x1b93   :  { %vm3964_vm2 = vcmp.eq.s32.totalorder %v3963_v61, 1 }
0x1b94   :  { %v5584_v27 = vmax.f32 %v3807_v60, %v3808_v63  ;;  %v3128_v1 = vrot.slane %v3127_v55, 1 }
0x1b96   :  { %v5588_v2 = vmax.f32 %v3127_v55, %v3128_v1  ;;  %v3827_v3 = vsel %vm3826_vm10, %v5584_v27, %v3758_v39  ;;  %v3283_v55 = vstv %s3282_s15 }
0x1b97   :  { %3829 = vxpose.xlu0.b32.start.end [1/1] (short) (narrow) %v3827_v3, 8  ;;  %vm3284_vm3 = vcmp.eq.s32.totalorder %v3283_v55, 1 }
0x1b98   :  { %v3147_v4 = vsel %vm3146_vm11, %v5588_v2, %v3078_v40 }
0x1b99   :  { %3149 = vxpose.xlu1.b32.start.end [1/1] (short) (narrow) %v3147_v4, 8 }
0x1c13   :  { %v3845_v5 = vpop.trf.xlu0 }
0x1c14   :  { %3863 = vperm.xlu1 %4848, %v3845_v5  }
0x1c15   :  { %v3165_v6 = vpop.trf.xlu1 }
0x1c16   :  { %3183 = vperm.xlu0 %4847, %v3165_v6  }
0x1c8f   :  { %v3864_v7 = vpop.permute.xlu1 %3863 }
0x1c90   :  { %v3866_v53 = vadd.f32 %v3864_v7, %v5542_v13 }
0x1c91   :  { %v3184_v10 = vpop.permute.xlu0 %3183 }
0x1c92   :  { %v5603_v12 = vadd.f32 %v4490_v8, %v3866_v53  ;;  %v3186_v11 = vadd.f32 %v3184_v10, %v5542_v13  ;;  %v4494_v10 = vld [vmem:[#allocation4 + $0xd] ss:$0 sm:$0xff] }
0x1c94   :  { %v3872_v14 = vsel %vm318_vm4, %v5603_v12, -inf  ;;  %v5609_v9 = vadd.f32 %v4475_v45, %v3186_v11 }
0x1c95   :  { %v3873_v15 = vrot.slane %v3872_v14, 4 }
0x1c96   :  { %v3192_v16 = vsel %vm318_vm4, %v5609_v9, -inf }
0x1c97   :  { %v3874_v18 = vmax.f32 %v3872_v14, %v3873_v15  ;;  %v3193_v19 = vrot.slane %v3192_v16, 4  ;;  %v4479_v15 = vld [vmem:[#allocation4 + $0x5] ss:$0 sm:$0xff] }
0x1c99   :  { %v3875_v20 = vrot.slane %v3874_v18, 2  ;;  %v3194_v22 = vmax.f32 %v3192_v16, %v3193_v19 }
0x1c9b   :  { %v3876_v23 = vmax.f32 %v3874_v18, %v3875_v20  ;;  %v3195_v24 = vrot.slane %v3194_v22, 2 }
0x1c9d   :  { %v3877_v25 = vrot.slane %v3876_v23, 1  ;;  %v3196_v33 = vmax.f32 %v3194_v22, %v3195_v24 }
0x1c9f   :  { %v5614_v28 = vmax.f32 %v3876_v23, %v3877_v25  ;;  %v3197_v29 = vrot.slane %v3196_v33, 1 }
0x1ca1   :  { %vm3879_vm0 = vcmp.ge.f32.partialorder %v5603_v12, %v5614_v28  ;;  %v5618_v32 = vmax.f32 %v3196_v33, %v3197_v29  ;;  %v3896_v30 = vsel %vm3895_vm14, %v5614_v28, %v3827_v3 }
0x1ca2   :  { %3898 = vxpose.xlu0.b32.start.end [1/1] (short) (narrow) %v3896_v30, 8 }
0x1ca3   :  { %vm3199_vm1 = vcmp.ge.f32.partialorder %v5609_v9, %v5618_v32  ;;  %v3216_v35 = vsel %vm3215_vm15, %v5618_v32, %v3147_v4 }
0x1ca4   :  { %3218 = vxpose.xlu1.b32.start.end [1/1] (short) (narrow) %v3216_v35, 8 }
0x1d1e   :  { %v3914_v37 = vpop.trf.xlu0 }
0x1d1f   :  { %3932 = vperm.xlu1 %4848, %v3914_v37  }
0x1d20   :  { %v3234_v39 = vpop.trf.xlu1 }
0x1d21   :  { %3252 = vperm.xlu0 %4847, %v3234_v39  }
0x1d9a   :  { %v3933_v40 = vpop.permute.xlu1 %3932 }
0x1d9b   :  { %v3935_v41 = vadd.f32 %v3933_v40, %v5542_v13 }
0x1d9c   :  { %v3253_v54 = vpop.permute.xlu0 %3252 }
0x1d9d   :  { %v5635_v43 = vadd.f32 %v4492_v42, %v3935_v41  ;;  %v3255_v44 = vadd.f32 %v3253_v54, %v5542_v13 }
0x1d9f   :  { %v3941_v48 = vsel %vm318_vm4, %v5635_v43, -inf  ;;  %v5640_v49 = vadd.f32 %v4477_v46, %v3255_v44 }
0x1da0   :  { %v3942_v50 = vrot.slane %v3941_v48, 4 }
0x1da1   :  { %v3261_v52 = vsel %vm318_vm4, %v5640_v49, -inf }
0x1da2   :  { %v3943_v56 = vmax.f32 %v3941_v48, %v3942_v50  ;;  %v3262_v31 = vrot.slane %v3261_v52, 4  ;;  %v4496_v50 = vld [vmem:[#allocation4 + $0xe] ss:$0 sm:$0xff] }
0x1da4   :  { %v3944_v57 = vrot.slane %v3943_v56, 2  ;;  %v3263_v58 = vmax.f32 %v3261_v52, %v3262_v31 }
0x1da6   :  { %v3945_v59 = vmax.f32 %v3943_v56, %v3944_v57  ;;  %v3264_v60 = vrot.slane %v3263_v58, 2  ;;  %v4481_v57 = vld [vmem:[#allocation4 + $0x6] ss:$0 sm:$0xff] }
0x1da8   :  { %v3946_v62 = vrot.slane %v3945_v59, 1  ;;  %v3265_v63 = vmax.f32 %v3263_v58, %v3264_v60 }
0x1daa   :  { %v5644_v0 = vmax.f32 %v3945_v59, %v3946_v62  ;;  %v3266_v1 = vrot.slane %v3265_v63, 1 }
0x1dac   :  { %vm3948_vm5 = vcmp.ge.f32.partialorder %v5635_v43, %v5644_v0  ;;  %v5648_v3 = vmax.f32 %v3265_v63, %v3266_v1  ;;  %v3965_v4 = vsel %vm3964_vm2, %v5644_v0, %v3896_v30 }
0x1dad   :  { %3967 = vxpose.xlu0.b32.start.end [1/1] (short) (narrow) %v3965_v4, 8 }
0x1dae   :  { %vm3268_vm6 = vcmp.ge.f32.partialorder %v5640_v49, %v5648_v3  ;;  %v3285_v5 = vsel %vm3284_vm3, %v5648_v3, %v3216_v35  ;;  %v3352_v35 = vstv %s3351_s21 }
0x1daf   :  { %3287 = vxpose.xlu1.b32.start.end [1/1] (short) (narrow) %v3285_v5, 8  ;;  %vm3353_vm10 = vcmp.eq.s32.totalorder %v3352_v35, 1 }
0x1e29   :  { %v3983_v6 = vpop.trf.xlu0 }
0x1e2a   :  { %4001 = vperm.xlu1 %4848, %v3983_v6   ;;  %v4101_v6 = vstv %s4100_s9 }
0x1e2b   :  { %v3303_v7 = vpop.trf.xlu1  ;;  %vm4102_vm15 = vcmp.eq.s32.totalorder %v4101_v6, 1  ;;  %v3004_v6 = vlaneseq }
0x1e2c   :  { %3321 = vperm.xlu0 %4847, %v3303_v7  }
0x1ea5   :  { %v4002_v53 = vpop.permute.xlu1 %4001 }
0x1ea6   :  { %v4004_v8 = vadd.f32 %v4002_v53, %v5542_v13 }
0x1ea7   :  { %v3322_v11 = vpop.permute.xlu0 %3321 }
0x1ea8   :  { %v5663_v45 = vadd.f32 %v4494_v10, %v4004_v8  ;;  %v3324_v14 = vadd.f32 %v3322_v11, %v5542_v13  ;;  %v3421_v8 = vstv %s3420_s3 }
0x1ea9   :  { %vm3422_vm2 = vcmp.eq.s32.totalorder %v3421_v8, 1 }
0x1eaa   :  { %v4010_v16 = vsel %vm318_vm4, %v5663_v45, -inf  ;;  %v5669_v18 = vadd.f32 %v4479_v15, %v3324_v14 }
0x1eab   :  { %v4011_v19 = vrot.slane %v4010_v16, 4 }
0x1eac   :  { %v3330_v20 = vsel %vm318_vm4, %v5669_v18, -inf }
0x1ead   :  { %v4012_v22 = vmax.f32 %v4010_v16, %v4011_v19  ;;  %v3331_v23 = vrot.slane %v3330_v20, 4 }
0x1eaf   :  { %v4013_v24 = vrot.slane %v4012_v22, 2  ;;  %v3332_v34 = vmax.f32 %v3330_v20, %v3331_v23 }
0x1eb1   :  { %v4014_v25 = vmax.f32 %v4012_v22, %v4013_v24  ;;  %v3333_v33 = vrot.slane %v3332_v34, 2  ;;  %v4498_v24 = vld [vmem:[#allocation4 + $0xf] ss:$0 sm:$0xff] }
0x1eb3   :  { %v4015_v29 = vrot.slane %v4014_v25, 1  ;;  %v3334_v30 = vmax.f32 %v3332_v34, %v3333_v33 }
0x1eb5   :  { %v5674_v37 = vmax.f32 %v4014_v25, %v4015_v29  ;;  %v3335_v39 = vrot.slane %v3334_v30, 1 }
0x1eb7   :  { %vm4017_vm11 = vcmp.ge.f32.partialorder %v5663_v45, %v5674_v37  ;;  %v5678_v40 = vmax.f32 %v3334_v30, %v3335_v39  ;;  %v4034_v41 = vsel %vm4033_vm7, %v5674_v37, %v3965_v4 }
0x1eb8   :  { %4036 = vxpose.xlu0.b32.start.end [1/1] (short) (narrow) %v4034_v41, 8 }
0x1eb9   :  { %vm3337_vm14 = vcmp.ge.f32.partialorder %v5669_v18, %v5678_v40  ;;  %v3354_v42 = vsel %vm3353_vm10, %v5678_v40, %v3285_v5 }
0x1eba   :  { %3356 = vxpose.xlu1.b32.start.end [1/1] (short) (narrow) %v3354_v42, 8 }
0x1f34   :  { %v4052_v54 = vpop.trf.xlu0 }
0x1f35   :  { %4070 = vperm.xlu1 %4848, %v4052_v54  }
0x1f36   :  { %v3372_v44 = vpop.trf.xlu1 }
0x1f37   :  { %3390 = vperm.xlu0 %4847, %v3372_v44  }
0x1fb0   :  { %v4071_v46 = vpop.permute.xlu1 %4070 }
0x1fb1   :  { %v4073_v48 = vadd.f32 %v4071_v46, %v5542_v13 }
0x1fb2   :  { %v3391_v52 = vpop.permute.xlu0 %3390 }
0x1fb3   :  { %v5695_v56 = vadd.f32 %v4496_v50, %v4073_v48  ;;  %v3393_v31 = vadd.f32 %v3391_v52, %v5542_v13  ;;  %v4170_v48 = vstv %s4169_s28 }
0x1fb4   :  { %vm4171_vm10 = vcmp.eq.s32.totalorder %v4170_v48, 1 }
0x1fb5   :  { %v4079_v58 = vsel %vm318_vm4, %v5695_v56, -inf  ;;  %v5700_v59 = vadd.f32 %v4481_v57, %v3393_v31  ;;  %v3490_v31 = vstv %s3489_s29 }
0x1fb6   :  { %v4080_v60 = vrot.slane %v4079_v58, 4 }
0x1fb7   :  { %v3399_v61 = vsel %vm318_vm4, %v5700_v59, -inf }
0x1fb8   :  { %v4081_v62 = vmax.f32 %v4079_v58, %v4080_v60  ;;  %v3400_v63 = vrot.slane %v3399_v61, 4  ;;  %v3003_v60 = vld [vmem:[%s6150_s20] sm:$0x1]  ;;  %s5780_s20 = sadd.s32 4294967295, %s4201_s14 }
0x1fb9   :  { %p4203_p5 = scmp.ge.s32.totalorder %s5780_s20, 7  ;;  %p4225_p7 = scmp.ge.s32.totalorder %s5780_s20, 6 }
0x1fba   :  { %v4082_v55 = vrot.slane %v4081_v62, 2  ;;  %v3401_v1 = vmax.f32 %v3399_v61, %v3400_v63  ;;  %p4247_p9 = scmp.ge.s32.totalorder %s5780_s20, 5  ;;  %p4269_p12 = scmp.ge.s32.totalorder %s5780_s20, 4 }
0x1fbb   :  { %s4204_s25 = scalar_select %p4203_p5, 1, 0 }
0x1fbc   :  { %v4083_v4 = vmax.f32 %v4081_v62, %v4082_v55  ;;  %v3402_v5 = vrot.slane %v3401_v1, 2  ;;  %s4226_s7 = scalar_select %p4225_p7, 1, 0 }
0x1fbd   :  { %s4248_s30 = scalar_select %p4247_p9, 1, 0 }
0x1fbe   :  { %v4084_v7 = vrot.slane %v4083_v4, 1  ;;  %v3403_v53 = vmax.f32 %v3401_v1, %v3402_v5  ;;  %s4270_s15 = scalar_select %p4269_p12, 1, 0 }
0x1fbf   :  { %p4291_p0 = scmp.ge.s32.totalorder %s5780_s20, 3  ;;  %p4313_p2 = scmp.ge.s32.totalorder %s5780_s20, 2 }
0x1fc0   :  { %v5704_v10 = vmax.f32 %v4083_v4, %v4084_v7  ;;  %v3404_v11 = vrot.slane %v3403_v53, 1  ;;  %v5741_v7 = vand.u32 127, %v3004_v6  ;;  %p4335_p4 = scmp.ge.s32.totalorder %s5780_s20, 1  ;;  %p4922_p5 = scmp.ne.s32.totalorder %s4366_s5, %s4921_s24 }
0x1fc1   :  { %s4292_s18 = scalar_select %p4291_p0, 1, 0 }
0x1fc2   :  { %vm4086_vm3 = vcmp.ge.f32.partialorder %v5695_v56, %v5704_v10  ;;  %v5708_v14 = vmax.f32 %v3403_v53, %v3404_v11  ;;  %v4103_v15 = vsel %vm4102_vm15, %v5704_v10, %v4034_v41  ;;  %vm3491_vm15 = vcmp.eq.s32.totalorder %v3490_v31, 1  ;;  %s4314_s2 = scalar_select %p4313_p2, 1, 0 }
0x1fc3   :  { %4105 = vxpose.xlu0.b32.start.end [1/1] (short) (narrow) %v4103_v15, 8  ;;  %s4336_s21 = scalar_select %p4335_p4, 1, 0 }
0x1fc4   :  { %vm3406_vm7 = vcmp.ge.f32.partialorder %v5700_v59, %v5708_v14  ;;  %v3423_v16 = vsel %vm3422_vm2, %v5708_v14, %v3354_v42  ;;  %p4927_p7 = scmp.lt.s32.totalorder %s4921_s24, %s4921_s24 }
0x1fc5   :  { %3425 = vxpose.xlu1.b32.start.end [1/1] (short) (narrow) %v3423_v16, 8 }
0x1fc6   :  { %p4928_p8 = por %p4927_p7, %p4926_p6 }
0x1fc8   :  { %p4929_p9 = pnand %p4928_p8, %p4922_p5 }
0x203f   :  { %v4121_v19 = vpop.trf.xlu0 }
0x2040   :  { %4139 = vperm.xlu1 %4848, %v4121_v19  }
0x2041   :  { %v3441_v20 = vpop.trf.xlu1 }
0x2042   :  { %3459 = vperm.xlu0 %4847, %v3441_v20  }
0x20bb   :  { %v4140_v22 = vpop.permute.xlu1 %4139 }
0x20bc   :  { %v4142_v23 = vadd.f32 %v4140_v22, %v5542_v13 }
0x20bd   :  { %v3460_v34 = vpop.permute.xlu0 %3459 }
0x20be   :  { %v5723_v25 = vadd.f32 %v4498_v24, %v4142_v23  ;;  %v3462_v33 = vadd.f32 %v3460_v34, %v5542_v13 }
0x20c0   :  { %v4148_v29 = vsel %vm318_vm4, %v5723_v25, -inf  ;;  %v5729_v30 = vadd.f32 %v4483_v26, %v3462_v33 }
0x20c1   :  { %v4149_v35 = vrot.slane %v4148_v29, 4 }
0x20c2   :  { %v3468_v39 = vsel %vm318_vm4, %v5729_v30, -inf }
0x20c3   :  { %v4150_v41 = vmax.f32 %v4148_v29, %v4149_v35  ;;  %v3469_v42 = vrot.slane %v3468_v39, 4 }
0x20c5   :  { %v4151_v54 = vrot.slane %v4150_v41, 2  ;;  %v3470_v44 = vmax.f32 %v3468_v39, %v3469_v42 }
0x20c7   :  { %v4152_v46 = vmax.f32 %v4150_v41, %v4151_v54  ;;  %v3471_v13 = vrot.slane %v3470_v44, 2  ;;  %v5747_v54 = vshrl.u32 %v3004_v6, 7 }
0x20c9   :  { %v4153_v50 = vrot.slane %v4152_v46, 1  ;;  %v3472_v52 = vmax.f32 %v3470_v44, %v3471_v13 }
0x20cb   :  { %v4154_v57 = vmax.f32 %v4152_v46, %v4153_v50  ;;  %v3473_v58 = vrot.slane %v3472_v52, 1 }
0x20cd   :  { %vm4155_vm2 = vcmp.ge.f32.partialorder %v5723_v25, %v4154_v57  ;;  %v3474_v61 = vmax.f32 %v3472_v52, %v3473_v58  ;;  %v4172_v62 = vsel %vm4171_vm10, %v4154_v57, %v4103_v15 }
0x20ce   :  { %v4173_v63 = vadd.f32 %v4172_v62, %v3003_v60  ;;  %v4156_v44 = vsel %vm4155_vm2, %v5747_v54, 8 }
0x20cf   :  { %vm3475_vm9 = vcmp.ge.f32.partialorder %v5729_v30, %v3474_v61  ;;  %v3492_v55 = vsel %vm3491_vm15, %v3474_v61, %v3423_v16  ;;  %v4157_v13 = vsel %vm318_vm4, %v4156_v44, 2147483647  ;;  %v4087_v44 = vsel %vm4086_vm3, %v5747_v54, 8 }
0x20d0   :  { %v4174_v1 = vsel %vm6157_vm8, %v4173_v63, -inf  ;;  %v3493_v4 = vadd.f32 %v3492_v55, %v3003_v60  ;;  %v3476_v46 = vsel %vm3475_vm9, %v5747_v54, 8  ;;  %v4158_v50 = vrot.slane %v4157_v13, 4 }
0x20d1   :  { %4175 = vmax.xlane.f32.xlu0 %v4174_v1  ;;  %v3477_v48 = vsel %vm318_vm4, %v3476_v46, 2147483647  ;;  %v4088_v46 = vsel %vm318_vm4, %v4087_v44, 2147483647 }
0x20d2   :  { %v3495_v5 = vsel %vm6157_vm8, %v3493_v4, -inf  ;;  %v3478_v52 = vrot.slane %v3477_v48, 4 }
0x20d3   :  { %3496 = vmax.xlane.f32.xlu1 %v3495_v5 }
0x215a   :  { %v4176_v53 = vpop.xlane.xlu0 %4175 }
0x215b   :  { %vm4177_vm12 = vcmp.ge.f32.partialorder %v4173_v63, %v4176_v53 }
0x215c   :  { %v4178_v8 = vsel %vm4177_vm12, %v5741_v7, 8  ;;  %v3497_v11 = vpop.xlane.xlu1 %3496 }
0x215d   :  { %v4179_v15 = vsel %vm6157_vm8, %v4178_v8, 2147483647  ;;  %vm3498_vm10 = vcmp.ge.f32.partialorder %v3493_v4, %v3497_v11 }
0x215e   :  { %v3499_v16 = vsel %vm3498_vm10, %v5741_v7, 8  ;;  %v4181_v19 = vshra.s32 %v4179_v15, 16  ;;  %v4180_v34 = vand.u32 65535, %v4179_v15  ;;  %vm4159_vm10 = vcmp.lt.s32.totalorder %v4157_v13, %v4158_v50 }
0x215f   :  { %v3500_v20 = vsel %vm6157_vm8, %v3499_v16, 2147483647  ;;  %v4160_v31 = vsel %vm4159_vm10, %v4157_v13, %v4158_v50  ;;  %v3407_v13 = vsel %vm3406_vm7, %v5747_v54, 8 }
0x2160   :  { %v4183_v22 = vcvt.s32.f32 %v4181_v19  ;;  %v3502_v23 = vshra.s32 %v3500_v20, 16  ;;  %v3501_v33 = vand.u32 65535, %v3500_v20  ;;  %v4182_v29 = vcvt.s32.f32 %v4180_v34 }
0x2161   :  { %v4161_v60 = vrot.slane %v4160_v31, 2  ;;  %v3408_v50 = vsel %vm318_vm4, %v3407_v13, 2147483647 }
0x2162   :  { %4184 = vmin.xlane.f32.xlu1 %v4183_v22  ;;  %v3504_v24 = vcvt.s32.f32 %v3502_v23  ;;  %v3503_v41 = vcvt.s32.f32 %v3501_v33 }
0x2164   :  { %3505 = vmin.xlane.f32.xlu0 %v3504_v24 }
0x21eb   :  { %v4185_v26 = vpop.xlane.xlu1 %4184 }
0x21ec   :  { %vm4186_vm15 = vcmp.eq.f32.partialorder %v4183_v22, %v4185_v26  ;;  %v4191_v57 = vcvt.f32.s32 %v4185_v26 }
0x21ed   :  { %v3506_v35 = vpop.xlane.xlu0 %3505  ;;  %v4187_v39 = vsel %vm4186_vm15, %v4182_v29, inf  ;;  %vm3479_vm15 = vcmp.lt.s32.totalorder %v3477_v48, %v3478_v52 }
0x21ee   :  { %4188 = vmin.xlane.f32.xlu1 %v4187_v39  ;;  %vm3507_vm12 = vcmp.eq.f32.partialorder %v3504_v24, %v3506_v35  ;;  %v3480_v58 = vsel %vm3479_vm15, %v3477_v48, %v3478_v52  ;;  %v3512_v30 = vcvt.f32.s32 %v3506_v35  ;;  %v4192_v4 = vshll.u32 %v4191_v57, 16 }
0x21ef   :  { %v3508_v42 = vsel %vm3507_vm12, %v3503_v41, inf  ;;  %v3481_v62 = vrot.slane %v3480_v58, 2  ;;  %vm4162_vm12 = vcmp.lt.s32.totalorder %v4160_v31, %v4161_v60  ;;  %v4089_v48 = vrot.slane %v4088_v46, 4 }
0x21f0   :  { %3509 = vmin.xlane.f32.xlu0 %v3508_v42  ;;  %v4163_v25 = vsel %vm4162_vm12, %v4160_v31, %v4161_v60  ;;  %v3513_v53 = vshll.u32 %v3512_v30, 16  ;;  %v3409_v52 = vrot.slane %v3408_v50, 4  ;;  %v4205_v30 = vstv %s4204_s25 }
0x21f1   :  { %vm3482_vm13 = vcmp.lt.s32.totalorder %v3480_v58, %v3481_v62  ;;  %v4164_v55 = vrot.slane %v4163_v25, 1  ;;  %vm4090_vm15 = vcmp.lt.s32.totalorder %v4088_v46, %v4089_v48 }
0x21f2   :  { %v3483_v63 = vsel %vm3482_vm13, %v3480_v58, %v3481_v62  ;;  %v4091_v31 = vsel %vm4090_vm15, %v4088_v46, %v4089_v48  ;;  %vm3410_vm12 = vcmp.lt.s32.totalorder %v3408_v50, %v3409_v52 }
0x21f3   :  { %v3484_v1 = vrot.slane %v3483_v63, 1  ;;  %vm4165_vm9 = vcmp.lt.s32.totalorder %v4163_v25, %v4164_v55  ;;  %v4092_v58 = vrot.slane %v4091_v31, 2  ;;  %v3411_v60 = vsel %vm3410_vm12, %v3408_v50, %v3409_v52 }
0x21f4   :  { %v4166_v16 = vsel %vm4165_vm9, %v4163_v25, %v4164_v55  ;;  %v3412_v56 = vrot.slane %v3411_v60, 2 }
0x21f5   :  { %vm3485_vm2 = vcmp.lt.s32.totalorder %v3483_v63, %v3484_v1  ;;  %vm4093_vm3 = vcmp.lt.s32.totalorder %v4091_v31, %v4092_v58 }
0x21f6   :  { %v3486_v22 = vsel %vm3485_vm2, %v3483_v63, %v3484_v1  ;;  %v4094_v59 = vsel %vm4093_vm3, %v4091_v31, %v4092_v58  ;;  %vm3413_vm7 = vcmp.lt.s32.totalorder %v3411_v60, %v3412_v56  ;;  %vm5789_vm2 = vcmp.eq.s32.totalorder %v4205_v30, 1 }
0x21f7   :  { %v4095_v25 = vrot.slane %v4094_v59, 1  ;;  %v3414_v57 = vsel %vm3413_vm7, %v3411_v60, %v3412_v56  ;;  %v4018_v31 = vsel %vm4017_vm11, %v5747_v54, 8  ;;  %v3338_v60 = vsel %vm3337_vm14, %v5747_v54, 8 }
0x21f8   :  { %v4019_v58 = vsel %vm318_vm4, %v4018_v31, 2147483647 }
0x21f9   :  { %vm4096_vm9 = vcmp.lt.s32.totalorder %v4094_v59, %v4095_v25  ;;  %v4020_v56 = vrot.slane %v4019_v58, 4 }
0x21fb   :  { %vm4021_vm3 = vcmp.lt.s32.totalorder %v4019_v58, %v4020_v56 }
0x2277   :  { %v4189_v61 = vpop.xlane.xlu1 %4188 }
0x2278   :  { %v4190_v5 = vcvt.f32.s32 %v4189_v61 }
0x2279   :  { %v3510_v6 = vpop.xlane.xlu0 %3509 }
0x227a   :  { %v5757_v8 = vadd.s32 %v4192_v4, %v4190_v5  ;;  %v3511_v11 = vcvt.f32.s32 %v3510_v6  ;;  %v3415_v4 = vrot.slane %v3414_v57, 1  ;;  %v3527_v6 = vstv %s3526_s26 }
0x227c   :  { %v5759_v15 = vadd.s32 %v3513_v53, %v3511_v11  ;;  %vm4209_vm10 = vcmp.eq.s32.totalorder %v5741_v7, %v5757_v8 }
0x227d   :  { %v4210_v19 = vsel %vm4209_vm10, %v4166_v16, 0  ;;  %vm3416_vm10 = vcmp.lt.s32.totalorder %v3414_v57, %v3415_v4 }
0x227e   :  { %v4211_v20 = vsel %vm6157_vm8, %v4210_v19, 0  ;;  %vm3531_vm13 = vcmp.eq.s32.totalorder %v5741_v7, %v5759_v15  ;;  %v3665_v19 = vstv %s3664_s19 }
0x227f   :  { %v4213_v23 = vshrl.u32 %v4211_v20, 16  ;;  %v3532_v24 = vsel %vm3531_vm13, %v3486_v22, 0  ;;  %v4212_v29 = vand.u32 65535, %v4211_v20  ;;  %vm5798_vm13 = vcmp.eq.s32.totalorder %v3527_v6, 1 }
0x2280   :  { %v3533_v34 = vsel %vm6157_vm8, %v3532_v24, 0  ;;  %v4097_v24 = vsel %vm4096_vm9, %v4094_v59, %v4095_v25  ;;  %v3339_v59 = vsel %vm318_vm4, %v3338_v60, 2147483647 }
0x2281   :  { %v4215_v33 = vcvt.s32.f32 %v4213_v23  ;;  %v3535_v26 = vshrl.u32 %v3533_v34, 16  ;;  %v3534_v39 = vand.u32 65535, %v3533_v34  ;;  %v4214_v41 = vcvt.s32.f32 %v4212_v29 }
0x2282   :  { %v3417_v29 = vsel %vm3416_vm10, %v3414_v57, %v3415_v4 }
0x2283   :  { %4218 = vadd.xlane.f32.xlu1 %v4215_v33  ;;  %v3537_v35 = vcvt.s32.f32 %v3535_v26  ;;  %v3536_v42 = vcvt.s32.f32 %v3534_v39 }
0x2285   :  { %3540 = vadd.xlane.f32.xlu0 %v3537_v35 }
0x2287   :  { %4216 = vadd.xlane.f32.xlu1 %v4214_v41 }
0x2289   :  { %3538 = vadd.xlane.f32.xlu0 %v3536_v42 }
0x230c   :  { %v4219_v10 = vpop.xlane.xlu1 %4218 }
0x230d   :  { %v4221_v14 = vcvt.f32.s32 %v4219_v10  ;;  %v3340_v10 = vrot.slane %v3339_v59, 4 }
0x230e   :  { %v3541_v62 = vpop.xlane.xlu0 %3540 }
0x230f   :  { %v3543_v63 = vcvt.f32.s32 %v3541_v62  ;;  %v4222_v61 = vshll.u32 %v4221_v14, 16  ;;  %v4022_v14 = vsel %vm4021_vm3, %v4019_v58, %v4020_v56  ;;  %vm3341_vm7 = vcmp.lt.s32.totalorder %v3339_v59, %v3340_v10 }
0x2310   :  { %v4217_v55 = vpop.xlane.xlu1 %4216  ;;  %v4023_v62 = vrot.slane %v4022_v14, 2  ;;  %v3342_v25 = vsel %vm3341_vm7, %v3339_v59, %v3340_v10 }
0x2311   :  { %v4220_v1 = vcvt.f32.s32 %v4217_v55  ;;  %v3544_v53 = vshll.u32 %v3543_v63, 16  ;;  %v3343_v57 = vrot.slane %v3342_v25, 2 }
0x2312   :  { %v3539_v5 = vpop.xlane.xlu0 %3538  ;;  %vm4024_vm9 = vcmp.lt.s32.totalorder %v4022_v14, %v4023_v62 }
0x2313   :  { %v4223_v11 = vadd.s32 %v4222_v61, %v4220_v1  ;;  %v3542_v16 = vcvt.f32.s32 %v3539_v5  ;;  %vm3344_vm11 = vcmp.lt.s32.totalorder %v3342_v25, %v3343_v57  ;;  %v4025_v45 = vsel %vm4024_vm9, %v4022_v14, %v4023_v62 }
0x2314   :  { %v4026_v40 = vrot.slane %v4025_v45, 1  ;;  %v3345_v55 = vsel %vm3344_vm11, %v3342_v25, %v3343_v57  ;;  %v4227_v1 = vstv %s4226_s7  ;;  %v3949_v14 = vsel %vm3948_vm5, %v5747_v54, 8 }
0x2315   :  { %v5796_v20 = vsel %vm5789_vm2, %v4223_v11, %v5757_v8  ;;  %v3545_v22 = vadd.s32 %v3544_v53, %v3542_v16  ;;  %v3346_v6 = vrot.slane %v3345_v55, 1  ;;  %v3550_v11 = vstv %s3549_s17 }
0x2316   :  { %vm4231_vm15 = vcmp.eq.s32.totalorder %v5741_v7, %v5796_v20  ;;  %vm4027_vm14 = vcmp.lt.s32.totalorder %v4025_v45, %v4026_v40  ;;  %vm5825_vm10 = vcmp.eq.s32.totalorder %v4227_v1, 1  ;;  %v3950_v62 = vsel %vm318_vm4, %v3949_v14, 2147483647 }
0x2317   :  { %v5807_v34 = vsel %vm5798_vm13, %v3545_v22, %v5759_v15  ;;  %v4232_v33 = vsel %vm4231_vm15, %v4097_v24, 0  ;;  %vm3347_vm15 = vcmp.lt.s32.totalorder %v3345_v55, %v3346_v6  ;;  %v3269_v25 = vsel %vm3268_vm6, %v5747_v54, 8 }
0x2318   :  { %v4233_v26 = vsel %vm6157_vm8, %v4232_v33, 0  ;;  %vm3554_vm12 = vcmp.eq.s32.totalorder %v5741_v7, %v5807_v34  ;;  %v3951_v57 = vrot.slane %v3950_v62, 4 }
0x2319   :  { %v4235_v35 = vshrl.u32 %v4233_v26, 16  ;;  %v3555_v39 = vsel %vm3554_vm12, %v3417_v29, 0  ;;  %v4234_v46 = vand.u32 65535, %v4233_v26  ;;  %vm5834_vm12 = vcmp.eq.s32.totalorder %v3550_v11, 1 }
0x231a   :  { %v3556_v41 = vsel %vm6157_vm8, %v3555_v39, 0  ;;  %v4028_v39 = vsel %vm4027_vm14, %v4025_v45, %v4026_v40  ;;  %v3270_v45 = vsel %vm318_vm4, %v3269_v25, 2147483647  ;;  %vm3952_vm9 = vcmp.lt.s32.totalorder %v3950_v62, %v3951_v57 }
0x231b   :  { %v4237_v42 = vcvt.s32.f32 %v4235_v35  ;;  %v3558_v44 = vshrl.u32 %v3556_v41, 16  ;;  %v3557_v48 = vand.u32 65535, %v3556_v41  ;;  %v4236_v50 = vcvt.s32.f32 %v4234_v46 }
0x231c   :  { %v3348_v46 = vsel %vm3347_vm15, %v3345_v55, %v3346_v6 }
0x231d   :  { %4240 = vadd.xlane.f32.xlu1 %v4237_v42  ;;  %v3560_v13 = vcvt.s32.f32 %v3558_v44  ;;  %v3559_v52 = vcvt.s32.f32 %v3557_v48 }
0x231f   :  { %3563 = vadd.xlane.f32.xlu0 %v3560_v13 }
0x2321   :  { %4238 = vadd.xlane.f32.xlu1 %v4236_v50 }
0x2323   :  { %3561 = vadd.xlane.f32.xlu0 %v3559_v52 }
0x23a6   :  { %v4241_v37 = vpop.xlane.xlu1 %4240 }
0x23a7   :  { %v4243_v63 = vcvt.f32.s32 %v4241_v37  ;;  %v3271_v37 = vrot.slane %v3270_v45, 4 }
0x23a8   :  { %v3564_v18 = vpop.xlane.xlu0 %3563 }
0x23a9   :  { %v3566_v30 = vcvt.f32.s32 %v3564_v18  ;;  %v4244_v4 = vshll.u32 %v4243_v63, 16  ;;  %v3953_v63 = vsel %vm3952_vm9, %v3950_v62, %v3951_v57  ;;  %vm3272_vm11 = vcmp.lt.s32.totalorder %v3270_v45, %v3271_v37 }
0x23aa   :  { %v4239_v61 = vpop.xlane.xlu1 %4238  ;;  %v3954_v18 = vrot.slane %v3953_v63, 2  ;;  %v3273_v40 = vsel %vm3272_vm11, %v3270_v45, %v3271_v37 }
0x23ab   :  { %v4242_v5 = vcvt.f32.s32 %v4239_v61  ;;  %v3567_v16 = vshll.u32 %v3566_v30, 16  ;;  %v3274_v55 = vrot.slane %v3273_v40, 2 }
0x23ac   :  { %v3562_v53 = vpop.xlane.xlu0 %3561  ;;  %vm3955_vm14 = vcmp.lt.s32.totalorder %v3953_v63, %v3954_v18 }
0x23ad   :  { %v4245_v22 = vadd.s32 %v4244_v4, %v4242_v5  ;;  %v3565_v24 = vcvt.f32.s32 %v3562_v53  ;;  %vm3275_vm5 = vcmp.lt.s32.totalorder %v3273_v40, %v3274_v55  ;;  %v3956_v43 = vsel %vm3955_vm14, %v3953_v63, %v3954_v18 }
0x23ae   :  { %v3276_v3 = vsel %vm3275_vm5, %v3273_v40, %v3274_v55  ;;  %v3957_v61 = vrot.slane %v3956_v43, 1  ;;  %v4249_v5 = vstv %s4248_s30  ;;  %v3200_v63 = vsel %vm3199_vm1, %v5747_v54, 8 }
0x23af   :  { %v5832_v26 = vsel %vm5825_vm10, %v4245_v22, %v5796_v20  ;;  %v3568_v29 = vadd.s32 %v3567_v16, %v3565_v24  ;;  %v3277_v11 = vrot.slane %v3276_v3, 1  ;;  %v3573_v22 = vstv %s3572_s8 }
0x23b0   :  { %vm4253_vm3 = vcmp.eq.s32.totalorder %v5741_v7, %v5832_v26  ;;  %vm3958_vm6 = vcmp.lt.s32.totalorder %v3956_v43, %v3957_v61  ;;  %vm5861_vm15 = vcmp.eq.s32.totalorder %v4249_v5, 1  ;;  %v3201_v18 = vsel %vm318_vm4, %v3200_v63, 2147483647 }
0x23b1   :  { %v5843_v41 = vsel %vm5834_vm12, %v3568_v29, %v5807_v34  ;;  %v4254_v42 = vsel %vm4253_vm3, %v4028_v39, 0  ;;  %vm3278_vm3 = vcmp.lt.s32.totalorder %v3276_v3, %v3277_v11  ;;  %v3880_v40 = vsel %vm3879_vm0, %v5747_v54, 8 }
0x23b2   :  { %v4255_v44 = vsel %vm6157_vm8, %v4254_v42, 0  ;;  %vm3577_vm7 = vcmp.eq.s32.totalorder %v5741_v7, %v5843_v41  ;;  %v3202_v55 = vrot.slane %v3201_v18, 4  ;;  %v3596_v5 = vstv %s3595_s23 }
0x23b3   :  { %v4257_v13 = vshrl.u32 %v4255_v44, 16  ;;  %v3578_v48 = vsel %vm3577_vm7, %v3348_v46, 0  ;;  %v4256_v58 = vand.u32 65535, %v4255_v44  ;;  %vm5870_vm7 = vcmp.eq.s32.totalorder %v3573_v22, 1 }
0x23b4   :  { %v3579_v50 = vsel %vm6157_vm8, %v3578_v48, 0  ;;  %v3959_v48 = vsel %vm3958_vm6, %v3956_v43, %v3957_v61  ;;  %v3881_v43 = vsel %vm318_vm4, %v3880_v40, 2147483647  ;;  %vm3203_vm14 = vcmp.lt.s32.totalorder %v3201_v18, %v3202_v55 }
0x23b5   :  { %v4259_v52 = vcvt.s32.f32 %v4257_v13  ;;  %v3581_v31 = vshrl.u32 %v3579_v50, 16  ;;  %v3580_v56 = vand.u32 65535, %v3579_v50  ;;  %v4258_v59 = vcvt.s32.f32 %v4256_v58 }
0x23b7   :  { %4262 = vadd.xlane.f32.xlu1 %v4259_v52  ;;  %v3583_v60 = vcvt.s32.f32 %v3581_v31  ;;  %v3582_v10 = vcvt.s32.f32 %v3580_v56  ;;  %v3279_v31 = vsel %vm3278_vm3, %v3276_v3, %v3277_v11  ;;  %vm5897_vm3 = vcmp.eq.s32.totalorder %v3596_v5, 1 }
0x23b9   :  { %3586 = vadd.xlane.f32.xlu0 %v3583_v60 }
0x23bb   :  { %4260 = vadd.xlane.f32.xlu1 %v4258_v59 }
0x23bd   :  { %3584 = vadd.xlane.f32.xlu0 %v3582_v10 }
0x2440   :  { %v4263_v0 = vpop.xlane.xlu1 %4262 }
0x2441   :  { %v4265_v30 = vcvt.f32.s32 %v4263_v0  ;;  %v3882_v0 = vrot.slane %v3881_v43, 4 }
0x2442   :  { %v3587_v49 = vpop.xlane.xlu0 %3586 }
0x2443   :  { %v3589_v1 = vcvt.f32.s32 %v3587_v49  ;;  %v4266_v6 = vshll.u32 %v4265_v30, 16  ;;  %v3204_v30 = vsel %vm3203_vm14, %v3201_v18, %v3202_v55  ;;  %vm3883_vm5 = vcmp.lt.s32.totalorder %v3881_v43, %v3882_v0 }
0x2444   :  { %v4261_v4 = vpop.xlane.xlu1 %4260  ;;  %v3205_v49 = vrot.slane %v3204_v30, 2  ;;  %v3884_v3 = vsel %vm3883_vm5, %v3881_v43, %v3882_v0 }
0x2445   :  { %v4264_v53 = vcvt.f32.s32 %v4261_v4  ;;  %v3590_v24 = vshll.u32 %v3589_v1, 16  ;;  %v3885_v61 = vrot.slane %v3884_v3, 2 }
0x2446   :  { %v3585_v16 = vpop.xlane.xlu0 %3584  ;;  %vm3206_vm6 = vcmp.lt.s32.totalorder %v3204_v30, %v3205_v49 }
0x2447   :  { %v4267_v29 = vadd.s32 %v4266_v6, %v4264_v53  ;;  %v3588_v39 = vcvt.f32.s32 %v3585_v16  ;;  %v3207_v9 = vsel %vm3206_vm6, %v3204_v30, %v3205_v49  ;;  %vm3886_vm1 = vcmp.lt.s32.totalorder %v3884_v3, %v3885_v61 }
0x2448   :  { %v3208_v28 = vrot.slane %v3207_v9, 1  ;;  %v3887_v4 = vsel %vm3886_vm1, %v3884_v3, %v3885_v61  ;;  %vm6192_vm6 = vcmp.ge.f32.partialorder %v5580_v51, %v5588_v2  ;;  %vm6193_vm1 = vcmp.ge.f32.partialorder %v5575_v47, %v5584_v27 }
0x2449   :  { %v5868_v44 = vsel %vm5861_vm15, %v4267_v29, %v5832_v26  ;;  %v3591_v46 = vadd.s32 %v3590_v24, %v3588_v39  ;;  %v3888_v29 = vrot.slane %v3887_v4, 1  ;;  %v3131_v30 = vsel %vm6192_vm6, %v5747_v54, 8 }
0x244a   :  { %vm4275_vm9 = vcmp.eq.s32.totalorder %v5741_v7, %v5868_v44  ;;  %vm3209_vm0 = vcmp.lt.s32.totalorder %v3207_v9, %v3208_v28  ;;  %v3132_v49 = vsel %vm318_vm4, %v3131_v30, 2147483647  ;;  %v3811_v3 = vsel %vm6193_vm1, %v5747_v54, 8 }
0x244b   :  { %v5879_v50 = vsel %vm5870_vm7, %v3591_v46, %v5843_v41  ;;  %v4276_v52 = vsel %vm4275_vm9, %v3959_v48, 0  ;;  %v4271_v46 = vstv %s4270_s15  ;;  %v3133_v61 = vrot.slane %v3132_v49, 4 }
0x244c   :  { %vm3600_vm11 = vcmp.eq.s32.totalorder %v5741_v7, %v5879_v50  ;;  %v4277_v56 = vsel %vm6157_vm8, %v4276_v52, 0  ;;  %vm5908_vm14 = vcmp.eq.s32.totalorder %v4271_v46, 1 }
0x244d   :  { %v3601_v58 = vsel %vm3600_vm11, %v3279_v31, 0  ;;  %v4279_v25 = vshrl.u32 %v4277_v56, 16  ;;  %v4278_v57 = vand.u32 65535, %v4277_v56  ;;  %vm3889_vm11 = vcmp.lt.s32.totalorder %v3887_v4, %v3888_v29 }
0x244e   :  { %v3602_v60 = vsel %vm6157_vm8, %v3601_v58, 0  ;;  %v3210_v58 = vsel %vm3209_vm0, %v3207_v9, %v3208_v28  ;;  %v3812_v9 = vsel %vm318_vm4, %v3811_v3, 2147483647  ;;  %vm3134_vm0 = vcmp.lt.s32.totalorder %v3132_v49, %v3133_v61 }
0x244f   :  { %v3604_v59 = vshrl.u32 %v3602_v60, 16  ;;  %v3603_v10 = vand.u32 65535, %v3602_v60  ;;  %v4281_v45 = vcvt.s32.f32 %v4279_v25  ;;  %v4280_v37 = vcvt.s32.f32 %v4278_v57 }
0x2450   :  { %v3890_v57 = vsel %vm3889_vm11, %v3887_v4, %v3888_v29 }
0x2451   :  { %v3606_v14 = vcvt.s32.f32 %v3604_v59  ;;  %v3605_v62 = vcvt.s32.f32 %v3603_v10  ;;  %v6190_v59 = vmov 0 }
0x2452   :  { %v6191_v59 = vsel %vm5908_vm14, 4294967295, %v6190_v59 }
0x2453   :  { %3609 = vadd.xlane.f32.xlu1 %v3606_v14  ;;  %3607 = vadd.xlane.f32.xlu0 %v3605_v62 }
0x2457   :  { %4284 = vadd.xlane.f32.xlu1 %v4281_v45  ;;  %4282 = vadd.xlane.f32.xlu0 %v4280_v37 }
0x24dc   :  { %v3610_v32 = vpop.xlane.xlu1 %3609  ;;  %v3608_v1 = vpop.xlane.xlu0 %3607 }
0x24dd   :  { %v3612_v12 = vcvt.f32.s32 %v3610_v32  ;;  %v3611_v53 = vcvt.f32.s32 %v3608_v1  ;;  %v3813_v32 = vrot.slane %v3812_v9, 4  ;;  %v3135_v1 = vsel %vm3134_vm0, %v3132_v49, %v3133_v61 }
0x24df   :  { %v3613_v6 = vshll.u32 %v3612_v12, 16  ;;  %v3136_v12 = vrot.slane %v3135_v1, 2 }
0x24e0   :  { %v4285_v11 = vpop.xlane.xlu1 %4284  ;;  %v4283_v16 = vpop.xlane.xlu0 %4282 }
0x24e1   :  { %v3614_v22 = vadd.s32 %v3613_v6, %v3611_v53  ;;  %v4287_v24 = vcvt.f32.s32 %v4285_v11  ;;  %v4286_v31 = vcvt.f32.s32 %v4283_v16  ;;  %vm3137_vm11 = vcmp.lt.s32.totalorder %v3135_v1, %v3136_v12 }
0x24e2   :  { %v3138_v2 = vsel %vm3137_vm11, %v3135_v1, %v3136_v12  ;;  %v3619_v53 = vstv %s3618_s16 }
0x24e3   :  { %v5904_v48 = vsel %vm5897_vm3, %v3614_v22, %v5879_v50  ;;  %v4288_v52 = vshll.u32 %v4287_v24, 16  ;;  %v3139_v5 = vrot.slane %v3138_v2, 1  ;;  %vm5933_vm1 = vcmp.eq.s32.totalorder %v3619_v53, 1 }
0x24e4   :  { %vm3623_vm9 = vcmp.eq.s32.totalorder %v5741_v7, %v5904_v48 }
0x24e5   :  { %v4289_v60 = vadd.s32 %v4288_v52, %v4286_v31  ;;  %v3624_v56 = vsel %vm3623_vm9, %v3210_v58, 0  ;;  %vm3814_vm9 = vcmp.lt.s32.totalorder %v3812_v9, %v3813_v32  ;;  %vm3140_vm6 = vcmp.lt.s32.totalorder %v3138_v2, %v3139_v5 }
0x24e6   :  { %v3625_v10 = vsel %vm6157_vm8, %v3624_v56, 0  ;;  %v3815_v28 = vsel %vm3814_vm9, %v3812_v9, %v3813_v32  ;;  %v4293_v58 = vstv %s4292_s18 }
0x24e7   :  { %v5916_v14 = vsel %vm5908_vm14, %v4289_v60, %v5868_v44  ;;  %v3627_v62 = vshrl.u32 %v3625_v10, 16  ;;  %v3626_v25 = vand.u32 65535, %v3625_v10  ;;  %v3816_v51 = vrot.slane %v3815_v28, 2 }
0x24e8   :  { %vm4297_vm5 = vcmp.eq.s32.totalorder %v5741_v7, %v5916_v14  ;;  %vm5944_vm11 = vcmp.eq.s32.totalorder %v4293_v58, 1  ;;  %vm3571_vm14 = vcmp.eq.s32.totalorder %v5741_v7, 5 }
0x24e9   :  { %v3629_v45 = vcvt.s32.f32 %v3627_v62  ;;  %v3628_v37 = vcvt.s32.f32 %v3626_v25  ;;  %v4298_v63 = vsel %vm4297_vm5, %v3890_v57, 0  ;;  %vm3817_vm5 = vcmp.lt.s32.totalorder %v3815_v28, %v3816_v51 }
0x24ea   :  { %v4299_v18 = vsel %vm6157_vm8, %v4298_v63, 0  ;;  %v3818_v6 = vsel %vm3817_vm5, %v3815_v28, %v3816_v51  ;;  %v3141_v62 = vsel %vm3140_vm6, %v3138_v2, %v3139_v5  ;;  %vm6198_vm6 = vcmp.ge.f32.partialorder %v5553_v21, %v5562_v38 }
0x24eb   :  { %3632 = vadd.xlane.f32.xlu1 %v3629_v45  ;;  %3630 = vadd.xlane.f32.xlu0 %v3628_v37  ;;  %v4301_v40 = vshrl.u32 %v4299_v18, 16  ;;  %v4300_v55 = vand.u32 65535, %v4299_v18  ;;  %v3819_v52 = vrot.slane %v3818_v6, 1  ;;  %v6196_v45 = vmov 0 }
0x24ec   :  { %v6197_v45 = vsel %vm5944_vm11, 4294967295, %v6196_v45  ;;  %v3062_v1 = vsel %vm6198_vm6, %v5747_v54, 8 }
0x24ed   :  { %v4303_v43 = vcvt.s32.f32 %v4301_v40  ;;  %v4302_v0 = vcvt.s32.f32 %v4300_v55  ;;  %vm3820_vm9 = vcmp.lt.s32.totalorder %v3818_v6, %v3819_v52  ;;  %v3063_v12 = vsel %vm318_vm4, %v3062_v1, 2147483647 }
0x24ee   :  { %v3821_v55 = vsel %vm3820_vm9, %v3818_v6, %v3819_v52  ;;  %v3064_v51 = vrot.slane %v3063_v12, 4 }
0x24ef   :  { %4306 = vadd.xlane.f32.xlu1 %v4303_v43  ;;  %4304 = vadd.xlane.f32.xlu0 %v4302_v0 }
0x24f0   :  { %vm3065_vm9 = vcmp.lt.s32.totalorder %v3063_v12, %v3064_v51 }
0x2574   :  { %v3633_v4 = vpop.xlane.xlu1 %3632  ;;  %v3631_v47 = vpop.xlane.xlu0 %3630 }
0x2575   :  { %v3635_v27 = vcvt.f32.s32 %v3633_v4  ;;  %v3634_v16 = vcvt.f32.s32 %v3631_v47  ;;  %v3066_v47 = vsel %vm3065_vm9, %v3063_v12, %v3064_v51 }
0x2577   :  { %v3636_v11 = vshll.u32 %v3635_v27, 16  ;;  %v3067_v27 = vrot.slane %v3066_v47, 2 }
0x2578   :  { %v4307_v22 = vpop.xlane.xlu1 %4306  ;;  %v4305_v24 = vpop.xlane.xlu0 %4304 }
0x2579   :  { %v3637_v29 = vadd.s32 %v3636_v11, %v3634_v16  ;;  %v4309_v46 = vcvt.f32.s32 %v4307_v22  ;;  %v4308_v10 = vcvt.f32.s32 %v4305_v24  ;;  %vm3068_vm6 = vcmp.lt.s32.totalorder %v3066_v47, %v3067_v27 }
0x257a   :  { %v3069_v38 = vsel %vm3068_vm6, %v3066_v47, %v3067_v27  ;;  %v3642_v16 = vstv %s3641_s1  ;;  %vm6204_vm6 = vcmask 57344  }
0x257b   :  { %v5940_v60 = vsel %vm5933_vm1, %v3637_v29, %v5904_v48  ;;  %v4310_v56 = vshll.u32 %v4309_v46, 16 }
0x257c   :  { %vm3646_vm0 = vcmp.eq.s32.totalorder %v5741_v7, %v5940_v60 }
0x257d   :  { %v4311_v25 = vadd.s32 %v4310_v56, %v4308_v10  ;;  %v3647_v57 = vsel %vm3646_vm0, %v3141_v62, 0  ;;  %vm6199_vm0 = vcmp.ge.f32.partialorder %v5547_v17, %v5558_v36  ;;  %v6200_v56 = vmov 0 }
0x257e   :  { %v3648_v37 = vsel %vm6157_vm8, %v3647_v57, 0  ;;  %v3742_v28 = vsel %vm6199_vm0, %v5747_v54, 8  ;;  %v3070_v54 = vrot.slane %v3069_v38, 1  ;;  %vm5969_vm0 = vcmp.eq.s32.totalorder %v3642_v16, 1 }
0x257f   :  { %v5952_v63 = vsel %vm5944_vm11, %v4311_v25, %v5916_v14  ;;  %v3650_v18 = vshrl.u32 %v3648_v37, 16  ;;  %v3649_v40 = vand.u32 65535, %v3648_v37  ;;  %v3743_v2 = vsel %vm318_vm4, %v3742_v28, 2147483647 }
0x2580   :  { %vm4319_vm5 = vcmp.eq.s32.totalorder %v5741_v7, %v5952_v63  ;;  %v3744_v4 = vrot.slane %v3743_v2, 4  ;;  %vm3071_vm4 = vcmp.lt.s32.totalorder %v3069_v38, %v3070_v54  ;;  %v6201_v56 = vsel %vm5969_vm0, 4294967295, %v6200_v56 }
0x2581   :  { %v3652_v43 = vcvt.s32.f32 %v3650_v18  ;;  %v3651_v0 = vcvt.s32.f32 %v3649_v40  ;;  %v4320_v30 = vsel %vm4319_vm5, %v3821_v55, 0  ;;  %v4315_v25 = vstv %s4314_s2 }
0x2582   :  { %v4321_v49 = vsel %vm6157_vm8, %v4320_v30, 0  ;;  %vm3745_vm5 = vcmp.lt.s32.totalorder %v3743_v2, %v3744_v4  ;;  %v3072_v37 = vsel %vm3071_vm4, %v3069_v38, %v3070_v54  ;;  %v6202_v55 = vmov 0 }
0x2583   :  { %3655 = vadd.xlane.f32.xlu1 %v3652_v43  ;;  %3653 = vadd.xlane.f32.xlu0 %v3651_v0  ;;  %v4323_v3 = vshrl.u32 %v4321_v49, 16  ;;  %v4322_v61 = vand.u32 65535, %v4321_v49  ;;  %v3746_v5 = vsel %vm3745_vm5, %v3743_v2, %v3744_v4  ;;  %vm5980_vm5 = vcmp.eq.s32.totalorder %v4315_v25, 1 }
0x2584   :  { %v3747_v21 = vrot.slane %v3746_v5, 2  ;;  %v6203_v55 = vsel %vm5980_vm5, 4294967295, %v6202_v55 }
0x2585   :  { %v4325_v9 = vcvt.s32.f32 %v4323_v3  ;;  %v4324_v32 = vcvt.s32.f32 %v4322_v61 }
0x2586   :  { %vm3748_vm8 = vcmp.lt.s32.totalorder %v3746_v5, %v3747_v21 }
0x2587   :  { %4328 = vadd.xlane.f32.xlu1 %v4325_v9  ;;  %4326 = vadd.xlane.f32.xlu0 %v4324_v32  ;;  %v3749_v53 = vsel %vm3748_vm8, %v3746_v5, %v3747_v21  ;;  %v4337_v21 = vstv %s4336_s21 }
0x2588   :  { %v3750_v58 = vrot.slane %v3749_v53, 1 }
0x258a   :  { %vm3751_vm9 = vcmp.lt.s32.totalorder %v3749_v53, %v3750_v58 }
0x258b   :  { %v3752_v3 = vsel %vm3751_vm9, %v3749_v53, %v3750_v58  ;;  %vm3525_vm9 = vcmp.eq.s32.totalorder %v5741_v7, 7 }
0x260c   :  { %v3656_v6 = vpop.xlane.xlu1 %3655  ;;  %v3654_v17 = vpop.xlane.xlu0 %3653 }
0x260d   :  { %v3658_v36 = vcvt.f32.s32 %v3656_v6  ;;  %v3657_v22 = vcvt.f32.s32 %v3654_v17 }
0x260f   :  { %v3659_v11 = vshll.u32 %v3658_v36, 16 }
0x2610   :  { %v4329_v24 = vpop.xlane.xlu1 %4328  ;;  %v4327_v29 = vpop.xlane.xlu0 %4326 }
0x2611   :  { %v3660_v46 = vadd.s32 %v3659_v11, %v3657_v22  ;;  %v4331_v52 = vcvt.f32.s32 %v4329_v24  ;;  %v4330_v57 = vcvt.f32.s32 %v4327_v29 }
0x2613   :  { %v5976_v10 = vsel %vm5969_vm0, %v3660_v46, %v5940_v60  ;;  %v4332_v62 = vshll.u32 %v4331_v52, 16  ;;  %vm3617_vm0 = vcmp.eq.s32.totalorder %v5741_v7, 3 }
0x2614   :  { %vm3669_vm8 = vcmp.eq.s32.totalorder %v5741_v7, %v5976_v10 }
0x2615   :  { %v4333_v18 = vadd.s32 %v4332_v62, %v4330_v57  ;;  %v3670_v40 = vsel %vm3669_vm8, %v3072_v37, 0  ;;  %vm6205_vm8 = vmmov %vm6204_vm6 }
0x2616   :  { %v3671_v43 = vsel %vm6204_vm6, %v3670_v40, 0  ;;  %vm3548_vm6 = vcmp.eq.s32.totalorder %v5741_v7, 6 }
0x2617   :  { %v5988_v0 = vsel %vm5980_vm5, %v4333_v18, %v5952_v63  ;;  %v3673_v30 = vshrl.u32 %v3671_v43, 16  ;;  %v3672_v49 = vand.u32 65535, %v3671_v43  ;;  %vm6007_vm5 = vmand %vm3548_vm6, %vm5825_vm10 }
0x2618   :  { %vm4341_vm4 = vcmp.eq.s32.totalorder %v5741_v7, %v5988_v0  ;;  %vm3552_vm11 = vmand %vm3548_vm6, %vm5834_vm12  ;;  %vm3640_vm12 = vcmp.eq.s32.totalorder %v5741_v7, 2  ;;  %vm6040_vm6 = vcmp.eq.s32.totalorder %v3665_v19, 1 }
0x2619   :  { %v3675_v61 = vcvt.s32.f32 %v3673_v30  ;;  %v3674_v9 = vcvt.s32.f32 %v3672_v49  ;;  %v4342_v32 = vsel %vm4341_vm4, %v3752_v3, 0  ;;  %vm5999_vm4 = vmand %vm3525_vm9, %vm5789_vm2 }
0x261a   :  { %v4343_v1 = vsel %vm6205_vm8, %v4342_v32, 0  ;;  %vm3529_vm8 = vmand %vm3525_vm9, %vm5798_vm13  ;;  %vm3594_vm13 = vcmp.eq.s32.totalorder %v5741_v7, 4  ;;  %vm3663_vm9 = vcmp.eq.s32.totalorder %v5741_v7, 1  ;;  %v4208_v38 = vsel %vm5999_vm4, %v5757_v8, 0 }
0x261b   :  { %3678 = vadd.xlane.f32.xlu1 %v3675_v61  ;;  %3676 = vadd.xlane.f32.xlu0 %v3674_v9  ;;  %v4345_v12 = vshrl.u32 %v4343_v1, 16  ;;  %v4344_v28 = vand.u32 65535, %v4343_v1  ;;  %vm6019_vm2 = vmand %vm3571_vm14, %vm5870_vm7  ;;  %v3530_v33 = vsel %vm3529_vm8, %v5759_v15, 0  ;;  %v4230_v42 = vsel %vm6007_vm5, %v5796_v20, %v4208_v38 }
0x261c   :  { %vm3598_vm10 = vmand %vm3594_vm13, %vm5897_vm3  ;;  %v3553_v13 = vsel %vm3552_vm11, %v5807_v34, %v3530_v33  ;;  %vm6221_vm11 = vnez %v6191_v59  ;;  %vm3685_vm5 = vcmp.eq.s32.totalorder %v5741_v7, 0  ;;  %vm6082_vm8 = vcmp.eq.s32.totalorder %v4337_v21, 1 }
0x261d   :  { %v4347_v51 = vcvt.s32.f32 %v4345_v12  ;;  %v4346_v2 = vcvt.s32.f32 %v4344_v28  ;;  %vm6035_vm7 = vmand %vm3617_vm0, %vm5933_vm1  ;;  %v3576_v31 = vsel %vm6019_vm2, %v5843_v41, %v3553_v13  ;;  %vm6218_vm1 = vnez %v6201_v56 }
0x261e   :  { %vm6048_vm3 = vmand %vm3571_vm14, %vm5861_vm15  ;;  %v3599_v6 = vsel %vm3598_vm10, %v5879_v50, %v3576_v31  ;;  %vm6224_vm2 = vnez %v6197_v45 }
0x261f   :  { %4350 = vadd.xlane.f32.xlu1 %v4347_v51  ;;  %4348 = vadd.xlane.f32.xlu0 %v4346_v2  ;;  %vm3644_vm15 = vmand %vm3640_vm12, %vm6218_vm1  ;;  %v3622_v41 = vsel %vm6035_vm7, %v5904_v48, %v3599_v6  ;;  %v4252_v11 = vsel %vm6048_vm3, %v5832_v26, %v4230_v42 }
0x2620   :  { %vm6073_vm14 = vmand %vm3663_vm9, %vm6040_vm6  ;;  %v3645_v16 = vsel %vm3644_vm15, %v5940_v60, %v3622_v41 }
0x2621   :  { %vm4273_vm4 = vmand %vm3594_vm13, %vm6221_vm11  ;;  %v3668_v29 = vsel %vm6073_vm14, %v5976_v10, %v3645_v16  ;;  %vm6227_vm13 = vnez %v6203_v55 }
0x2622   :  { %vm6093_vm10 = vmand %vm3617_vm0, %vm6224_vm2  ;;  %v4274_v45 = vsel %vm4273_vm4, %v5868_v44, %v4252_v11 }
0x2623   :  { %vm4317_vm0 = vmand %vm3640_vm12, %vm6227_vm13  ;;  %v4296_v46 = vsel %vm6093_vm10, %v5916_v14, %v4274_v45 }
0x2624   :  { %vm4339_vm7 = vmand %vm3663_vm9, %vm6082_vm8  ;;  %v4318_v58 = vsel %vm4317_vm0, %v5952_v63, %v4296_v46 }
0x2625   :  { %v4340_v44 = vsel %vm4339_vm7, %v5988_v0, %v4318_v58 }
0x26a4   :  { %v3679_v35 = vpop.xlane.xlu1 %3678  ;;  %v3677_v27 = vpop.xlane.xlu0 %3676 }
0x26a5   :  { %v3681_v15 = vcvt.f32.s32 %v3679_v35  ;;  %v3680_v36 = vcvt.f32.s32 %v3677_v27 }
0x26a7   :  { %v3682_v17 = vshll.u32 %v3681_v15, 16 }
0x26a8   :  { %v4351_v54 = vpop.xlane.xlu1 %4350  ;;  %v4349_v53 = vpop.xlane.xlu0 %4348 }
0x26a9   :  { %v3683_v20 = vadd.s32 %v3682_v17, %v3680_v36  ;;  %v4353_v50 = vcvt.f32.s32 %v4351_v54  ;;  %v4352_v24 = vcvt.f32.s32 %v4349_v53 }
0x26ab   :  { %v4354_v22 = vshll.u32 %v4353_v50, 16  ;;  %v3684_v26 = vsel %vm6040_vm6, %v3683_v20, %v5976_v10  ;;  %vm6228_vm6 = vcmask 57344  }
0x26ac   :  { %v3686_v60 = vsel %vm3685_vm5, %v3684_v26, %v3668_v29  ;;  %vm6229_vm12 = vmmov %vm6228_vm6 }
0x26ad   :  { %v4355_v52 = vadd.s32 %v4354_v22, %v4352_v24  ;;  %3687 = vst.msk [vmem:[#allocation8] sm:$0x1] %vm6228_vm6, %v3686_v60 }
0x26af   :  { %v4356_v56 = vsel %vm6082_vm8, %v4355_v52, %v5988_v0 }
0x26b0   :  { %v4357_v10 = vsel %vm3685_vm5, %v4356_v56, %v4340_v44 }
0x26b1   :  { %4358 = vst.msk [vmem:[#allocation8 + $0x1] sm:$0x1] %vm6229_vm12, %v4357_v10 }
0x26b2   :  { %4932 = shalt.err (!%p4929_p9)
}
0x26b3   :  { %4368 = dma.vmem_to_hbm [thread:$0]  %s4366_s5, 32, %s6152_s22, [#allocation6]  }
0x26b4   :  { %4943 = dma.done.wait [#allocation6], 32  }
0x26b5   :  { %4944 = vsyncadd [#allocation6], 4294967264 }
0x26b6   :  { %4372 = vsyncpa [#allocation6], 1 }
0x26b7   :  { %4373 = vsyncpa [#allocation7], 1 }

</bundles_post_ra>
